<compile_context>
chip_gen: v7x
topology: tpu7x:2x2x1
jax: 0.10.0
libtpu: 0.0.40
codegen_flags: <defaults>
</compile_context>

<pallas_src>
import numpy as np

import jax
import jax.numpy as jnp
from jax.experimental import pallas as pl
from jax.experimental.pallas import tpu as pltpu


# ----------------------------------------------------------------------------
# Kernel: whole Net forward for ONE batch tile of `bsub` images
# ----------------------------------------------------------------------------
def _net_kernel(xq_ref, t1_ref, b1t_ref, t2_ref, b2t_ref,
                w3_ref, b3_ref, w4_ref, b4_ref, o_ref):
    # xq_ref : (48*bsub, 128) bf16  row (q*6+m)*bsub + b = image-b input row 4*m + q
    # t1_ref : (640, 256) bf16  conv1 Toeplitz: row = dh*128 + w_in, col = s*128 + c*12 + wp
    # b1t_ref: (1, 128)  f32    conv1 bias spread over c*12 + wp lanes
    # t2_ref : (640, 256) bf16  conv2 Toeplitz: row = dh*128 + ci*12 + w_in, col = s*128 + co*4 + wp
    # b2t_ref: (1, 128)  f32
    # w3_ref : (512, 128) bf16  fc1: row = h*128 + co*4 + w (PyTorch flatten order baked in)
    # b3_ref : (1, 128)  f32
    # w4_ref : (128, 128) bf16  fc2 (K 50->128, N 10->128 zero padded)
    # b4_ref : (1, 128)  f32
    # o_ref  : (bsub, 128) f32  log-softmax, lanes 0..9 valid
    bsub = o_ref.shape[0]

    def fdot(lhs, rhs):
        return jnp.dot(lhs, rhs, preferred_element_type=jnp.float32)

    # ---- conv1: one GEMM chain, M = 24*bsub, K-split over the 5 tap rows ----
    acc1 = None
    for dh in range(5):
        lhs = xq_ref[dh * 6 * bsub:(dh + 4) * 6 * bsub, :]          # (24*bsub, 128)
        d = fdot(lhs, t1_ref[dh * 128:(dh + 1) * 128, :])           # (24*bsub, 256)
        acc1 = d if acc1 is None else acc1 + d
    # acc1 row (r*6 + m)*bsub + b  <->  conv1 output row 4*m + r of image b

    # maxpool(2) + bias + relu: H-pool = parity max, W-pool = 128-lane-half max
    b1t = b1t_ref[...]
    pe = jnp.maximum(acc1[:6 * bsub], acc1[6 * bsub:12 * bsub])     # pooled rows 0,2,..,10
    po = jnp.maximum(acc1[12 * bsub:18 * bsub], acc1[18 * bsub:])   # pooled rows 1,3,..,11
    h1e = jnp.maximum(jnp.maximum(pe[:, :128], pe[:, 128:]) + b1t, 0.0)
    h1o = jnp.maximum(jnp.maximum(po[:, :128], po[:, 128:]) + b1t, 0.0)
    h1 = (h1e.astype(jnp.bfloat16), h1o.astype(jnp.bfloat16))       # (6*bsub, 128), lanes c*12+wp

    # ---- conv2: 2 GEMM chains (output-row parity p), M = 4*bsub, K-split over dh
    # TODO(synk): Dropout2d is eval-mode identity here (no stochastic channel drop).
    def conv2_rows(p):
        acc = None
        for dh in range(5):
            q = p + dh
            lhs = h1[q % 2][(q // 2) * bsub:(q // 2 + 4) * bsub, :]  # (4*bsub, 128)
            d = fdot(lhs, t2_ref[dh * 128:(dh + 1) * 128, :])        # (4*bsub, 256)
            acc = d if acc is None else acc + d
        return acc                                                   # rows oh2 = 2*m2 + p

    c0 = conv2_rows(0)
    c1 = conv2_rows(1)
    qq = jnp.maximum(c0, c1)                                         # pooled rows m2 = 0..3
    h2 = jnp.maximum(jnp.maximum(qq[:, :128], qq[:, 128:]) + b2t_ref[...], 0.0)
    h2 = h2.astype(jnp.bfloat16)                                     # (4*bsub, 128), lanes co*4+w

    # ---- fc1 + relu: 4 accumulating K-split dots over the spatial-row slabs --
    afc1 = None
    for h in range(4):
        d = fdot(h2[h * bsub:(h + 1) * bsub, :],
                 w3_ref[h * 128:(h + 1) * 128, :])                   # (bsub, 128)
        afc1 = d if afc1 is None else afc1 + d
    afc1 = jnp.maximum(afc1 + b3_ref[...], 0.0).astype(jnp.bfloat16)

    # ---- fc2 + masked log_softmax --------------------------------------------
    logits = fdot(afc1, w4_ref[...]) + b4_ref[...]                   # (bsub, 128) f32
    lane = jax.lax.broadcasted_iota(jnp.int32, logits.shape, 1)
    z = jnp.where(lane < 10, logits, -1e30)
    m = jnp.max(z, axis=-1, keepdims=True)
    lse = m + jnp.log(jnp.sum(jnp.exp(z - m), axis=-1, keepdims=True))
    o_ref[...] = (z - lse).astype(o_ref.dtype)


# ----------------------------------------------------------------------------
# Host-side (one-time) weight preparation: Toeplitz conv matrices, padded fcs
# ----------------------------------------------------------------------------
def prepare_params(params):
    w1 = np.asarray(params["conv1_w"], np.float32)   # (10, 1, 5, 5)
    b1 = np.asarray(params["conv1_b"], np.float32)   # (10,)
    w2 = np.asarray(params["conv2_w"], np.float32)   # (20, 10, 5, 5)
    b2 = np.asarray(params["conv2_b"], np.float32)   # (20,)
    fw1 = np.asarray(params["fc1_w"], np.float32)    # (50, 320)
    fb1 = np.asarray(params["fc1_b"], np.float32)    # (50,)
    fw2 = np.asarray(params["fc2_w"], np.float32)    # (10, 50)
    fb2 = np.asarray(params["fc2_b"], np.float32)    # (10,)

    # conv1 Toeplitz: row = dh*128 + w_in, col = s*128 + c*12 + wp  (ow = 2*wp + s)
    t1 = np.zeros((5 * 128, 256), np.float32)
    for dh in range(5):
        for dw in range(5):
            for c in range(10):
                for wp in range(12):
                    for s in range(2):
                        win = 2 * wp + s + dw
                        t1[dh * 128 + win, s * 128 + c * 12 + wp] = w1[c, 0, dh, dw]
    b1t = np.zeros((1, 128), np.float32)
    for c in range(10):
        b1t[0, c * 12:(c + 1) * 12] = b1[c]

    # conv2 Toeplitz: row = dh*128 + ci*12 + w_in, col = s*128 + co*4 + wp
    t2 = np.zeros((5 * 128, 256), np.float32)
    for dh in range(5):
        for dw in range(5):
            for ci in range(10):
                for co in range(20):
                    for wp in range(4):
                        for s in range(2):
                            win = 2 * wp + s + dw
                            t2[dh * 128 + ci * 12 + win, s * 128 + co * 4 + wp] = \
                                w2[co, ci, dh, dw]
    b2t = np.zeros((1, 128), np.float32)
    for co in range(20):
        b2t[0, co * 4: co * 4 + 4] = b2[co]

    # fc1: kernel flatten order is row = h*128 + co*4 + w; PyTorch is co*16 + h*4 + w
    w3 = np.zeros((512, 128), np.float32)
    for h in range(4):
        for co in range(20):
            for w in range(4):
                w3[h * 128 + co * 4 + w, :50] = fw1[:, co * 16 + h * 4 + w]
    b3 = np.zeros((1, 128), np.float32)
    b3[0, :50] = fb1

    # fc2: K padded 50->128, N padded 10->128 (zeros)
    w4 = np.zeros((128, 128), np.float32)
    w4[:50, :10] = fw2.T
    b4 = np.zeros((1, 128), np.float32)
    b4[0, :10] = fb2

    return {
        "t1": jnp.asarray(t1, jnp.bfloat16), "b1t": jnp.asarray(b1t),
        "t2": jnp.asarray(t2, jnp.bfloat16), "b2t": jnp.asarray(b2t),
        "w3": jnp.asarray(w3, jnp.bfloat16), "b3": jnp.asarray(b3),
        "w4": jnp.asarray(w4, jnp.bfloat16), "b4": jnp.asarray(b4),
    }


# ----------------------------------------------------------------------------
# Forward pass (single pallas_call, grid over batch tiles)
# ----------------------------------------------------------------------------
def _round_up(n, m):
    return ((n + m - 1) // m) * m


def net_forward(x, pp, block_b=128):
    """x: (B, 1, 28, 28) float32 -> (B, 10) log-probabilities."""
    B = x.shape[0]
    # batch tile: multiple of 16 (bf16 sublane packing keeps all slices aligned)
    bsub = _round_up(min(block_b, _round_up(B, 16)), 16)
    Bp = _round_up(B, bsub)
    nblk = Bp // bsub

    # ---- pack input into the "q-slab" layout expected by the kernel ---------
    x3 = x.reshape(B, 28, 28).astype(jnp.float32)
    x3 = jnp.pad(x3, ((0, Bp - B), (0, 0), (0, 100)))            # (Bp, 28, 128)
    # slab row (q*6 + m) of an image = its input row 4*m + q   (q = 0..7, m = 0..5)
    rows = jnp.asarray([4 * m + q for q in range(8) for m in range(6)], jnp.int32)
    xq = x3[:, rows, :]                                          # (Bp, 48, 128)
    xq = (xq.reshape(nblk, bsub, 48, 128)
            .transpose(0, 2, 1, 3)                               # (nblk, 48, bsub, 128)
            .reshape(nblk * 48 * bsub, 128)
            .astype(jnp.bfloat16))                   # global row = blk*48*bsub + (q*6+m)*bsub + b

    def wspec(shape):
        return pl.BlockSpec(shape, lambda i: tuple(0 for _ in shape))

    out = pl.pallas_call(
        _net_kernel,
        out_shape=jax.ShapeDtypeStruct((Bp, 128), jnp.float32),
        grid=(nblk,),
        in_specs=[
            pl.BlockSpec((48 * bsub, 128), lambda i: (i, 0)),
            wspec((640, 256)), wspec((1, 128)),
            wspec((640, 256)), wspec((1, 128)),
            wspec((512, 128)), wspec((1, 128)),
            wspec((128, 128)), wspec((1, 128)),
        ],
        out_specs=pl.BlockSpec((bsub, 128), lambda i: (i, 0)),
        compiler_params=pltpu.CompilerParams(
            dimension_semantics=("parallel",),
            vmem_limit_bytes=40 * 1024 * 1024),
    )(xq, pp["t1"], pp["b1t"], pp["t2"], pp["b2t"],
      pp["w3"], pp["b3"], pp["w4"], pp["b4"])
    return out[:B, :10]


# ----------------------------------------------------------------------------
# Pure-JAX reference (for correctness check) and param init
# ----------------------------------------------------------------------------
def _pool2_relu(y):
    B, C, H, W = y.shape
    y = y.reshape(B, C, H // 2, 2, W // 2, 2)
    y = jnp.max(jnp.max(y, axis=5), axis=3)
    return jnp.maximum(y, 0.0)


def reference_forward(x, params):
    hp = jax.lax.Precision.HIGHEST
    y = jax.lax.conv_general_dilated(
        x, params["conv1_w"], (1, 1), "VALID",
        dimension_numbers=("NCHW", "OIHW", "NCHW"), precision=hp)
    y = y + params["conv1_b"][None, :, None, None]
    y = _pool2_relu(y)
    y = jax.lax.conv_general_dilated(
        y, params["conv2_w"], (1, 1), "VALID",
        dimension_numbers=("NCHW", "OIHW", "NCHW"), precision=hp)
    y = y + params["conv2_b"][None, :, None, None]
    y = _pool2_relu(y)
    y = y.reshape(y.shape[0], 320)
    y = jnp.maximum(jnp.dot(y, params["fc1_w"].T, precision=hp) + params["fc1_b"], 0.0)
    y = jnp.dot(y, params["fc2_w"].T, precision=hp) + params["fc2_b"]
    return jax.nn.log_softmax(y, axis=1)


def init_params(key):
    ks = jax.random.split(key, 8)
    s = 0.1
    return {
        "conv1_w": s * jax.random.normal(ks[0], (10, 1, 5, 5), jnp.float32),
        "conv1_b": s * jax.random.normal(ks[1], (10,), jnp.float32),
        "conv2_w": s * jax.random.normal(ks[2], (20, 10, 5, 5), jnp.float32),
        "conv2_b": s * jax.random.normal(ks[3], (20,), jnp.float32),
        "fc1_w":   s * jax.random.normal(ks[4], (50, 320), jnp.float32),
        "fc1_b":   s * jax.random.normal(ks[5], (50,), jnp.float32),
        "fc2_w":   s * jax.random.normal(ks[6], (10, 50), jnp.float32),
        "fc2_b":   s * jax.random.normal(ks[7], (10,), jnp.float32),
    }


if __name__ == "__main__":
    key = jax.random.PRNGKey(0)
    pkey, xkey, xkey2 = jax.random.split(key, 3)
    params = init_params(pkey)
    prepped = prepare_params(params)

    fwd = jax.jit(net_forward, static_argnames=("block_b",))

    # MNIST-style input: the 320-feature flatten requires 1x28x28 spatial input.
    x = jax.random.normal(xkey, (2, 1, 28, 28), jnp.float32)
    out = jax.block_until_ready(fwd(x, prepped))
    assert out.shape == (2, 10)
    # log_softmax rows should sum (in prob space) to ~1
    assert jnp.allclose(jnp.sum(jnp.exp(out), axis=1), 1.0, atol=1e-3)
    ref = reference_forward(x, params)
    err = float(jnp.max(jnp.abs(out - ref)))
    assert err < 5e-2, "max abs diff vs reference: %f" % err

    # second config: batch not a multiple of the tile, multi-step grid
    x2 = jax.random.normal(xkey2, (20, 1, 28, 28), jnp.float32)
    out2 = jax.block_until_ready(fwd(x2, prepped, block_b=16))
    assert out2.shape == (20, 10)
    ref2 = reference_forward(x2, params)
    err2 = float(jnp.max(jnp.abs(out2 - ref2)))
    assert err2 < 5e-2, "max abs diff vs reference (batched): %f" % err2

    print("KERNEL_OK")
</pallas_src>

<mosaic_0001>
module attributes {stable_mosaic.version = 11 : i64} {
  func.func @_net_kernel(%arg0: i32, %arg1: memref<768x128xbf16, #tpu.memory_space<vmem>>, %arg2: memref<640x256xbf16, #tpu.memory_space<vmem>>, %arg3: memref<1x128xf32, #tpu.memory_space<vmem>>, %arg4: memref<640x256xbf16, #tpu.memory_space<vmem>>, %arg5: memref<1x128xf32, #tpu.memory_space<vmem>>, %arg6: memref<512x128xbf16, #tpu.memory_space<vmem>>, %arg7: memref<1x128xf32, #tpu.memory_space<vmem>>, %arg8: memref<128x128xbf16, #tpu.memory_space<vmem>>, %arg9: memref<1x128xf32, #tpu.memory_space<vmem>>, %arg10: memref<16x128xf32, #tpu.memory_space<vmem>>) attributes {dimension_semantics = [#tpu.dimension_semantics<parallel>], iteration_bounds = array<i64: 1>, scalar_prefetch = 0 : i64, scratch_operands = 0 : i64, tpu.core_type = #tpu.core_type<tc>, window_params = [{transform_indices = @transform_0, window_bounds = array<i64: 768, 128>}, {pipeline_mode = #tpu.pipeline_mode<synchronous>, transform_indices = @transform_1, window_bounds = array<i64: 640, 256>}, {pipeline_mode = #tpu.pipeline_mode<synchronous>, transform_indices = @transform_2, window_bounds = array<i64: 1, 128>}, {pipeline_mode = #tpu.pipeline_mode<synchronous>, transform_indices = @transform_3, window_bounds = array<i64: 640, 256>}, {pipeline_mode = #tpu.pipeline_mode<synchronous>, transform_indices = @transform_4, window_bounds = array<i64: 1, 128>}, {pipeline_mode = #tpu.pipeline_mode<synchronous>, transform_indices = @transform_5, window_bounds = array<i64: 512, 128>}, {pipeline_mode = #tpu.pipeline_mode<synchronous>, transform_indices = @transform_6, window_bounds = array<i64: 1, 128>}, {pipeline_mode = #tpu.pipeline_mode<synchronous>, transform_indices = @transform_7, window_bounds = array<i64: 128, 128>}, {pipeline_mode = #tpu.pipeline_mode<synchronous>, transform_indices = @transform_8, window_bounds = array<i64: 1, 128>}, {transform_indices = @transform_9, window_bounds = array<i64: 16, 128>}]} {
    %c0 = arith.constant 0 : index
    %c0_0 = arith.constant 0 : index
    %0 = vector.load %arg1[%c0, %c0_0] : memref<768x128xbf16, #tpu.memory_space<vmem>>, vector<384x128xbf16>
    %c0_1 = arith.constant 0 : index
    %c0_2 = arith.constant 0 : index
    %1 = vector.load %arg2[%c0_1, %c0_2] : memref<640x256xbf16, #tpu.memory_space<vmem>>, vector<128x256xbf16>
    %cst = arith.constant dense<0.000000e+00> : vector<384x256xf32>
    %2 = tpu.matmul %0, %1, %cst {dimension_numbers = #tpu.dot_dimension_numbers<[1], [0], [0], [1], [0, 0, 1, 1], [], []>} : vector<384x128xbf16>, vector<128x256xbf16>, vector<384x256xf32> -> vector<384x256xf32>
    %c96 = arith.constant 96 : index
    %c0_3 = arith.constant 0 : index
    %3 = vector.load %arg1[%c96, %c0_3] : memref<768x128xbf16, #tpu.memory_space<vmem>>, vector<384x128xbf16>
    %c128 = arith.constant 128 : index
    %c0_4 = arith.constant 0 : index
    %4 = vector.load %arg2[%c128, %c0_4] : memref<640x256xbf16, #tpu.memory_space<vmem>>, vector<128x256xbf16>
    %cst_5 = arith.constant dense<0.000000e+00> : vector<384x256xf32>
    %5 = tpu.matmul %3, %4, %cst_5 {dimension_numbers = #tpu.dot_dimension_numbers<[1], [0], [0], [1], [0, 0, 1, 1], [], []>} : vector<384x128xbf16>, vector<128x256xbf16>, vector<384x256xf32> -> vector<384x256xf32>
    %6 = arith.addf %2, %5 : vector<384x256xf32>
    %c192 = arith.constant 192 : index
    %c0_6 = arith.constant 0 : index
    %7 = vector.load %arg1[%c192, %c0_6] : memref<768x128xbf16, #tpu.memory_space<vmem>>, vector<384x128xbf16>
    %c256 = arith.constant 256 : index
    %c0_7 = arith.constant 0 : index
    %8 = vector.load %arg2[%c256, %c0_7] : memref<640x256xbf16, #tpu.memory_space<vmem>>, vector<128x256xbf16>
    %cst_8 = arith.constant dense<0.000000e+00> : vector<384x256xf32>
    %9 = tpu.matmul %7, %8, %cst_8 {dimension_numbers = #tpu.dot_dimension_numbers<[1], [0], [0], [1], [0, 0, 1, 1], [], []>} : vector<384x128xbf16>, vector<128x256xbf16>, vector<384x256xf32> -> vector<384x256xf32>
    %10 = arith.addf %6, %9 : vector<384x256xf32>
    %c288 = arith.constant 288 : index
    %c0_9 = arith.constant 0 : index
    %11 = vector.load %arg1[%c288, %c0_9] : memref<768x128xbf16, #tpu.memory_space<vmem>>, vector<384x128xbf16>
    %c384 = arith.constant 384 : index
    %c0_10 = arith.constant 0 : index
    %12 = vector.load %arg2[%c384, %c0_10] : memref<640x256xbf16, #tpu.memory_space<vmem>>, vector<128x256xbf16>
    %cst_11 = arith.constant dense<0.000000e+00> : vector<384x256xf32>
    %13 = tpu.matmul %11, %12, %cst_11 {dimension_numbers = #tpu.dot_dimension_numbers<[1], [0], [0], [1], [0, 0, 1, 1], [], []>} : vector<384x128xbf16>, vector<128x256xbf16>, vector<384x256xf32> -> vector<384x256xf32>
    %14 = arith.addf %10, %13 : vector<384x256xf32>
    %c384_12 = arith.constant 384 : index
    %c0_13 = arith.constant 0 : index
    %15 = vector.load %arg1[%c384_12, %c0_13] : memref<768x128xbf16, #tpu.memory_space<vmem>>, vector<384x128xbf16>
    %c512 = arith.constant 512 : index
    %c0_14 = arith.constant 0 : index
    %16 = vector.load %arg2[%c512, %c0_14] : memref<640x256xbf16, #tpu.memory_space<vmem>>, vector<128x256xbf16>
    %cst_15 = arith.constant dense<0.000000e+00> : vector<384x256xf32>
    %17 = tpu.matmul %15, %16, %cst_15 {dimension_numbers = #tpu.dot_dimension_numbers<[1], [0], [0], [1], [0, 0, 1, 1], [], []>} : vector<384x128xbf16>, vector<128x256xbf16>, vector<384x256xf32> -> vector<384x256xf32>
    %18 = arith.addf %14, %17 : vector<384x256xf32>
    %c0_16 = arith.constant 0 : index
    %c0_17 = arith.constant 0 : index
    %19 = vector.load %arg3[%c0_16, %c0_17] : memref<1x128xf32, #tpu.memory_space<vmem>>, vector<1x128xf32>
    %20 = vector.extract_strided_slice %18 {offsets = [0, 0], sizes = [96, 256], strides = [1, 1]} : vector<384x256xf32> to vector<96x256xf32>
    %21 = vector.extract_strided_slice %18 {offsets = [96, 0], sizes = [96, 256], strides = [1, 1]} : vector<384x256xf32> to vector<96x256xf32>
    %22 = arith.maximumf %20, %21 : vector<96x256xf32>
    %23 = vector.extract_strided_slice %18 {offsets = [192, 0], sizes = [96, 256], strides = [1, 1]} : vector<384x256xf32> to vector<96x256xf32>
    %24 = vector.extract_strided_slice %18 {offsets = [288, 0], sizes = [96, 256], strides = [1, 1]} : vector<384x256xf32> to vector<96x256xf32>
    %25 = arith.maximumf %23, %24 : vector<96x256xf32>
    %26 = vector.extract_strided_slice %22 {offsets = [0, 0], sizes = [96, 128], strides = [1, 1]} : vector<96x256xf32> to vector<96x128xf32>
    %27 = vector.extract_strided_slice %22 {offsets = [0, 128], sizes = [96, 128], strides = [1, 1]} : vector<96x256xf32> to vector<96x128xf32>
    %28 = arith.maximumf %26, %27 : vector<96x128xf32>
    %29 = vector.broadcast %19 : vector<1x128xf32> to vector<96x128xf32>
    %30 = arith.addf %28, %29 : vector<96x128xf32>
    %cst_18 = arith.constant 0.000000e+00 : f32
    %31 = vector.broadcast %cst_18 : f32 to vector<96x128xf32>
    %32 = arith.maximumf %30, %31 : vector<96x128xf32>
    %33 = vector.extract_strided_slice %25 {offsets = [0, 0], sizes = [96, 128], strides = [1, 1]} : vector<96x256xf32> to vector<96x128xf32>
    %34 = vector.extract_strided_slice %25 {offsets = [0, 128], sizes = [96, 128], strides = [1, 1]} : vector<96x256xf32> to vector<96x128xf32>
    %35 = arith.maximumf %33, %34 : vector<96x128xf32>
    %36 = vector.broadcast %19 : vector<1x128xf32> to vector<96x128xf32>
    %37 = arith.addf %35, %36 : vector<96x128xf32>
    %cst_19 = arith.constant 0.000000e+00 : f32
    %38 = vector.broadcast %cst_19 : f32 to vector<96x128xf32>
    %39 = arith.maximumf %37, %38 : vector<96x128xf32>
    %40 = arith.truncf %32 : vector<96x128xf32> to vector<96x128xbf16>
    %41 = arith.truncf %39 : vector<96x128xf32> to vector<96x128xbf16>
    %42 = vector.extract_strided_slice %40 {offsets = [0, 0], sizes = [64, 128], strides = [1, 1]} : vector<96x128xbf16> to vector<64x128xbf16>
    %c0_20 = arith.constant 0 : index
    %c0_21 = arith.constant 0 : index
    %43 = vector.load %arg4[%c0_20, %c0_21] : memref<640x256xbf16, #tpu.memory_space<vmem>>, vector<128x256xbf16>
    %cst_22 = arith.constant dense<0.000000e+00> : vector<64x256xf32>
    %44 = tpu.matmul %42, %43, %cst_22 {dimension_numbers = #tpu.dot_dimension_numbers<[1], [0], [0], [1], [0, 0, 1, 1], [], []>} : vector<64x128xbf16>, vector<128x256xbf16>, vector<64x256xf32> -> vector<64x256xf32>
    %45 = vector.extract_strided_slice %41 {offsets = [0, 0], sizes = [64, 128], strides = [1, 1]} : vector<96x128xbf16> to vector<64x128xbf16>
    %c128_23 = arith.constant 128 : index
    %c0_24 = arith.constant 0 : index
    %46 = vector.load %arg4[%c128_23, %c0_24] : memref<640x256xbf16, #tpu.memory_space<vmem>>, vector<128x256xbf16>
    %cst_25 = arith.constant dense<0.000000e+00> : vector<64x256xf32>
    %47 = tpu.matmul %45, %46, %cst_25 {dimension_numbers = #tpu.dot_dimension_numbers<[1], [0], [0], [1], [0, 0, 1, 1], [], []>} : vector<64x128xbf16>, vector<128x256xbf16>, vector<64x256xf32> -> vector<64x256xf32>
    %48 = arith.addf %44, %47 : vector<64x256xf32>
    %49 = vector.extract_strided_slice %40 {offsets = [16, 0], sizes = [64, 128], strides = [1, 1]} : vector<96x128xbf16> to vector<64x128xbf16>
    %c256_26 = arith.constant 256 : index
    %c0_27 = arith.constant 0 : index
    %50 = vector.load %arg4[%c256_26, %c0_27] : memref<640x256xbf16, #tpu.memory_space<vmem>>, vector<128x256xbf16>
    %cst_28 = arith.constant dense<0.000000e+00> : vector<64x256xf32>
    %51 = tpu.matmul %49, %50, %cst_28 {dimension_numbers = #tpu.dot_dimension_numbers<[1], [0], [0], [1], [0, 0, 1, 1], [], []>} : vector<64x128xbf16>, vector<128x256xbf16>, vector<64x256xf32> -> vector<64x256xf32>
    %52 = arith.addf %48, %51 : vector<64x256xf32>
    %53 = vector.extract_strided_slice %41 {offsets = [16, 0], sizes = [64, 128], strides = [1, 1]} : vector<96x128xbf16> to vector<64x128xbf16>
    %c384_29 = arith.constant 384 : index
    %c0_30 = arith.constant 0 : index
    %54 = vector.load %arg4[%c384_29, %c0_30] : memref<640x256xbf16, #tpu.memory_space<vmem>>, vector<128x256xbf16>
    %cst_31 = arith.constant dense<0.000000e+00> : vector<64x256xf32>
    %55 = tpu.matmul %53, %54, %cst_31 {dimension_numbers = #tpu.dot_dimension_numbers<[1], [0], [0], [1], [0, 0, 1, 1], [], []>} : vector<64x128xbf16>, vector<128x256xbf16>, vector<64x256xf32> -> vector<64x256xf32>
    %56 = arith.addf %52, %55 : vector<64x256xf32>
    %57 = vector.extract_strided_slice %40 {offsets = [32, 0], sizes = [64, 128], strides = [1, 1]} : vector<96x128xbf16> to vector<64x128xbf16>
    %c512_32 = arith.constant 512 : index
    %c0_33 = arith.constant 0 : index
    %58 = vector.load %arg4[%c512_32, %c0_33] : memref<640x256xbf16, #tpu.memory_space<vmem>>, vector<128x256xbf16>
    %cst_34 = arith.constant dense<0.000000e+00> : vector<64x256xf32>
    %59 = tpu.matmul %57, %58, %cst_34 {dimension_numbers = #tpu.dot_dimension_numbers<[1], [0], [0], [1], [0, 0, 1, 1], [], []>} : vector<64x128xbf16>, vector<128x256xbf16>, vector<64x256xf32> -> vector<64x256xf32>
    %60 = arith.addf %56, %59 : vector<64x256xf32>
    %61 = vector.extract_strided_slice %41 {offsets = [0, 0], sizes = [64, 128], strides = [1, 1]} : vector<96x128xbf16> to vector<64x128xbf16>
    %c0_35 = arith.constant 0 : index
    %c0_36 = arith.constant 0 : index
    %62 = vector.load %arg4[%c0_35, %c0_36] : memref<640x256xbf16, #tpu.memory_space<vmem>>, vector<128x256xbf16>
    %cst_37 = arith.constant dense<0.000000e+00> : vector<64x256xf32>
    %63 = tpu.matmul %61, %62, %cst_37 {dimension_numbers = #tpu.dot_dimension_numbers<[1], [0], [0], [1], [0, 0, 1, 1], [], []>} : vector<64x128xbf16>, vector<128x256xbf16>, vector<64x256xf32> -> vector<64x256xf32>
    %64 = vector.extract_strided_slice %40 {offsets = [16, 0], sizes = [64, 128], strides = [1, 1]} : vector<96x128xbf16> to vector<64x128xbf16>
    %c128_38 = arith.constant 128 : index
    %c0_39 = arith.constant 0 : index
    %65 = vector.load %arg4[%c128_38, %c0_39] : memref<640x256xbf16, #tpu.memory_space<vmem>>, vector<128x256xbf16>
    %cst_40 = arith.constant dense<0.000000e+00> : vector<64x256xf32>
    %66 = tpu.matmul %64, %65, %cst_40 {dimension_numbers = #tpu.dot_dimension_numbers<[1], [0], [0], [1], [0, 0, 1, 1], [], []>} : vector<64x128xbf16>, vector<128x256xbf16>, vector<64x256xf32> -> vector<64x256xf32>
    %67 = arith.addf %63, %66 : vector<64x256xf32>
    %68 = vector.extract_strided_slice %41 {offsets = [16, 0], sizes = [64, 128], strides = [1, 1]} : vector<96x128xbf16> to vector<64x128xbf16>
    %c256_41 = arith.constant 256 : index
    %c0_42 = arith.constant 0 : index
    %69 = vector.load %arg4[%c256_41, %c0_42] : memref<640x256xbf16, #tpu.memory_space<vmem>>, vector<128x256xbf16>
    %cst_43 = arith.constant dense<0.000000e+00> : vector<64x256xf32>
    %70 = tpu.matmul %68, %69, %cst_43 {dimension_numbers = #tpu.dot_dimension_numbers<[1], [0], [0], [1], [0, 0, 1, 1], [], []>} : vector<64x128xbf16>, vector<128x256xbf16>, vector<64x256xf32> -> vector<64x256xf32>
    %71 = arith.addf %67, %70 : vector<64x256xf32>
    %72 = vector.extract_strided_slice %40 {offsets = [32, 0], sizes = [64, 128], strides = [1, 1]} : vector<96x128xbf16> to vector<64x128xbf16>
    %c384_44 = arith.constant 384 : index
    %c0_45 = arith.constant 0 : index
    %73 = vector.load %arg4[%c384_44, %c0_45] : memref<640x256xbf16, #tpu.memory_space<vmem>>, vector<128x256xbf16>
    %cst_46 = arith.constant dense<0.000000e+00> : vector<64x256xf32>
    %74 = tpu.matmul %72, %73, %cst_46 {dimension_numbers = #tpu.dot_dimension_numbers<[1], [0], [0], [1], [0, 0, 1, 1], [], []>} : vector<64x128xbf16>, vector<128x256xbf16>, vector<64x256xf32> -> vector<64x256xf32>
    %75 = arith.addf %71, %74 : vector<64x256xf32>
    %76 = vector.extract_strided_slice %41 {offsets = [32, 0], sizes = [64, 128], strides = [1, 1]} : vector<96x128xbf16> to vector<64x128xbf16>
    %c512_47 = arith.constant 512 : index
    %c0_48 = arith.constant 0 : index
    %77 = vector.load %arg4[%c512_47, %c0_48] : memref<640x256xbf16, #tpu.memory_space<vmem>>, vector<128x256xbf16>
    %cst_49 = arith.constant dense<0.000000e+00> : vector<64x256xf32>
    %78 = tpu.matmul %76, %77, %cst_49 {dimension_numbers = #tpu.dot_dimension_numbers<[1], [0], [0], [1], [0, 0, 1, 1], [], []>} : vector<64x128xbf16>, vector<128x256xbf16>, vector<64x256xf32> -> vector<64x256xf32>
    %79 = arith.addf %75, %78 : vector<64x256xf32>
    %80 = arith.maximumf %60, %79 : vector<64x256xf32>
    %81 = vector.extract_strided_slice %80 {offsets = [0, 0], sizes = [64, 128], strides = [1, 1]} : vector<64x256xf32> to vector<64x128xf32>
    %82 = vector.extract_strided_slice %80 {offsets = [0, 128], sizes = [64, 128], strides = [1, 1]} : vector<64x256xf32> to vector<64x128xf32>
    %83 = arith.maximumf %81, %82 : vector<64x128xf32>
    %c0_50 = arith.constant 0 : index
    %c0_51 = arith.constant 0 : index
    %84 = vector.load %arg5[%c0_50, %c0_51] : memref<1x128xf32, #tpu.memory_space<vmem>>, vector<1x128xf32>
    %85 = vector.broadcast %84 : vector<1x128xf32> to vector<64x128xf32>
    %86 = arith.addf %83, %85 : vector<64x128xf32>
    %cst_52 = arith.constant 0.000000e+00 : f32
    %87 = vector.broadcast %cst_52 : f32 to vector<64x128xf32>
    %88 = arith.maximumf %86, %87 : vector<64x128xf32>
    %89 = arith.truncf %88 : vector<64x128xf32> to vector<64x128xbf16>
    %90 = vector.extract_strided_slice %89 {offsets = [0, 0], sizes = [16, 128], strides = [1, 1]} : vector<64x128xbf16> to vector<16x128xbf16>
    %c0_53 = arith.constant 0 : index
    %c0_54 = arith.constant 0 : index
    %91 = vector.load %arg6[%c0_53, %c0_54] : memref<512x128xbf16, #tpu.memory_space<vmem>>, vector<128x128xbf16>
    %cst_55 = arith.constant dense<0.000000e+00> : vector<16x128xf32>
    %92 = tpu.matmul %90, %91, %cst_55 {dimension_numbers = #tpu.dot_dimension_numbers<[1], [0], [0], [1], [0, 0, 1, 1], [], []>} : vector<16x128xbf16>, vector<128x128xbf16>, vector<16x128xf32> -> vector<16x128xf32>
    %93 = vector.extract_strided_slice %89 {offsets = [16, 0], sizes = [16, 128], strides = [1, 1]} : vector<64x128xbf16> to vector<16x128xbf16>
    %c128_56 = arith.constant 128 : index
    %c0_57 = arith.constant 0 : index
    %94 = vector.load %arg6[%c128_56, %c0_57] : memref<512x128xbf16, #tpu.memory_space<vmem>>, vector<128x128xbf16>
    %cst_58 = arith.constant dense<0.000000e+00> : vector<16x128xf32>
    %95 = tpu.matmul %93, %94, %cst_58 {dimension_numbers = #tpu.dot_dimension_numbers<[1], [0], [0], [1], [0, 0, 1, 1], [], []>} : vector<16x128xbf16>, vector<128x128xbf16>, vector<16x128xf32> -> vector<16x128xf32>
    %96 = arith.addf %92, %95 : vector<16x128xf32>
    %97 = vector.extract_strided_slice %89 {offsets = [32, 0], sizes = [16, 128], strides = [1, 1]} : vector<64x128xbf16> to vector<16x128xbf16>
    %c256_59 = arith.constant 256 : index
    %c0_60 = arith.constant 0 : index
    %98 = vector.load %arg6[%c256_59, %c0_60] : memref<512x128xbf16, #tpu.memory_space<vmem>>, vector<128x128xbf16>
    %cst_61 = arith.constant dense<0.000000e+00> : vector<16x128xf32>
    %99 = tpu.matmul %97, %98, %cst_61 {dimension_numbers = #tpu.dot_dimension_numbers<[1], [0], [0], [1], [0, 0, 1, 1], [], []>} : vector<16x128xbf16>, vector<128x128xbf16>, vector<16x128xf32> -> vector<16x128xf32>
    %100 = arith.addf %96, %99 : vector<16x128xf32>
    %101 = vector.extract_strided_slice %89 {offsets = [48, 0], sizes = [16, 128], strides = [1, 1]} : vector<64x128xbf16> to vector<16x128xbf16>
    %c384_62 = arith.constant 384 : index
    %c0_63 = arith.constant 0 : index
    %102 = vector.load %arg6[%c384_62, %c0_63] : memref<512x128xbf16, #tpu.memory_space<vmem>>, vector<128x128xbf16>
    %cst_64 = arith.constant dense<0.000000e+00> : vector<16x128xf32>
    %103 = tpu.matmul %101, %102, %cst_64 {dimension_numbers = #tpu.dot_dimension_numbers<[1], [0], [0], [1], [0, 0, 1, 1], [], []>} : vector<16x128xbf16>, vector<128x128xbf16>, vector<16x128xf32> -> vector<16x128xf32>
    %104 = arith.addf %100, %103 : vector<16x128xf32>
    %c0_65 = arith.constant 0 : index
    %c0_66 = arith.constant 0 : index
    %105 = vector.load %arg7[%c0_65, %c0_66] : memref<1x128xf32, #tpu.memory_space<vmem>>, vector<1x128xf32>
    %106 = vector.broadcast %105 : vector<1x128xf32> to vector<16x128xf32>
    %107 = arith.addf %104, %106 : vector<16x128xf32>
    %cst_67 = arith.constant 0.000000e+00 : f32
    %108 = vector.broadcast %cst_67 : f32 to vector<16x128xf32>
    %109 = arith.maximumf %107, %108 : vector<16x128xf32>
    %110 = arith.truncf %109 : vector<16x128xf32> to vector<16x128xbf16>
    %c0_68 = arith.constant 0 : index
    %c0_69 = arith.constant 0 : index
    %111 = vector.load %arg8[%c0_68, %c0_69] : memref<128x128xbf16, #tpu.memory_space<vmem>>, vector<128x128xbf16>
    %cst_70 = arith.constant dense<0.000000e+00> : vector<16x128xf32>
    %112 = tpu.matmul %110, %111, %cst_70 {dimension_numbers = #tpu.dot_dimension_numbers<[1], [0], [0], [1], [0, 0, 1, 1], [], []>} : vector<16x128xbf16>, vector<128x128xbf16>, vector<16x128xf32> -> vector<16x128xf32>
    %c0_71 = arith.constant 0 : index
    %c0_72 = arith.constant 0 : index
    %113 = vector.load %arg9[%c0_71, %c0_72] : memref<1x128xf32, #tpu.memory_space<vmem>>, vector<1x128xf32>
    %114 = vector.broadcast %113 : vector<1x128xf32> to vector<16x128xf32>
    %115 = arith.addf %112, %114 : vector<16x128xf32>
    %116 = tpu.iota {dimensions = array<i32: 1>} : vector<16x128xi32>
    %c10_i32 = arith.constant 10 : i32
    %117 = vector.broadcast %c10_i32 : i32 to vector<16x128xi32>
    %118 = arith.cmpi slt, %116, %117 : vector<16x128xi32>
    %cst_73 = arith.constant -1.000000e+30 : f32
    %119 = vector.broadcast %cst_73 : f32 to vector<16x128xf32>
    %120 = arith.select %118, %115, %119 : vector<16x128xi1>, vector<16x128xf32>
    %cst_74 = arith.constant dense<0xFF800000> : vector<16xf32>
    %121 = vector.multi_reduction <maximumf>, %120, %cst_74 [1] : vector<16x128xf32> to vector<16xf32>
    %122 = vector.shape_cast %121 : vector<16xf32> to vector<16x1xf32>
    %123 = vector.broadcast %122 : vector<16x1xf32> to vector<16x128xf32>
    %124 = arith.subf %120, %123 : vector<16x128xf32>
    %125 = math.exp %124 : vector<16x128xf32>
    %cst_75 = arith.constant dense<0.000000e+00> : vector<16xf32>
    %126 = vector.multi_reduction <add>, %125, %cst_75 [1] : vector<16x128xf32> to vector<16xf32>
    %127 = vector.shape_cast %126 : vector<16xf32> to vector<16x1xf32>
    %128 = math.log %127 : vector<16x1xf32>
    %129 = arith.addf %122, %128 : vector<16x1xf32>
    %130 = vector.broadcast %129 : vector<16x1xf32> to vector<16x128xf32>
    %131 = arith.subf %120, %130 : vector<16x128xf32>
    %c0_76 = arith.constant 0 : index
    %c0_77 = arith.constant 0 : index
    %132 = vector.load %arg10[%c0_76, %c0_77] : memref<16x128xf32, #tpu.memory_space<vmem>>, vector<16x128xf32>
    tpu.vector_store %arg10[%c0_76, %c0_77], %131 {strides = array<i32>} : memref<16x128xf32, #tpu.memory_space<vmem>>, vector<16x128xf32>,
    return
  }
  func.func @transform_0(%arg0: i32) -> (i32, i32) {
    %c0_i32 = arith.constant 0 : i32
    %c0_i32_0 = arith.constant 0 : i32
    return %arg0, %c0_i32 : i32, i32
  }
  func.func @transform_1(%arg0: i32) -> (i32, i32) {
    %c0_i32 = arith.constant 0 : i32
    %c0_i32_0 = arith.constant 0 : i32
    %c0_i32_1 = arith.constant 0 : i32
    return %c0_i32, %c0_i32_0 : i32, i32
  }
  func.func @transform_2(%arg0: i32) -> (i32, i32) {
    %c0_i32 = arith.constant 0 : i32
    %c0_i32_0 = arith.constant 0 : i32
    %c0_i32_1 = arith.constant 0 : i32
    return %c0_i32, %c0_i32_0 : i32, i32
  }
  func.func @transform_3(%arg0: i32) -> (i32, i32) {
    %c0_i32 = arith.constant 0 : i32
    %c0_i32_0 = arith.constant 0 : i32
    %c0_i32_1 = arith.constant 0 : i32
    return %c0_i32, %c0_i32_0 : i32, i32
  }
  func.func @transform_4(%arg0: i32) -> (i32, i32) {
    %c0_i32 = arith.constant 0 : i32
    %c0_i32_0 = arith.constant 0 : i32
    %c0_i32_1 = arith.constant 0 : i32
    return %c0_i32, %c0_i32_0 : i32, i32
  }
  func.func @transform_5(%arg0: i32) -> (i32, i32) {
    %c0_i32 = arith.constant 0 : i32
    %c0_i32_0 = arith.constant 0 : i32
    %c0_i32_1 = arith.constant 0 : i32
    return %c0_i32, %c0_i32_0 : i32, i32
  }
  func.func @transform_6(%arg0: i32) -> (i32, i32) {
    %c0_i32 = arith.constant 0 : i32
    %c0_i32_0 = arith.constant 0 : i32
    %c0_i32_1 = arith.constant 0 : i32
    return %c0_i32, %c0_i32_0 : i32, i32
  }
  func.func @transform_7(%arg0: i32) -> (i32, i32) {
    %c0_i32 = arith.constant 0 : i32
    %c0_i32_0 = arith.constant 0 : i32
    %c0_i32_1 = arith.constant 0 : i32
    return %c0_i32, %c0_i32_0 : i32, i32
  }
  func.func @transform_8(%arg0: i32) -> (i32, i32) {
    %c0_i32 = arith.constant 0 : i32
    %c0_i32_0 = arith.constant 0 : i32
    %c0_i32_1 = arith.constant 0 : i32
    return %c0_i32, %c0_i32_0 : i32, i32
  }
  func.func @transform_9(%arg0: i32) -> (i32, i32) {
    %c0_i32 = arith.constant 0 : i32
    %c0_i32_0 = arith.constant 0 : i32
    return %arg0, %c0_i32 : i32, i32
  }
}

</mosaic_0001>

<bundles_post_ra>
// kernel: net_forward.1
= control target key start
LH: loop header
LB: loop body
LE: loop exit
PB: predicated region body
PF: predicated region fallthrough
CT: control target
= control target key end

     0   :  { %14 = vsyncpa [#allocation3], 0  ;;  %s8412_s0 = inlined_call_operand.vmem [shape: bf16[768,128], index: 0, kind: input, shape index: {}]   ;;  %s8413_s1 = inlined_call_operand.vmem [shape: bf16[640,256], index: 1, kind: input, shape index: {}]   ;;  %s8414_s2 = inlined_call_operand.vmem [shape: f32[1,128], index: 2, kind: input, shape index: {}]   ;;  %s8415_s3 = inlined_call_operand.hbm [shape: bf16[640,256], index: 3, kind: input, shape index: {}]   ;;  %s8416_s4 = inlined_call_operand.vmem [shape: f32[1,128], index: 4, kind: input, shape index: {}]   ;;  %s8417_s5 = inlined_call_operand.hbm [shape: bf16[512,128], index: 5, kind: input, shape index: {}]   ;;  %s8418_s6 = inlined_call_operand.vmem [shape: f32[1,128], index: 6, kind: input, shape index: {}]   ;;  %s8419_s7 = inlined_call_operand.hbm [shape: bf16[128,128], index: 7, kind: input, shape index: {}]   ;;  %s8420_s8 = inlined_call_operand.vmem [shape: f32[1,128], index: 8, kind: input, shape index: {}]   ;;  %s8421_s9 = inlined_call_operand.vmem [shape: f32[16,128], index: 9, kind: output, shape index: {}]  }
   0x1   :  { %15 = vsyncpa [#allocation5], 0  ;;  %s6575_s30 = smov [#allocation4]   ;;  %s6505_s13 = scalar_lea.hbm %s8417_s5, 4096 }
   0x2   :  { %s41_s10 = sshll.u32 %s6575_s30, 4  ;;  %p6506_p0 = scmp.ne.s32.totalorder %s8417_s5, %s6505_s13  ;;  %s42_s10 = int_to_ptr.vmem [resolvable:$true] %s41_s10 }
   0x3   :  { %p6509_p1 = scmp.lt.u32.totalorder %s6505_s13, %s8417_s5 }
   0x5   :  { %p6511_p2 = pnand %p6509_p1, %p6506_p0 }
   0x7   :  { %6514 = shalt.err (!%p6511_p2)
}
   0x8   :  { %s6515_s18 = scalar_lea.vmem %s42_s10, 4096  ;;  %p6520_p4 = scmp.lt.s32.totalorder %s42_s10, %s42_s10 }
   0x9   :  { %p6516_p3 = scmp.ne.s32.totalorder %s42_s10, %s6515_s18  ;;  %p6521_p5 = scmp.lt.s32.totalorder %s6515_s18, %s6515_s18 }
   0xb   :  { %p6522_p6 = por %p6521_p5, %p6520_p4 }
   0xd   :  { %p6523_p7 = pnand %p6522_p6, %p6516_p3 }
   0xf   :  { %6526 = shalt.err (!%p6523_p7)
}
  0x10   :  { %s6576_s19 = smov 64   ;;  %s6577_s20 = smov 4  }
  0x11   :  { %47 = dma.hbm_to_vmem [thread:$0]  %s8417_s5, 4096, %s42_s10, [#allocation5], %s6576_s19, %s6576_s19, %s6577_s20  }
  0x12   :  { %s6578_s23 = smov [#allocation2]   ;;  %s6527_s27 = scalar_lea.hbm %s8415_s3, 10240 }
  0x13   :  { %s27_s24 = sshll.u32 %s6578_s23, 4  ;;  %p6528_p8 = scmp.ne.s32.totalorder %s8415_s3, %s6527_s27  ;;  %s28_s24 = int_to_ptr.vmem [resolvable:$true] %s27_s24 }
  0x14   :  { %p6531_p9 = scmp.lt.u32.totalorder %s6527_s27, %s8415_s3 }
  0x16   :  { %p6533_p10 = pnand %p6531_p9, %p6528_p8 }
  0x18   :  { %6536 = shalt.err (!%p6533_p10)
}
  0x19   :  { %s6537_s12 = scalar_lea.vmem %s28_s24, 10240  ;;  %p6542_p12 = scmp.lt.s32.totalorder %s28_s24, %s28_s24 }
  0x1a   :  { %p6538_p11 = scmp.ne.s32.totalorder %s28_s24, %s6537_s12  ;;  %p6543_p13 = scmp.lt.s32.totalorder %s6537_s12, %s6537_s12 }
  0x1c   :  { %p6544_p0 = por %p6543_p13, %p6542_p12 }
  0x1e   :  { %p6545_p1 = pnand %p6544_p0, %p6538_p11 }
  0x20   :  { %6548 = shalt.err (!%p6545_p1)
}
  0x21   :  { %s6579_s5 = smov 128   ;;  %s6580_s10 = smov 8  }
  0x22   :  { %33 = dma.hbm_to_vmem [thread:$0]  %s8415_s3, 10240, %s28_s24, [#allocation3], %s6579_s5, %s6579_s5, %s6580_s10  }
  0x23   :  { %s6581_s15 = smov [#allocation6]   ;;  %s6549_s21 = scalar_lea.hbm %s8419_s7, 1024 }
  0x24   :  { %s55_s16 = sshll.u32 %s6581_s15, 4  ;;  %p6550_p2 = scmp.ne.s32.totalorder %s8419_s7, %s6549_s21  ;;  %s56_s16 = int_to_ptr.vmem [resolvable:$true] %s55_s16 }
  0x25   :  { %p6553_p3 = scmp.lt.u32.totalorder %s6549_s21, %s8419_s7 }
  0x27   :  { %p6555_p4 = pnand %p6553_p3, %p6550_p2 }
  0x29   :  { %6558 = shalt.err (!%p6555_p4)
}
  0x2a   :  { %s6559_s27 = scalar_lea.vmem %s56_s16, 1024  ;;  %p6564_p6 = scmp.lt.s32.totalorder %s56_s16, %s56_s16 }
  0x2b   :  { %p6560_p5 = scmp.ne.s32.totalorder %s56_s16, %s6559_s27  ;;  %p6565_p7 = scmp.lt.s32.totalorder %s6559_s27, %s6559_s27 }
  0x2d   :  { %p6566_p8 = por %p6565_p7, %p6564_p6 }
  0x2f   :  { %p6567_p9 = pnand %p6566_p8, %p6560_p5 }
  0x31   :  { %6570 = shalt.err (!%p6567_p9)
}
  0x32   :  { %61 = dma.hbm_to_vmem [thread:$0]  %s8419_s7, 1024, %s56_s16, [#allocation5], %s6576_s19, %s6576_s19, %s6577_s20  }
  0x33   :  { %6571 = dma.done.wait [#allocation3], 10240  }
  0x34   :  { %6572 = vsyncadd [#allocation3], 4294957056 }
  0x35   :  { %6573 = dma.done.wait [#allocation5], 5120  }
  0x36   :  { %6574 = vsyncadd [#allocation5], 4294962176  ;;  %v8422_v0 = vmov 0   ;;  %v6091_v1 = vld [vmem:[%s8413_s1 + $0x4] ss:$8 sps:$4 sm:$0xff]   ;;  %v6120_v28 = vld [vmem:[%s8412_s0 + $0x10] sm:$0xff]  }
  0x37   :  { %811 = vmatprep.mubr.bf16.mxu0 %v8422_v0  ;;  %422 = vmatprep.mubr.bf16.mxu1 %v8422_v0  ;;  %v6093_v2 = vld [vmem:[%s8413_s1] ss:$8 sps:$4 sm:$0xff]   ;;  %v6094_v3 = vld [vmem:[%s8413_s1 + $0x14] ss:$8 sps:$4 sm:$0xff]   ;;  %v6096_v4 = vld [vmem:[%s8413_s1 + $0x10] ss:$8 sps:$4 sm:$0xff]  }
  0x38   :  { %779 = vmatprep.subr.bf16.mxu0 %v6091_v1  ;;  %v6097_v5 = vld [vmem:[%s8413_s1 + $0x24] ss:$8 sps:$4 sm:$0xff]   ;;  %v6099_v6 = vld [vmem:[%s8413_s1 + $0x20] ss:$8 sps:$4 sm:$0xff]   ;;  %v6100_v7 = vld [vmem:[%s8413_s1 + $0x34] ss:$8 sps:$4 sm:$0xff]  }
  0x39   :  { %780 = vmatpush1.bf16.msra.mxu0 %v6093_v2  ;;  %v6102_v8 = vld [vmem:[%s8413_s1 + $0x30] ss:$8 sps:$4 sm:$0xff]   ;;  %v6103_v9 = vld [vmem:[%s8413_s1 + $0x44] ss:$8 sps:$4 sm:$0xff]   ;;  %v6105_v10 = vld [vmem:[%s8413_s1 + $0x40] ss:$8 sps:$4 sm:$0xff]  }
  0x3a   :  { %781 = vmatprep.subr.bf16.mxu0 %v6094_v3  ;;  %v6106_v11 = vld [vmem:[%s8413_s1 + $0x54] ss:$8 sps:$4 sm:$0xff]   ;;  %v6108_v12 = vld [vmem:[%s8413_s1 + $0x50] ss:$8 sps:$4 sm:$0xff]   ;;  %v6109_v13 = vld [vmem:[%s8413_s1 + $0x64] ss:$8 sps:$4 sm:$0xff]  }
  0x3b   :  { %v6111_v14 = vld [vmem:[%s8413_s1 + $0x60] ss:$8 sps:$4 sm:$0xff]   ;;  %v6112_v15 = vld [vmem:[%s8413_s1 + $0x74] ss:$8 sps:$4 sm:$0xff]   ;;  %v6114_v16 = vld [vmem:[%s8413_s1 + $0x70] ss:$8 sps:$4 sm:$0xff]  }
  0x3c   :  { %v6118_v17 = vld [vmem:[%s8413_s1 + $0x104] ss:$8 sps:$4 sm:$0xff]   ;;  %v6116_v19 = vld [vmem:[%s8413_s1 + $0x100] ss:$8 sps:$4 sm:$0xff]   ;;  %v6123_v20 = vld [vmem:[%s8413_s1 + $0x114] ss:$8 sps:$4 sm:$0xff]  }
  0x3d   :  { %782 = vmatpush1.bf16.msra.mxu0 %v6096_v4  ;;  %v6115_v18 = vld [vmem:[%s8412_s0] sm:$0xff]   ;;  %v6121_v21 = vld [vmem:[%s8413_s1 + $0x110] ss:$8 sps:$4 sm:$0xff]   ;;  %v6119_v23 = vld [vmem:[%s8412_s0 + $0x8] sm:$0xff]   ;;  %vm6584_vm0 = vmmov 0  }
  0x3e   :  { %783 = vmatprep.subr.bf16.mxu0 %v6097_v5  ;;  %v6128_v22 = vld [vmem:[%s8413_s1 + $0x124] ss:$8 sps:$4 sm:$0xff]   ;;  %v6126_v24 = vld [vmem:[%s8413_s1 + $0x120] ss:$8 sps:$4 sm:$0xff]   ;;  %v6133_v25 = vld [vmem:[%s8413_s1 + $0x134] ss:$8 sps:$4 sm:$0xff]  }
  0x3f   :  { %v6131_v26 = vld [vmem:[%s8413_s1 + $0x130] ss:$8 sps:$4 sm:$0xff]   ;;  %v6138_v27 = vld [vmem:[%s8413_s1 + $0x144] ss:$8 sps:$4 sm:$0xff]   ;;  %v6136_v29 = vld [vmem:[%s8413_s1 + $0x140] ss:$8 sps:$4 sm:$0xff]  }
  0x40   :  { %v6143_v30 = vld [vmem:[%s8413_s1 + $0x154] ss:$8 sps:$4 sm:$0xff]   ;;  %v6141_v31 = vld [vmem:[%s8413_s1 + $0x150] ss:$8 sps:$4 sm:$0xff]   ;;  %v6148_v32 = vld [vmem:[%s8413_s1 + $0x164] ss:$8 sps:$4 sm:$0xff]  }
  0x41   :  { %784 = vmatpush1.bf16.msra.mxu0 %v6099_v6  ;;  %v6124_v33 = vld [vmem:[%s8412_s0 + $0x18] sm:$0xff]   ;;  %v6146_v34 = vld [vmem:[%s8413_s1 + $0x160] ss:$8 sps:$4 sm:$0xff]   ;;  %v6159_v37 = vld [vmem:[%s8413_s1 + $0x184] ss:$8 sps:$4 sm:$0xff]  }
  0x42   :  { %785 = vmatprep.subr.bf16.mxu0 %v6100_v7  ;;  %v6153_v35 = vld [vmem:[%s8413_s1 + $0x174] ss:$8 sps:$4 sm:$0xff]   ;;  %v6151_v36 = vld [vmem:[%s8413_s1 + $0x170] ss:$8 sps:$4 sm:$0xff]   ;;  %v6125_v38 = vld [vmem:[%s8412_s0 + $0x20] sm:$0xff]  }
  0x43   :  { %v6129_v39 = vld [vmem:[%s8412_s0 + $0x28] sm:$0xff]   ;;  %v6805_v40 = vld [vmem:[%s8412_s0 + $0x30] sm:$0xff]   ;;  %v6812_v41 = vld [vmem:[%s8412_s0 + $0x38] sm:$0xff]  }
  0x44   :  { %v6819_v42 = vld [vmem:[%s8412_s0 + $0x40] sm:$0xff]   ;;  %v6826_v43 = vld [vmem:[%s8412_s0 + $0x48] sm:$0xff]   ;;  %v6833_v44 = vld [vmem:[%s8412_s0 + $0x50] sm:$0xff]  }
  0x45   :  { %786 = vmatpush1.bf16.msra.mxu0 %v6102_v8  ;;  %v6840_v45 = vld [vmem:[%s8412_s0 + $0x58] sm:$0xff]   ;;  %v6847_v46 = vld [vmem:[%s8412_s0 + $0x60] sm:$0xff]   ;;  %v6854_v47 = vld [vmem:[%s8412_s0 + $0x68] sm:$0xff]  }
  0x46   :  { %787 = vmatprep.subr.bf16.mxu0 %v6103_v9  ;;  %v6861_v48 = vld [vmem:[%s8412_s0 + $0x70] sm:$0xff]   ;;  %v6868_v49 = vld [vmem:[%s8412_s0 + $0x78] sm:$0xff]   ;;  %v6875_v50 = vld [vmem:[%s8412_s0 + $0x80] sm:$0xff]  }
  0x47   :  { %v6156_v51 = vld [vmem:[%s8412_s0 + $0x60] sm:$0xff]   ;;  %v6165_v53 = vld [vmem:[%s8413_s1 + $0x194] ss:$8 sps:$4 sm:$0xff]   ;;  %v6163_v54 = vld [vmem:[%s8413_s1 + $0x190] ss:$8 sps:$4 sm:$0xff]  }
  0x48   :  { %v6157_v52 = vld [vmem:[%s8413_s1 + $0x180] ss:$8 sps:$4 sm:$0xff]   ;;  %v6171_v55 = vld [vmem:[%s8413_s1 + $0x1a4] ss:$8 sps:$4 sm:$0xff]   ;;  %v6177_v58 = vld [vmem:[%s8413_s1 + $0x1b4] ss:$8 sps:$4 sm:$0xff]  }
  0x49   :  { %788 = vmatpush1.bf16.msra.mxu0 %v6105_v10  ;;  %v6160_v56 = vld [vmem:[%s8412_s0 + $0x68] sm:$0xff]   ;;  %v6175_v59 = vld [vmem:[%s8413_s1 + $0x1b0] ss:$8 sps:$4 sm:$0xff]   ;;  %v6189_v63 = vld [vmem:[%s8413_s1 + $0x1d4] ss:$8 sps:$4 sm:$0xff]  }
  0x4a   :  { %789 = vmatprep.subr.bf16.mxu0 %v6106_v11  ;;  %v6169_v57 = vld [vmem:[%s8413_s1 + $0x1a0] ss:$8 sps:$4 sm:$0xff]   ;;  %v6183_v60 = vld [vmem:[%s8413_s1 + $0x1c4] ss:$8 sps:$4 sm:$0xff]   ;;  %v6161_v61 = vld [vmem:[%s8412_s0 + $0x70] sm:$0xff]  }
  0x4b   :  { %v6181_v62 = vld [vmem:[%s8413_s1 + $0x1c0] ss:$8 sps:$4 sm:$0xff]   ;;  %v6187_v1 = vld [vmem:[%s8413_s1 + $0x1d0] ss:$8 sps:$4 sm:$0xff]   ;;  %v6195_v2 = vld [vmem:[%s8413_s1 + $0x1e4] ss:$8 sps:$4 sm:$0xff]  }
  0x4c   :  { %v6162_v3 = vld [vmem:[%s8412_s0 + $0x78] sm:$0xff]   ;;  %v6193_v4 = vld [vmem:[%s8413_s1 + $0x1e0] ss:$8 sps:$4 sm:$0xff]   ;;  %v6168_v9 = vld [vmem:[%s8412_s0 + $0x90] sm:$0xff]  }
  0x4d   :  { %790 = vmatpush1.bf16.msra.mxu0 %v6108_v12  ;;  %v6166_v5 = vld [vmem:[%s8412_s0 + $0x80] sm:$0xff]   ;;  %v6167_v6 = vld [vmem:[%s8412_s0 + $0x88] sm:$0xff]   ;;  %v6199_v7 = vld [vmem:[%s8413_s1 + $0x1f0] ss:$8 sps:$4 sm:$0xff]  }
  0x4e   :  { %791 = vmatprep.subr.bf16.mxu0 %v6109_v13  ;;  %v6201_v8 = vld [vmem:[%s8413_s1 + $0x1f4] ss:$8 sps:$4 sm:$0xff]   ;;  %v6173_v11 = vld [vmem:[%s8412_s0 + $0xa0] sm:$0xff]   ;;  %v6174_v13 = vld [vmem:[%s8412_s0 + $0xa8] sm:$0xff]  }
  0x4f   :  { %v6172_v10 = vld [vmem:[%s8412_s0 + $0x98] sm:$0xff]   ;;  %v6207_v12 = vld [vmem:[%s8413_s1 + $0x204] ss:$8 sps:$4 sm:$0xff]  }
  0x51   :  { %792 = vmatpush1.bf16.msra.mxu0 %v6111_v14  ;;  %v6178_v14 = vld [vmem:[%s8412_s0 + $0xb0] sm:$0xff]  }
  0x52   :  { %793 = vmatprep.subr.bf16.mxu0 %v6112_v15  ;;  %v6179_v15 = vld [vmem:[%s8412_s0 + $0xb8] sm:$0xff]  }
  0x55   :  { %794 = vmatpush1.bf16.msra.mxu0 %v6114_v16  ;;  %v6180_v16 = vld [vmem:[%s8412_s0 + $0xc0] sm:$0xff]  }
  0x56   :  { %1340 = vmatprep.subr.bf16.mxu0 %v6118_v17  ;;  %v6184_v17 = vld [vmem:[%s8412_s0 + $0xc8] sm:$0xff]  }
  0x58   :  { %812 = vmatmul.mubr.bf16.vlgmr.msra.gmra.mrb[0].mxu0 %v6115_v18  ;;  %v6216_v18 = vld [vmem:[%s8413_s1 + $0x84] ss:$8 sps:$4 sm:$0xff]  }
  0x59   :  { %1341 = vmatpush1.bf16.msra.mxu0 %v6116_v19  ;;  %821 = vmatprep.mubr.bf16.mxu0 %v8422_v0  ;;  %v6218_v19 = vld [vmem:[%s8413_s1 + $0x80] ss:$8 sps:$4 sm:$0xff]  }
  0x5a   :  { %1342 = vmatprep.subr.bf16.mxu0 %v6123_v20  ;;  %390 = vmatprep.subr.bf16.mxu1 %v6216_v18  ;;  %v6185_v20 = vld [vmem:[%s8412_s0 + $0xd0] sm:$0xff]  }
  0x5b   :  { %391 = vmatpush1.bf16.msra.mxu1 %v6218_v19  ;;  %v6274_v18 = vld [vmem:[%s8413_s1 + $0x274] ss:$8 sps:$4 sm:$0xff]  }
  0x5c   :  { %v7220_v19 = vld [vmem:[%s8412_s0 + $0x90] sm:$0xff]  }
  0x5d   :  { %1343 = vmatpush1.bf16.msra.mxu0 %v6121_v21  ;;  %v6223_v21 = vld [vmem:[%s8413_s1 + $0x94] ss:$8 sps:$4 sm:$0xff]  }
  0x5e   :  { %1344 = vmatprep.subr.bf16.mxu0 %v6128_v22  ;;  %v6225_v22 = vld [vmem:[%s8413_s1 + $0x90] ss:$8 sps:$4 sm:$0xff]   ;;  %392 = vmatprep.subr.bf16.mxu1 %v6223_v21 }
  0x5f   :  { %393 = vmatpush1.bf16.msra.mxu1 %v6225_v22  ;;  %v7231_v21 = vld [vmem:[%s8412_s0 + $0x98] sm:$0xff]   ;;  %v6229_v22 = vld [vmem:[%s8412_s0 + $0xc8] sm:$0xff]  }
  0x60   :  { %822 = vmatmul.mubr.bf16.gmra.mrb[4].mxu0 %v6119_v23  ;;  %v6226_v23 = vld [vmem:[%s8413_s1 + $0xa4] ss:$8 sps:$4 sm:$0xff]  }
  0x61   :  { %831 = vmatprep.mubr.bf16.mxu0 %v8422_v0  ;;  %1345 = vmatpush1.bf16.msra.mxu0 %v6126_v24  ;;  %v6228_v24 = vld [vmem:[%s8413_s1 + $0xa0] ss:$8 sps:$4 sm:$0xff]  }
  0x62   :  { %1346 = vmatprep.subr.bf16.mxu0 %v6133_v25  ;;  %394 = vmatprep.subr.bf16.mxu1 %v6226_v23  ;;  %v6186_v25 = vld [vmem:[%s8412_s0 + $0xd8] sm:$0xff]   ;;  %v7242_v23 = vld [vmem:[%s8412_s0 + $0xa0] sm:$0xff]  }
  0x63   :  { %395 = vmatpush1.bf16.msra.mxu1 %v6228_v24  ;;  %v6236_v24 = vld [vmem:[%s8412_s0 + $0xd0] sm:$0xff]  }
  0x65   :  { %1347 = vmatpush1.bf16.msra.mxu0 %v6131_v26  ;;  %v6230_v26 = vld [vmem:[%s8413_s1 + $0xb4] ss:$8 sps:$4 sm:$0xff]  }
  0x66   :  { %1348 = vmatprep.subr.bf16.mxu0 %v6138_v27  ;;  %v6232_v27 = vld [vmem:[%s8413_s1 + $0xb0] ss:$8 sps:$4 sm:$0xff]   ;;  %396 = vmatprep.subr.bf16.mxu1 %v6230_v26 }
  0x67   :  { %397 = vmatpush1.bf16.msra.mxu1 %v6232_v27  ;;  %v6243_v26 = vld [vmem:[%s8412_s0 + $0xd8] sm:$0xff]   ;;  %v7264_v27 = vld [vmem:[%s8412_s0 + $0xb0] sm:$0xff]  }
  0x68   :  { %832 = vmatmul.mubr.bf16.gmra.mrb[8].mxu0 %v6120_v28  ;;  %v6233_v28 = vld [vmem:[%s8413_s1 + $0xc4] ss:$8 sps:$4 sm:$0xff]  }
  0x69   :  { %841 = vmatprep.mubr.bf16.mxu0 %v8422_v0  ;;  %1349 = vmatpush1.bf16.msra.mxu0 %v6136_v29  ;;  %v6235_v29 = vld [vmem:[%s8413_s1 + $0xc0] ss:$8 sps:$4 sm:$0xff]  }
  0x6a   :  { %1350 = vmatprep.subr.bf16.mxu0 %v6143_v30  ;;  %398 = vmatprep.subr.bf16.mxu1 %v6233_v28  ;;  %v6190_v30 = vld [vmem:[%s8412_s0 + $0xe0] sm:$0xff]  }
  0x6b   :  { %399 = vmatpush1.bf16.msra.mxu1 %v6235_v29  ;;  %v6250_v28 = vld [vmem:[%s8412_s0 + $0xe0] sm:$0xff]   ;;  %v7275_v29 = vld [vmem:[%s8412_s0 + $0xb8] sm:$0xff]  }
  0x6d   :  { %1351 = vmatpush1.bf16.msra.mxu0 %v6141_v31  ;;  %v6237_v31 = vld [vmem:[%s8413_s1 + $0xd4] ss:$8 sps:$4 sm:$0xff]  }
  0x6e   :  { %1352 = vmatprep.subr.bf16.mxu0 %v6148_v32  ;;  %v6239_v32 = vld [vmem:[%s8413_s1 + $0xd0] ss:$8 sps:$4 sm:$0xff]   ;;  %400 = vmatprep.subr.bf16.mxu1 %v6237_v31  ;;  %v6287_v31 = vld [vmem:[%s8412_s0 + $0xc0] sm:$0xff]  }
  0x6f   :  { %401 = vmatpush1.bf16.msra.mxu1 %v6239_v32  ;;  %v6252_v32 = vld [vmem:[%s8412_s0 + $0xf0] sm:$0xff]  }
  0x70   :  { %842 = vmatmul.mubr.bf16.gmra.mrb[12].mxu0 %v6124_v33  ;;  %v6240_v33 = vld [vmem:[%s8413_s1 + $0xe4] ss:$8 sps:$4 sm:$0xff]  }
  0x71   :  { %851 = vmatprep.mubr.bf16.mxu0 %v8422_v0  ;;  %1353 = vmatpush1.bf16.msra.mxu0 %v6146_v34  ;;  %v6242_v34 = vld [vmem:[%s8413_s1 + $0xe0] ss:$8 sps:$4 sm:$0xff]  }
  0x72   :  { %1354 = vmatprep.subr.bf16.mxu0 %v6153_v35  ;;  %402 = vmatprep.subr.bf16.mxu1 %v6240_v33  ;;  %v6191_v35 = vld [vmem:[%s8412_s0 + $0xe8] sm:$0xff]  }
  0x73   :  { %403 = vmatpush1.bf16.msra.mxu1 %v6242_v34  ;;  %v6289_v33 = vld [vmem:[%s8412_s0 + $0xc8] sm:$0xff]   ;;  %v6256_v34 = vld [vmem:[%s8412_s0 + $0xf8] sm:$0xff]  }
  0x75   :  { %1355 = vmatpush1.bf16.msra.mxu0 %v6151_v36  ;;  %v6247_v36 = vld [vmem:[%s8413_s1 + $0xf4] ss:$8 sps:$4 sm:$0xff]  }
  0x76   :  { %1997 = vmatprep.subr.bf16.mxu0 %v6159_v37  ;;  %v6249_v37 = vld [vmem:[%s8413_s1 + $0xf0] ss:$8 sps:$4 sm:$0xff]   ;;  %404 = vmatprep.subr.bf16.mxu1 %v6247_v36  ;;  %v6257_v36 = vld [vmem:[%s8412_s0 + $0x100] sm:$0xff]  }
  0x77   :  { %405 = vmatpush1.bf16.msra.mxu1 %v6249_v37  ;;  %v6293_v37 = vld [vmem:[%s8412_s0 + $0xd8] sm:$0xff]  }
  0x78   :  { %852 = vmatmul.mubr.bf16.gmra.mrb[16].mxu0 %v6125_v38  ;;  %v6481_v38 = vld [vmem:[%s8413_s1 + $0x4] ss:$8 sps:$4 sm:$0xff]  }
  0x79   :  { %861 = vmatprep.mubr.bf16.mxu0 %v8422_v0  ;;  %5553 = vmatprep.subr.bf16.mxu1 %v6481_v38  ;;  %v6258_v38 = vld [vmem:[%s8412_s0 + $0x108] sm:$0xff]  }
  0x7a   :  { %423 = vmatmul.mubr.bf16.vlgmr.msra.gmra.mrb[0].mxu1 %v6805_v40 }
  0x7b   :  { %432 = vmatprep.mubr.bf16.mxu1 %v8422_v0 }
  0x80   :  { %862 = vmatmul.mubr.bf16.gmra.mrb[20].mxu0 %v6129_v39  ;;  %v6192_v39 = vld [vmem:[%s8412_s0 + $0xf0] sm:$0xff]  }
  0x81   :  { %871 = vmatprep.mubr.bf16.mxu0 %v8422_v0 }
  0x82   :  { %433 = vmatmul.mubr.bf16.gmra.mrb[4].mxu1 %v6812_v41 }
  0x83   :  { %442 = vmatprep.mubr.bf16.mxu1 %v8422_v0 }
  0x88   :  { %872 = vmatmul.mubr.bf16.gmra.mrb[24].mxu0 %v6805_v40  ;;  %v6485_v40 = vld [vmem:[%s8413_s1 + $0x24] ss:$8 sps:$4 sm:$0xff]  }
  0x89   :  { %881 = vmatprep.mubr.bf16.mxu0 %v8422_v0 }
  0x8a   :  { %443 = vmatmul.mubr.bf16.gmra.mrb[8].mxu1 %v6819_v42 }
  0x8b   :  { %452 = vmatprep.mubr.bf16.mxu1 %v8422_v0 }
  0x90   :  { %882 = vmatmul.mubr.bf16.gmra.mrb[28].mxu0 %v6812_v41  ;;  %v6489_v41 = vld [vmem:[%s8413_s1 + $0x44] ss:$8 sps:$4 sm:$0xff]  }
  0x91   :  { %891 = vmatprep.mubr.bf16.mxu0 %v8422_v0 }
  0x92   :  { %453 = vmatmul.mubr.bf16.gmra.mrb[12].mxu1 %v6826_v43 }
  0x93   :  { %462 = vmatprep.mubr.bf16.mxu1 %v8422_v0 }
  0x98   :  { %892 = vmatmul.mubr.bf16.gmra.mrb[32].mxu0 %v6819_v42  ;;  %v6493_v42 = vld [vmem:[%s8413_s1 + $0x64] ss:$8 sps:$4 sm:$0xff]  }
  0x99   :  { %901 = vmatprep.mubr.bf16.mxu0 %v8422_v0 }
  0x9a   :  { %463 = vmatmul.mubr.bf16.gmra.mrb[16].mxu1 %v6833_v44 }
  0x9b   :  { %472 = vmatprep.mubr.bf16.mxu1 %v8422_v0 }
  0xa0   :  { %902 = vmatmul.mubr.bf16.gmra.mrb[36].mxu0 %v6826_v43  ;;  %v6202_v43 = vld [vmem:[%s8412_s0 + $0x110] sm:$0xff]  }
  0xa1   :  { %911 = vmatprep.mubr.bf16.mxu0 %v8422_v0 }
  0xa2   :  { %473 = vmatmul.mubr.bf16.gmra.mrb[20].mxu1 %v6840_v45 }
  0xa3   :  { %482 = vmatprep.mubr.bf16.mxu1 %v8422_v0 }
  0xa8   :  { %912 = vmatmul.mubr.bf16.gmra.mrb[40].mxu0 %v6833_v44  ;;  %v6204_v44 = vld [vmem:[%s8412_s0 + $0x90] sm:$0xff]  }
  0xa9   :  { %921 = vmatprep.mubr.bf16.mxu0 %v8422_v0 }
  0xaa   :  { %483 = vmatmul.mubr.bf16.gmra.mrb[24].mxu1 %v6847_v46 }
  0xab   :  { %492 = vmatprep.mubr.bf16.mxu1 %v8422_v0 }
  0xb0   :  { %922 = vmatmul.mubr.bf16.gmra.mrb[44].mxu0 %v6840_v45  ;;  %v6211_v45 = vld [vmem:[%s8413_s1 + $0x210] ss:$8 sps:$4 sm:$0xff]  }
  0xb1   :  { %931 = vmatprep.mubr.bf16.mxu0 %v8422_v0 }
  0xb2   :  { %493 = vmatmul.mubr.bf16.gmra.mrb[28].mxu1 %v6854_v47 }
  0xb3   :  { %502 = vmatprep.mubr.bf16.mxu1 %v8422_v0 }
  0xb8   :  { %932 = vmatmul.mubr.bf16.gmra.mrb[48].mxu0 %v6847_v46  ;;  %v6208_v46 = vld [vmem:[%s8412_s0 + $0x98] sm:$0xff]  }
  0xb9   :  { %941 = vmatprep.mubr.bf16.mxu0 %v8422_v0 }
  0xba   :  { %503 = vmatmul.mubr.bf16.gmra.mrb[32].mxu1 %v6861_v48 }
  0xbb   :  { %512 = vmatprep.mubr.bf16.mxu1 %v8422_v0 }
  0xc0   :  { %942 = vmatmul.mubr.bf16.gmra.mrb[52].mxu0 %v6854_v47  ;;  %v6255_v47 = vld [vmem:[%s8413_s1 + $0x244] ss:$8 sps:$4 sm:$0xff]  }
  0xc1   :  { %951 = vmatprep.mubr.bf16.mxu0 %v8422_v0 }
  0xc2   :  { %513 = vmatmul.mubr.bf16.gmra.mrb[36].mxu1 %v6868_v49 }
  0xc3   :  { %522 = vmatprep.mubr.bf16.mxu1 %v8422_v0 }
  0xc8   :  { %952 = vmatmul.mubr.bf16.gmra.mrb[56].mxu0 %v6861_v48  ;;  %v6267_v48 = vld [vmem:[%s8413_s1 + $0x264] ss:$8 sps:$4 sm:$0xff]  }
  0xc9   :  { %961 = vmatprep.mubr.bf16.mxu0 %v8422_v0 }
  0xca   :  { %523 = vmatmul.mubr.bf16.gmra.mrb[40].mxu1 %v6875_v50 }
  0xcb   :  { %532 = vmatprep.mubr.bf16.mxu1 %v8422_v0 }
  0xd0   :  { %962 = vmatmul.mubr.bf16.gmra.mrb[60].mxu0 %v6868_v49  ;;  %v7203_v49 = vld [vmem:[%s8412_s0 + $0x88] sm:$0xff]  }
  0xd1   :  { %971 = vmatprep.mubr.bf16.mxu0 %v8422_v0 }
  0xd2   :  { %533 = vmatmul.mubr.bf16.gmra.mrb[44].mxu1 %v7203_v49 }
  0xd3   :  { %542 = vmatprep.mubr.bf16.mxu1 %v8422_v0 }
  0xd8   :  { %972 = vmatmul.mubr.bf16.gmra.mrb[64].mxu0 %v6875_v50  ;;  %v6272_v50 = vld [vmem:[%s8413_s1 + $0x270] ss:$8 sps:$4 sm:$0xff]  }
  0xd9   :  { %1372 = vmatprep.mubr.bf16.mxu0 %v8422_v0 }
  0xda   :  { %543 = vmatmul.mubr.bf16.gmra.mrb[48].mxu1 %v7220_v19 }
  0xdb   :  { %552 = vmatprep.mubr.bf16.mxu1 %v8422_v0 }
  0xe0   :  { %1373 = vmatmul.mubr.bf16.vlgmr.msra.gmra.mrb[0].mxu0 %v6156_v51  ;;  %v6482_v51 = vld [vmem:[%s8413_s1] ss:$8 sps:$4 sm:$0xff]  }
  0xe1   :  { %1998 = vmatpush1.bf16.msra.mxu0 %v6157_v52  ;;  %1382 = vmatprep.mubr.bf16.mxu0 %v8422_v0  ;;  %v6483_v52 = vld [vmem:[%s8413_s1 + $0x14] ss:$8 sps:$4 sm:$0xff]  }
  0xe2   :  { %1999 = vmatprep.subr.bf16.mxu0 %v6165_v53  ;;  %5561 = vmatpush1.bf16.msra.mxu1 %v6482_v51  ;;  %v6484_v53 = vld [vmem:[%s8413_s1 + $0x10] ss:$8 sps:$4 sm:$0xff]  }
  0xe3   :  { %5554 = vmatprep.subr.bf16.mxu1 %v6483_v52  ;;  %553 = vmatmul.mubr.bf16.gmra.mrb[52].mxu1 %v7231_v21  ;;  %v6262_v51 = vld [vmem:[%s8412_s0 + $0x110] sm:$0xff]   ;;  %v6297_v52 = vld [vmem:[%s8412_s0 + $0xe8] sm:$0xff]  }
  0xe4   :  { %562 = vmatprep.mubr.bf16.mxu1 %v8422_v0 }
  0xe5   :  { %2000 = vmatpush1.bf16.msra.mxu0 %v6163_v54  ;;  %v6196_v54 = vld [vmem:[%s8412_s0 + $0xf8] sm:$0xff]  }
  0xe6   :  { %2001 = vmatprep.subr.bf16.mxu0 %v6171_v55  ;;  %5562 = vmatpush1.bf16.msra.mxu1 %v6484_v53  ;;  %v6486_v55 = vld [vmem:[%s8413_s1 + $0x20] ss:$8 sps:$4 sm:$0xff]   ;;  %v6263_v53 = vld [vmem:[%s8412_s0 + $0x118] sm:$0xff]  }
  0xe7   :  { %5555 = vmatprep.subr.bf16.mxu1 %v6485_v40  ;;  %v6264_v40 = vld [vmem:[%s8412_s0 + $0x120] sm:$0xff]  }
  0xe8   :  { %1383 = vmatmul.mubr.bf16.gmra.mrb[4].mxu0 %v6160_v56  ;;  %v6487_v56 = vld [vmem:[%s8413_s1 + $0x34] ss:$8 sps:$4 sm:$0xff]  }
  0xe9   :  { %1392 = vmatprep.mubr.bf16.mxu0 %v8422_v0  ;;  %2002 = vmatpush1.bf16.msra.mxu0 %v6169_v57  ;;  %v6488_v57 = vld [vmem:[%s8413_s1 + $0x30] ss:$8 sps:$4 sm:$0xff]  }
  0xea   :  { %2003 = vmatprep.subr.bf16.mxu0 %v6177_v58  ;;  %5563 = vmatpush1.bf16.msra.mxu1 %v6486_v55  ;;  %v6197_v58 = vld [vmem:[%s8412_s0 + $0x100] sm:$0xff]   ;;  %v6269_v55 = vld [vmem:[%s8412_s0 + $0x130] sm:$0xff]  }
  0xeb   :  { %5556 = vmatprep.subr.bf16.mxu1 %v6487_v56  ;;  %563 = vmatmul.mubr.bf16.gmra.mrb[56].mxu1 %v7242_v23  ;;  %v6271_v56 = vld [vmem:[%s8412_s0 + $0x138] sm:$0xff]  }
  0xec   :  { %572 = vmatprep.mubr.bf16.mxu1 %v8422_v0 }
  0xed   :  { %2004 = vmatpush1.bf16.msra.mxu0 %v6175_v59  ;;  %v6490_v59 = vld [vmem:[%s8413_s1 + $0x40] ss:$8 sps:$4 sm:$0xff]  }
  0xee   :  { %2005 = vmatprep.subr.bf16.mxu0 %v6183_v60  ;;  %5564 = vmatpush1.bf16.msra.mxu1 %v6488_v57  ;;  %v6491_v60 = vld [vmem:[%s8413_s1 + $0x54] ss:$8 sps:$4 sm:$0xff]   ;;  %v6276_v57 = vld [vmem:[%s8412_s0 + $0x140] sm:$0xff]  }
  0xef   :  { %5557 = vmatprep.subr.bf16.mxu1 %v6489_v41  ;;  %v6278_v41 = vld [vmem:[%s8412_s0 + $0x148] sm:$0xff]  }
  0xf0   :  { %1393 = vmatmul.mubr.bf16.gmra.mrb[8].mxu0 %v6161_v61  ;;  %v6492_v61 = vld [vmem:[%s8413_s1 + $0x50] ss:$8 sps:$4 sm:$0xff]  }
  0xf1   :  { %1402 = vmatprep.mubr.bf16.mxu0 %v8422_v0  ;;  %2006 = vmatpush1.bf16.msra.mxu0 %v6181_v62  ;;  %v6198_v62 = vld [vmem:[%s8412_s0 + $0x108] sm:$0xff]  }
  0xf2   :  { %2007 = vmatprep.subr.bf16.mxu0 %v6189_v63  ;;  %5565 = vmatpush1.bf16.msra.mxu1 %v6490_v59  ;;  %v6494_v63 = vld [vmem:[%s8413_s1 + $0x60] ss:$8 sps:$4 sm:$0xff]  }
  0xf3   :  { %5558 = vmatprep.subr.bf16.mxu1 %v6491_v60  ;;  %v6282_v59 = vld [vmem:[%s8412_s0 + $0xc8] sm:$0xff]   ;;  %v6284_v60 = vld [vmem:[%s8412_s0 + $0xd0] sm:$0xff]  }
  0xf5   :  { %2008 = vmatpush1.bf16.msra.mxu0 %v6187_v1  ;;  %v6495_v1 = vld [vmem:[%s8413_s1 + $0x74] ss:$8 sps:$4 sm:$0xff]  }
  0xf6   :  { %2009 = vmatprep.subr.bf16.mxu0 %v6195_v2  ;;  %5566 = vmatpush1.bf16.msra.mxu1 %v6492_v61  ;;  %v6496_v2 = vld [vmem:[%s8413_s1 + $0x70] ss:$8 sps:$4 sm:$0xff]  }
  0xf7   :  { %5559 = vmatprep.subr.bf16.mxu1 %v6493_v42  ;;  %v6286_v61 = vld [vmem:[%s8412_s0 + $0xd8] sm:$0xff]  }
  0xf8   :  { %1403 = vmatmul.mubr.bf16.gmra.mrb[12].mxu0 %v6162_v3  ;;  %v6203_v3 = vld [vmem:[%s8412_s0 + $0x118] sm:$0xff]  }
  0xf9   :  { %1412 = vmatprep.mubr.bf16.mxu0 %v8422_v0  ;;  %2010 = vmatpush1.bf16.msra.mxu0 %v6193_v4  ;;  %v6205_v4 = vld [vmem:[%s8413_s1 + $0x200] ss:$8 sps:$4 sm:$0xff]  }
  0xfa   :  { %2011 = vmatprep.subr.bf16.mxu0 %v6201_v8  ;;  %5567 = vmatpush1.bf16.msra.mxu1 %v6494_v63  ;;  %v6246_v8 = vld [vmem:[%s8413_s1 + $0x234] ss:$8 sps:$4 sm:$0xff]  }
  0xfb   :  { %5560 = vmatprep.subr.bf16.mxu1 %v6495_v1 }
  0xfd   :  { %2012 = vmatpush1.bf16.msra.mxu0 %v6199_v7  ;;  %v6220_v7 = vld [vmem:[%s8413_s1 + $0x220] ss:$8 sps:$4 sm:$0xff]  }
  0xfe   :  { %2654 = vmatprep.subr.bf16.mxu0 %v6207_v12  ;;  %5568 = vmatpush1.bf16.msra.mxu1 %v6496_v2  ;;  %v6261_v12 = vld [vmem:[%s8413_s1 + $0x254] ss:$8 sps:$4 sm:$0xff]   ;;  %v6288_v2 = vld [vmem:[%s8412_s0 + $0xe0] sm:$0xff]  }
 0x100   :  { %1413 = vmatmul.mubr.bf16.gmra.mrb[16].mxu0 %v6166_v5  ;;  %v6213_v5 = vld [vmem:[%s8413_s1 + $0x214] ss:$8 sps:$4 sm:$0xff]  }
 0x101   :  { %1422 = vmatprep.mubr.bf16.mxu0 %v8422_v0 }
 0x108   :  { %1423 = vmatmul.mubr.bf16.gmra.mrb[20].mxu0 %v6167_v6  ;;  %v6222_v6 = vld [vmem:[%s8413_s1 + $0x224] ss:$8 sps:$4 sm:$0xff]  }
 0x109   :  { %1432 = vmatprep.mubr.bf16.mxu0 %v8422_v0 }
 0x110   :  { %1433 = vmatmul.mubr.bf16.gmra.mrb[24].mxu0 %v6168_v9  ;;  %v6244_v9 = vld [vmem:[%s8413_s1 + $0x230] ss:$8 sps:$4 sm:$0xff]  }
 0x111   :  { %1442 = vmatprep.mubr.bf16.mxu0 %v8422_v0 }
 0x118   :  { %1443 = vmatmul.mubr.bf16.gmra.mrb[28].mxu0 %v6172_v10  ;;  %v6209_v10 = vld [vmem:[%s8412_s0 + $0xa0] sm:$0xff]  }
 0x119   :  { %1452 = vmatprep.mubr.bf16.mxu0 %v8422_v0 }
 0x120   :  { %1453 = vmatmul.mubr.bf16.gmra.mrb[32].mxu0 %v6173_v11  ;;  %v6253_v11 = vld [vmem:[%s8413_s1 + $0x240] ss:$8 sps:$4 sm:$0xff]  }
 0x121   :  { %1462 = vmatprep.mubr.bf16.mxu0 %v8422_v0 }
 0x128   :  { %1463 = vmatmul.mubr.bf16.gmra.mrb[36].mxu0 %v6174_v13  ;;  %v6259_v13 = vld [vmem:[%s8413_s1 + $0x250] ss:$8 sps:$4 sm:$0xff]  }
 0x129   :  { %1472 = vmatprep.mubr.bf16.mxu0 %v8422_v0 }
 0x130   :  { %1473 = vmatmul.mubr.bf16.gmra.mrb[40].mxu0 %v6178_v14  ;;  %v6210_v14 = vld [vmem:[%s8412_s0 + $0xa8] sm:$0xff]  }
 0x131   :  { %1482 = vmatprep.mubr.bf16.mxu0 %v8422_v0 }
 0x138   :  { %1483 = vmatmul.mubr.bf16.gmra.mrb[44].mxu0 %v6179_v15  ;;  %v6265_v15 = vld [vmem:[%s8413_s1 + $0x260] ss:$8 sps:$4 sm:$0xff]  }
 0x139   :  { %1492 = vmatprep.mubr.bf16.mxu0 %v8422_v0 }
 0x140   :  { %1493 = vmatmul.mubr.bf16.gmra.mrb[48].mxu0 %v6180_v16  ;;  %v6214_v16 = vld [vmem:[%s8412_s0 + $0xb0] sm:$0xff]  }
 0x141   :  { %1502 = vmatprep.mubr.bf16.mxu0 %v8422_v0 }
 0x148   :  { %1503 = vmatmul.mubr.bf16.gmra.mrb[52].mxu0 %v6184_v17  ;;  %v6215_v17 = vld [vmem:[%s8412_s0 + $0xb8] sm:$0xff]  }
 0x149   :  { %1512 = vmatprep.mubr.bf16.mxu0 %v8422_v0 }
 0x14d   :  { %v7384_v42 = vpop.f32.mrb[0].mxu1 }
 0x150   :  { %1513 = vmatmul.mubr.bf16.gmra.mrb[56].mxu0 %v6185_v20  ;;  %v6219_v20 = vld [vmem:[%s8412_s0 + $0xc0] sm:$0xff]  }
 0x151   :  { %1522 = vmatprep.mubr.bf16.mxu0 %v8422_v0 }
 0x158   :  { %1523 = vmatmul.mubr.bf16.gmra.mrb[60].mxu0 %v6186_v25  ;;  %v7253_v25 = vld [vmem:[%s8412_s0 + $0xa8] sm:$0xff]  }
 0x159   :  { %1532 = vmatprep.mubr.bf16.mxu0 %v8422_v0  ;;  %573 = vmatmul.mubr.bf16.gmra.mrb[60].mxu1 %v7253_v25 }
 0x15a   :  { %582 = vmatprep.mubr.bf16.mxu1 %v8422_v0 }
 0x160   :  { %1533 = vmatmul.mubr.bf16.gmra.mrb[64].mxu0 %v6190_v30  ;;  %v6251_v30 = vld [vmem:[%s8412_s0 + $0xe8] sm:$0xff]  }
 0x161   :  { %1542 = vmatprep.mubr.bf16.mxu0 %v8422_v0  ;;  %583 = vmatmul.mubr.bf16.gmra.mrb[64].mxu1 %v7264_v27 }
 0x162   :  { %592 = vmatprep.mubr.bf16.mxu1 %v8422_v0 }
 0x168   :  { %1543 = vmatmul.mubr.bf16.gmra.mrb[68].mxu0 %v6191_v35  ;;  %v6291_v35 = vld [vmem:[%s8412_s0 + $0xd0] sm:$0xff]  }
 0x169   :  { %1552 = vmatprep.mubr.bf16.mxu0 %v8422_v0  ;;  %593 = vmatmul.mubr.bf16.gmra.mrb[68].mxu1 %v7275_v29 }
 0x16a   :  { %602 = vmatprep.mubr.bf16.mxu1 %v8422_v0 }
 0x170   :  { %1553 = vmatmul.mubr.bf16.gmra.mrb[72].mxu0 %v6192_v39  ;;  %v6295_v39 = vld [vmem:[%s8412_s0 + $0xe0] sm:$0xff]  }
 0x171   :  { %1562 = vmatprep.mubr.bf16.mxu0 %v8422_v0  ;;  %603 = vmatmul.mubr.bf16.gmra.mrb[72].mxu1 %v6287_v31 }
 0x172   :  { %612 = vmatprep.mubr.bf16.mxu1 %v8422_v0 }
 0x178   :  { %1563 = vmatmul.mubr.bf16.gmra.mrb[76].mxu0 %v6196_v54  ;;  %v6268_v54 = vld [vmem:[%s8412_s0 + $0x128] sm:$0xff]  }
 0x179   :  { %1572 = vmatprep.mubr.bf16.mxu0 %v8422_v0  ;;  %613 = vmatmul.mubr.bf16.gmra.mrb[76].mxu1 %v6289_v33 }
 0x17a   :  { %622 = vmatprep.mubr.bf16.mxu1 %v8422_v0 }
 0x180   :  { %1573 = vmatmul.mubr.bf16.gmra.mrb[80].mxu0 %v6197_v58  ;;  %v6280_v58 = vld [vmem:[%s8412_s0 + $0xc0] sm:$0xff]  }
 0x181   :  { %1582 = vmatprep.mubr.bf16.mxu0 %v8422_v0  ;;  %623 = vmatmul.mubr.bf16.gmra.mrb[80].mxu1 %v6291_v35 }
 0x182   :  { %632 = vmatprep.mubr.bf16.mxu1 %v8422_v0 }
 0x188   :  { %1583 = vmatmul.mubr.bf16.gmra.mrb[84].mxu0 %v6198_v62  ;;  %v7387_v62 = vpop.f32.mrb[1].mxu1 }
 0x189   :  { %1592 = vmatprep.mubr.bf16.mxu0 %v8422_v0  ;;  %633 = vmatmul.mubr.bf16.gmra.mrb[84].mxu1 %v6293_v37  ;;  %v7389_v63 = vpop.f32.mrb[2].mxu1 }
 0x18a   :  { %642 = vmatprep.mubr.bf16.mxu1 %v8422_v0  ;;  %v7391_v1 = vpop.f32.mrb[3].mxu1 }
 0x190   :  { %1593 = vmatmul.mubr.bf16.gmra.mrb[88].mxu0 %v6202_v43  ;;  %v7396_v43 = vpop.f32.mrb[4].mxu1 }
 0x191   :  { %1602 = vmatprep.mubr.bf16.mxu0 %v8422_v0  ;;  %643 = vmatmul.mubr.bf16.gmra.mrb[88].mxu1 %v6295_v39  ;;  %v6302_v39 = vld [vmem:[%s8412_s0 + $0x128] sm:$0xff]  }
 0x192   :  { %652 = vmatprep.mubr.bf16.mxu1 %v8422_v0 }
 0x198   :  { %1603 = vmatmul.mubr.bf16.gmra.mrb[92].mxu0 %v6203_v3  ;;  %v7399_v3 = vpop.f32.mrb[5].mxu1 }
 0x199   :  { %2029 = vmatprep.mubr.bf16.mxu0 %v8422_v0  ;;  %653 = vmatmul.mubr.bf16.gmra.mrb[92].mxu1 %v6297_v52 }
 0x19a   :  { %981 = vmatprep.mubr.bf16.mxu1 %v8422_v0 }
 0x1a0   :  { %2030 = vmatmul.mubr.bf16.vlgmr.msra.gmra.mrb[0].mxu0 %v6204_v44  ;;  %v7401_v44 = vpop.f32.mrb[6].mxu1 }
 0x1a1   :  { %2655 = vmatpush1.bf16.msra.mxu0 %v6205_v4  ;;  %2039 = vmatprep.mubr.bf16.mxu0 %v8422_v0  ;;  %v7403_v4 = vpop.f32.mrb[7].mxu1 }
 0x1a2   :  { %2656 = vmatprep.subr.bf16.mxu0 %v6213_v5  ;;  %982 = vmatmul.mubr.bf16.vlgmr.msra.gmra.mrb[68].mxu1 %v7203_v49  ;;  %v6290_v5 = vld [vmem:[%s8412_s0 + $0xe8] sm:$0xff]  }
 0x1a3   :  { %991 = vmatprep.mubr.bf16.mxu1 %v8422_v0 }
 0x1a5   :  { %2657 = vmatpush1.bf16.msra.mxu0 %v6211_v45  ;;  %v7408_v45 = vpop.f32.mrb[8].mxu1 }
 0x1a6   :  { %2658 = vmatprep.subr.bf16.mxu0 %v6222_v6  ;;  %v7411_v6 = vpop.f32.mrb[9].mxu1 }
 0x1a8   :  { %2040 = vmatmul.mubr.bf16.gmra.mrb[4].mxu0 %v6208_v46  ;;  %v7413_v46 = vpop.f32.mrb[10].mxu1 }
 0x1a9   :  { %2049 = vmatprep.mubr.bf16.mxu0 %v8422_v0  ;;  %2659 = vmatpush1.bf16.msra.mxu0 %v6220_v7  ;;  %v7415_v7 = vpop.f32.mrb[11].mxu1 }
 0x1aa   :  { %2660 = vmatprep.subr.bf16.mxu0 %v6246_v8  ;;  %992 = vmatmul.mubr.bf16.gmra.mrb[72].mxu1 %v7220_v19  ;;  %v6292_v8 = vld [vmem:[%s8412_s0 + $0xf0] sm:$0xff]  }
 0x1ab   :  { %1001 = vmatprep.mubr.bf16.mxu1 %v8422_v0 }
 0x1ad   :  { %2661 = vmatpush1.bf16.msra.mxu0 %v6244_v9  ;;  %v7420_v9 = vpop.f32.mrb[12].mxu1 }
 0x1ae   :  { %2662 = vmatprep.subr.bf16.mxu0 %v6255_v47  ;;  %v7423_v47 = vpop.f32.mrb[13].mxu1 }
 0x1b0   :  { %2050 = vmatmul.mubr.bf16.gmra.mrb[8].mxu0 %v6209_v10  ;;  %v7425_v10 = vpop.f32.mrb[14].mxu1 }
 0x1b1   :  { %2059 = vmatprep.mubr.bf16.mxu0 %v8422_v0  ;;  %2663 = vmatpush1.bf16.msra.mxu0 %v6253_v11  ;;  %v7427_v11 = vpop.f32.mrb[15].mxu1 }
 0x1b2   :  { %2664 = vmatprep.subr.bf16.mxu0 %v6261_v12  ;;  %1002 = vmatmul.mubr.bf16.gmra.mrb[76].mxu1 %v7231_v21  ;;  %v6294_v12 = vld [vmem:[%s8412_s0 + $0xf8] sm:$0xff]  }
 0x1b3   :  { %1011 = vmatprep.mubr.bf16.mxu1 %v8422_v0 }
 0x1b5   :  { %2665 = vmatpush1.bf16.msra.mxu0 %v6259_v13  ;;  %v7432_v13 = vpop.f32.mrb[16].mxu1 }
 0x1b6   :  { %2666 = vmatprep.subr.bf16.mxu0 %v6267_v48  ;;  %v7435_v48 = vpop.f32.mrb[17].mxu1 }
 0x1b8   :  { %2060 = vmatmul.mubr.bf16.gmra.mrb[12].mxu0 %v6210_v14  ;;  %v7437_v14 = vpop.f32.mrb[18].mxu1 }
 0x1b9   :  { %2069 = vmatprep.mubr.bf16.mxu0 %v8422_v0  ;;  %2667 = vmatpush1.bf16.msra.mxu0 %v6265_v15  ;;  %v7439_v15 = vpop.f32.mrb[19].mxu1 }
 0x1ba   :  { %2668 = vmatprep.subr.bf16.mxu0 %v6274_v18  ;;  %1012 = vmatmul.mubr.bf16.gmra.mrb[80].mxu1 %v7242_v23  ;;  %v7444_v49 = vpop.f32.mrb[20].mxu1  ;;  %v6298_v23 = vld [vmem:[%s8412_s0 + $0x108] sm:$0xff]  }
 0x1bb   :  { %1021 = vmatprep.mubr.bf16.mxu1 %v8422_v0 }
 0x1bd   :  { %2669 = vmatpush1.bf16.msra.mxu0 %v6272_v50 }
 0x1c0   :  { %2070 = vmatmul.mubr.bf16.gmra.mrb[16].mxu0 %v6214_v16  ;;  %v6296_v16 = vld [vmem:[%s8412_s0 + $0x100] sm:$0xff]  }
 0x1c1   :  { %2079 = vmatprep.mubr.bf16.mxu0 %v8422_v0 }
 0x1c2   :  { %1022 = vmatmul.mubr.bf16.gmra.mrb[84].mxu1 %v7253_v25 }
 0x1c3   :  { %1031 = vmatprep.mubr.bf16.mxu1 %v8422_v0 }
 0x1c8   :  { %2080 = vmatmul.mubr.bf16.gmra.mrb[20].mxu0 %v6215_v17  ;;  %v7446_v17 = vpop.f32.mrb[21].mxu1 }
 0x1c9   :  { %2089 = vmatprep.mubr.bf16.mxu0 %v8422_v0  ;;  %v7448_v50 = vpop.f32.mrb[22].mxu1 }
 0x1ca   :  { %1032 = vmatmul.mubr.bf16.gmra.mrb[88].mxu1 %v7264_v27  ;;  %v7450_v18 = vpop.f32.mrb[23].mxu1  ;;  %v6299_v27 = vld [vmem:[%s8412_s0 + $0x110] sm:$0xff]  }
 0x1cb   :  { %1041 = vmatprep.mubr.bf16.mxu1 %v8422_v0  ;;  %v7452_v19 = vpop.f32.mrb[24].mxu1 }
 0x1d0   :  { %2090 = vmatmul.mubr.bf16.gmra.mrb[24].mxu0 %v6219_v20  ;;  %v7455_v20 = vpop.f32.mrb[25].mxu1 }
 0x1d1   :  { %2099 = vmatprep.mubr.bf16.mxu0 %v8422_v0  ;;  %v7457_v21 = vpop.f32.mrb[26].mxu1 }
 0x1d2   :  { %1042 = vmatmul.mubr.bf16.gmra.mrb[92].mxu1 %v7275_v29  ;;  %v6300_v29 = vld [vmem:[%s8412_s0 + $0x118] sm:$0xff]  }
 0x1d3   :  { %3306 = vmatprep.mubr.bf16.mxu1 %v8422_v0 }
 0x1d8   :  { %2100 = vmatmul.mubr.bf16.gmra.mrb[28].mxu0 %v6229_v22  ;;  %v7459_v22 = vpop.f32.mrb[27].mxu1 }
 0x1d9   :  { %2109 = vmatprep.mubr.bf16.mxu0 %v8422_v0 }
 0x1e0   :  { %2110 = vmatmul.mubr.bf16.gmra.mrb[32].mxu0 %v6236_v24  ;;  %v7464_v24 = vpop.f32.mrb[28].mxu1 }
 0x1e1   :  { %2119 = vmatprep.mubr.bf16.mxu0 %v8422_v0  ;;  %v7466_v25 = vpop.f32.mrb[29].mxu1 }
 0x1e8   :  { %2120 = vmatmul.mubr.bf16.gmra.mrb[36].mxu0 %v6243_v26  ;;  %v7468_v26 = vpop.f32.mrb[30].mxu1 }
 0x1e9   :  { %2129 = vmatprep.mubr.bf16.mxu0 %v8422_v0 }
 0x1f0   :  { %2130 = vmatmul.mubr.bf16.gmra.mrb[40].mxu0 %v6250_v28  ;;  %v7475_v28 = vpop.f32.mrb[31].mxu1 }
 0x1f1   :  { %2139 = vmatprep.mubr.bf16.mxu0 %v8422_v0 }
 0x1f8   :  { %2140 = vmatmul.mubr.bf16.gmra.mrb[44].mxu0 %v6251_v30  ;;  %v7480_v30 = vpop.f32.mrb[32].mxu1 }
 0x1f9   :  { %2149 = vmatprep.mubr.bf16.mxu0 %v8422_v0  ;;  %v7482_v31 = vpop.f32.mrb[33].mxu1 }
 0x200   :  { %2150 = vmatmul.mubr.bf16.gmra.mrb[48].mxu0 %v6252_v32  ;;  %v7485_v32 = vpop.f32.mrb[34].mxu1 }
 0x201   :  { %2159 = vmatprep.mubr.bf16.mxu0 %v8422_v0  ;;  %v7487_v33 = vpop.f32.mrb[35].mxu1 }
 0x202   :  { %v7492_v35 = vpop.f32.mrb[36].mxu1 }
 0x208   :  { %2160 = vmatmul.mubr.bf16.gmra.mrb[52].mxu0 %v6256_v34  ;;  %v6301_v34 = vld [vmem:[%s8412_s0 + $0x120] sm:$0xff]  }
 0x209   :  { %2169 = vmatprep.mubr.bf16.mxu0 %v8422_v0 }
 0x210   :  { %2170 = vmatmul.mubr.bf16.gmra.mrb[56].mxu0 %v6257_v36  ;;  %v7494_v36 = vpop.f32.mrb[37].mxu1 }
 0x211   :  { %2179 = vmatprep.mubr.bf16.mxu0 %v8422_v0  ;;  %v7497_v37 = vpop.f32.mrb[38].mxu1 }
 0x218   :  { %2180 = vmatmul.mubr.bf16.gmra.mrb[60].mxu0 %v6258_v38  ;;  %v7499_v38 = vpop.f32.mrb[39].mxu1 }
 0x219   :  { %2189 = vmatprep.mubr.bf16.mxu0 %v8422_v0 }
 0x220   :  { %2190 = vmatmul.mubr.bf16.gmra.mrb[64].mxu0 %v6262_v51  ;;  %v7504_v51 = vpop.f32.mrb[40].mxu1 }
 0x221   :  { %2199 = vmatprep.mubr.bf16.mxu0 %v8422_v0  ;;  %v7506_v52 = vpop.f32.mrb[41].mxu1 }
 0x228   :  { %2200 = vmatmul.mubr.bf16.gmra.mrb[68].mxu0 %v6263_v53  ;;  %v7509_v53 = vpop.f32.mrb[42].mxu1 }
 0x229   :  { %2209 = vmatprep.mubr.bf16.mxu0 %v8422_v0 }
 0x230   :  { %2210 = vmatmul.mubr.bf16.gmra.mrb[72].mxu0 %v6264_v40  ;;  %v7511_v40 = vpop.f32.mrb[43].mxu1 }
 0x231   :  { %2219 = vmatprep.mubr.bf16.mxu0 %v8422_v0 }
 0x238   :  { %2220 = vmatmul.mubr.bf16.gmra.mrb[76].mxu0 %v6268_v54  ;;  %v6303_v54 = vld [vmem:[%s8412_s0 + $0x130] sm:$0xff]  }
 0x239   :  { %2229 = vmatprep.mubr.bf16.mxu0 %v8422_v0 }
 0x240   :  { %2230 = vmatmul.mubr.bf16.gmra.mrb[80].mxu0 %v6269_v55  ;;  %v7516_v55 = vpop.f32.mrb[44].mxu1 }
 0x241   :  { %2239 = vmatprep.mubr.bf16.mxu0 %v8422_v0 }
 0x248   :  { %2240 = vmatmul.mubr.bf16.gmra.mrb[84].mxu0 %v6271_v56  ;;  %v7518_v56 = vpop.f32.mrb[45].mxu1 }
 0x249   :  { %2249 = vmatprep.mubr.bf16.mxu0 %v8422_v0 }
 0x250   :  { %2250 = vmatmul.mubr.bf16.gmra.mrb[88].mxu0 %v6276_v57  ;;  %v7521_v57 = vpop.f32.mrb[46].mxu1 }
 0x251   :  { %2259 = vmatprep.mubr.bf16.mxu0 %v8422_v0 }
 0x258   :  { %2260 = vmatmul.mubr.bf16.gmra.mrb[92].mxu0 %v6278_v41  ;;  %v7523_v41 = vpop.f32.mrb[47].mxu1 }
 0x259   :  { %2686 = vmatprep.mubr.bf16.mxu0 %v8422_v0 }
 0x260   :  { %2687 = vmatmul.mubr.bf16.vlgmr.msra.gmra.mrb[0].mxu0 %v6280_v58  ;;  %v6304_v58 = vld [vmem:[%s8412_s0 + $0x138] sm:$0xff]  }
 0x261   :  { %2696 = vmatprep.mubr.bf16.mxu0 %v8422_v0 }
 0x268   :  { %2697 = vmatmul.mubr.bf16.gmra.mrb[4].mxu0 %v6282_v59  ;;  %v7528_v59 = vpop.f32.mrb[48].mxu1 }
 0x269   :  { %2706 = vmatprep.mubr.bf16.mxu0 %v8422_v0 }
 0x270   :  { %2707 = vmatmul.mubr.bf16.gmra.mrb[8].mxu0 %v6284_v60  ;;  %v7530_v60 = vpop.f32.mrb[49].mxu1 }
 0x271   :  { %2716 = vmatprep.mubr.bf16.mxu0 %v8422_v0 }
 0x278   :  { %2717 = vmatmul.mubr.bf16.gmra.mrb[12].mxu0 %v6286_v61  ;;  %v7533_v61 = vpop.f32.mrb[50].mxu1 }
 0x279   :  { %2726 = vmatprep.mubr.bf16.mxu0 %v8422_v0 }
 0x280   :  { %2727 = vmatmul.mubr.bf16.gmra.mrb[16].mxu0 %v6288_v2  ;;  %v7535_v2 = vpop.f32.mrb[51].mxu1 }
 0x281   :  { %2736 = vmatprep.mubr.bf16.mxu0 %v8422_v0  ;;  %8451 = vst [vmem:[#allocation9_spill] sm:$0xff] %v7535_v2 }
 0x288   :  { %2737 = vmatmul.mubr.bf16.gmra.mrb[20].mxu0 %v6290_v5  ;;  %v6305_v5 = vld [vmem:[%s8412_s0 + $0x140] sm:$0xff]  }
 0x289   :  { %2746 = vmatprep.mubr.bf16.mxu0 %v8422_v0 }
 0x290   :  { %2747 = vmatmul.mubr.bf16.gmra.mrb[24].mxu0 %v6292_v8  ;;  %v7540_v8 = vpop.f32.mrb[52].mxu1 }
 0x291   :  { %2756 = vmatprep.mubr.bf16.mxu0 %v8422_v0  ;;  %8452 = vst [vmem:[#allocation10_spill] sm:$0xff] %v7540_v8 }
 0x298   :  { %2757 = vmatmul.mubr.bf16.gmra.mrb[28].mxu0 %v6294_v12  ;;  %v7542_v12 = vpop.f32.mrb[53].mxu1 }
 0x299   :  { %2766 = vmatprep.mubr.bf16.mxu0 %v8422_v0  ;;  %8453 = vst [vmem:[#allocation11_spill] sm:$0xff] %v7542_v12 }
 0x2a0   :  { %2767 = vmatmul.mubr.bf16.gmra.mrb[32].mxu0 %v6296_v16  ;;  %v7545_v16 = vpop.f32.mrb[54].mxu1 }
 0x2a1   :  { %2776 = vmatprep.mubr.bf16.mxu0 %v8422_v0  ;;  %8454 = vst [vmem:[#allocation12_spill] sm:$0xff] %v7545_v16  ;;  %v6315_v16 = vld [vmem:[#allocation2 + $0x84] ss:$8 sps:$4 sm:$0xff]  }
 0x2a2   :  { %3274 = vmatprep.subr.bf16.mxu1 %v6315_v16 }
 0x2a8   :  { %2777 = vmatmul.mubr.bf16.gmra.mrb[36].mxu0 %v6298_v23  ;;  %v7547_v23 = vpop.f32.mrb[55].mxu1 }
 0x2a9   :  { %2786 = vmatprep.mubr.bf16.mxu0 %v8422_v0  ;;  %8455 = vst [vmem:[#allocation13_spill] sm:$0xff] %v7547_v23 }
 0x2b0   :  { %2787 = vmatmul.mubr.bf16.gmra.mrb[40].mxu0 %v6299_v27  ;;  %v6306_v27 = vld [vmem:[%s8412_s0 + $0x148] sm:$0xff]  }
 0x2b1   :  { %2796 = vmatprep.mubr.bf16.mxu0 %v8422_v0 }
 0x2b8   :  { %2797 = vmatmul.mubr.bf16.gmra.mrb[44].mxu0 %v6300_v29  ;;  %v7552_v29 = vpop.f32.mrb[56].mxu1 }
 0x2b9   :  { %2806 = vmatprep.mubr.bf16.mxu0 %v8422_v0  ;;  %8456 = vst [vmem:[#allocation14_spill] sm:$0xff] %v7552_v29 }
 0x2c0   :  { %2807 = vmatmul.mubr.bf16.gmra.mrb[48].mxu0 %v6301_v34  ;;  %v7555_v34 = vpop.f32.mrb[57].mxu1 }
 0x2c1   :  { %2816 = vmatprep.mubr.bf16.mxu0 %v8422_v0  ;;  %8457 = vst [vmem:[#allocation15_spill] sm:$0xff] %v7555_v34 }
 0x2c8   :  { %2817 = vmatmul.mubr.bf16.gmra.mrb[52].mxu0 %v6302_v39  ;;  %v7557_v39 = vpop.f32.mrb[58].mxu1 }
 0x2c9   :  { %2826 = vmatprep.mubr.bf16.mxu0 %v8422_v0  ;;  %8458 = vst [vmem:[#allocation16_spill] sm:$0xff] %v7557_v39  ;;  %v6308_v39 = vld [vmem:[%s8412_s0 + $0x158] sm:$0xff]  }
 0x2d0   :  { %2827 = vmatmul.mubr.bf16.gmra.mrb[56].mxu0 %v6303_v54  ;;  %v7559_v54 = vpop.f32.mrb[59].mxu1 }
 0x2d1   :  { %2836 = vmatprep.mubr.bf16.mxu0 %v8422_v0  ;;  %8459 = vst [vmem:[#allocation17_spill] sm:$0xff] %v7559_v54 }
 0x2d8   :  { %2837 = vmatmul.mubr.bf16.gmra.mrb[60].mxu0 %v6304_v58  ;;  %v6307_v58 = vld [vmem:[%s8412_s0 + $0x150] sm:$0xff]  }
 0x2d9   :  { %2846 = vmatprep.mubr.bf16.mxu0 %v8422_v0 }
 0x2e0   :  { %2847 = vmatmul.mubr.bf16.gmra.mrb[64].mxu0 %v6305_v5  ;;  %v7564_v5 = vpop.f32.mrb[60].mxu1 }
 0x2e1   :  { %2856 = vmatprep.mubr.bf16.mxu0 %v8422_v0  ;;  %8460 = vst [vmem:[#allocation18_spill] sm:$0xff] %v7564_v5 }
 0x2e8   :  { %2857 = vmatmul.mubr.bf16.gmra.mrb[68].mxu0 %v6306_v27  ;;  %v7567_v27 = vpop.f32.mrb[61].mxu1 }
 0x2e9   :  { %2866 = vmatprep.mubr.bf16.mxu0 %v8422_v0  ;;  %8461 = vst [vmem:[#allocation19_spill] sm:$0xff] %v7567_v27  ;;  %v7569_v29 = vpop.f32.mrb[62].mxu1 }
 0x2ea   :  { %8462 = vst [vmem:[#allocation20_spill] sm:$0xff] %v7569_v29  ;;  %v7571_v23 = vpop.f32.mrb[63].mxu1  ;;  %v6309_v29 = vld [vmem:[%s8412_s0 + $0x160] sm:$0xff]  }
 0x2eb   :  { %8463 = vst [vmem:[#allocation21_spill] sm:$0xff] %v7571_v23  ;;  %v7576_v54 = vpop.f32.mrb[64].mxu1 }
 0x2ec   :  { %8464 = vst [vmem:[#allocation22_spill] sm:$0xff] %v7576_v54 }
 0x2f0   :  { %2867 = vmatmul.mubr.bf16.gmra.mrb[72].mxu0 %v6307_v58  ;;  %v7579_v58 = vpop.f32.mrb[65].mxu1 }
 0x2f1   :  { %2876 = vmatprep.mubr.bf16.mxu0 %v8422_v0  ;;  %8465 = vst [vmem:[#allocation23_spill] sm:$0xff] %v7579_v58  ;;  %v7581_v5 = vpop.f32.mrb[66].mxu1 }
 0x2f2   :  { %8466 = vst [vmem:[#allocation24_spill] sm:$0xff] %v7581_v5  ;;  %v7583_v34 = vpop.f32.mrb[67].mxu1  ;;  %v6310_v5 = vld [vmem:[%s8412_s0 + $0x168] sm:$0xff]  }
 0x2f3   :  { %8467 = vst [vmem:[#allocation25_spill] sm:$0xff] %v7583_v34  ;;  %v7588_v23 = vpop.f32.mrb[68].mxu1 }
 0x2f4   :  { %8468 = vst [vmem:[#allocation26_spill] sm:$0xff] %v7588_v23 }
 0x2f8   :  { %2877 = vmatmul.mubr.bf16.gmra.mrb[76].mxu0 %v6308_v39  ;;  %v7591_v39 = vpop.f32.mrb[69].mxu1 }
 0x2f9   :  { %2886 = vmatprep.mubr.bf16.mxu0 %v8422_v0  ;;  %8469 = vst [vmem:[#allocation27_spill] sm:$0xff] %v7591_v39  ;;  %v7593_v54 = vpop.f32.mrb[70].mxu1 }
 0x2fa   :  { %8470 = vst [vmem:[#allocation28_spill] sm:$0xff] %v7593_v54  ;;  %v7595_v27 = vpop.f32.mrb[71].mxu1  ;;  %v6311_v54 = vld [vmem:[%s8412_s0 + $0x170] sm:$0xff]  }
 0x2fb   :  { %8471 = vst [vmem:[#allocation29_spill] sm:$0xff] %v7595_v27  ;;  %v7600_v34 = vpop.f32.mrb[72].mxu1 }
 0x2fc   :  { %8472 = vst [vmem:[#allocation30_spill] sm:$0xff] %v7600_v34 }
 0x300   :  { %2887 = vmatmul.mubr.bf16.gmra.mrb[80].mxu0 %v6309_v29  ;;  %v7603_v29 = vpop.f32.mrb[73].mxu1 }
 0x301   :  { %2896 = vmatprep.mubr.bf16.mxu0 %v8422_v0  ;;  %8473 = vst [vmem:[#allocation31_spill] sm:$0xff] %v7603_v29  ;;  %v7605_v23 = vpop.f32.mrb[74].mxu1 }
 0x302   :  { %8474 = vst [vmem:[#allocation32_spill] sm:$0xff] %v7605_v23  ;;  %v7607_v58 = vpop.f32.mrb[75].mxu1  ;;  %v6312_v23 = vld [vmem:[%s8412_s0 + $0x178] sm:$0xff]  }
 0x303   :  { %8475 = vst [vmem:[#allocation33_spill] sm:$0xff] %v7607_v58  ;;  %v7612_v27 = vpop.f32.mrb[76].mxu1 }
 0x304   :  { %8476 = vst [vmem:[#allocation34_spill] sm:$0xff] %v7612_v27 }
 0x308   :  { %2897 = vmatmul.mubr.bf16.gmra.mrb[84].mxu0 %v6310_v5  ;;  %v7615_v5 = vpop.f32.mrb[77].mxu1 }
 0x309   :  { %2906 = vmatprep.mubr.bf16.mxu0 %v8422_v0  ;;  %8477 = vst [vmem:[#allocation35_spill] sm:$0xff] %v7615_v5  ;;  %v7617_v34 = vpop.f32.mrb[78].mxu1  ;;  %v6318_v5 = vld [vmem:[#allocation2 + $0x94] ss:$8 sps:$4 sm:$0xff]  }
 0x30a   :  { %8478 = vst [vmem:[#allocation36_spill] sm:$0xff] %v7617_v34  ;;  %v7619_v39 = vpop.f32.mrb[79].mxu1  ;;  %v6316_v34 = vld [vmem:[#allocation2 + $0x90] ss:$8 sps:$4 sm:$0xff]  }
 0x30b   :  { %8479 = vst [vmem:[#allocation37_spill] sm:$0xff] %v7619_v39  ;;  %v7624_v58 = vpop.f32.mrb[80].mxu1 }
 0x30c   :  { %8480 = vst [vmem:[#allocation38_spill] sm:$0xff] %v7624_v58  ;;  %v7626_v29 = vpop.f32.mrb[81].mxu1 }
 0x30d   :  { %8481 = vst [vmem:[#allocation39_spill] sm:$0xff] %v7626_v29  ;;  %v6319_v29 = vld [vmem:[#allocation2 + $0xa0] ss:$8 sps:$4 sm:$0xff]  }
 0x310   :  { %2907 = vmatmul.mubr.bf16.gmra.mrb[88].mxu0 %v6311_v54  ;;  %v7628_v54 = vpop.f32.mrb[82].mxu1 }
 0x311   :  { %2916 = vmatprep.mubr.bf16.mxu0 %v8422_v0  ;;  %8482 = vst [vmem:[#allocation40_spill] sm:$0xff] %v7628_v54  ;;  %v7630_v27 = vpop.f32.mrb[83].mxu1  ;;  %v6313_v0 = vld [vmem:[#allocation2 + $0x80] ss:$8 sps:$4 sm:$0xff]   ;;  %v6321_v54 = vld [vmem:[#allocation2 + $0xa4] ss:$8 sps:$4 sm:$0xff]  }
 0x312   :  { %8483 = vst [vmem:[#allocation41_spill] sm:$0xff] %v7630_v27  ;;  %3275 = vmatpush1.bf16.msra.mxu1 %v6313_v0  ;;  %v7632_v39 = vpop.f32.mrb[84].mxu1 }
 0x313   :  { %8484 = vst [vmem:[#allocation42_spill] sm:$0xff] %v7632_v39  ;;  %v7634_v12 = vpop.f32.mrb[85].mxu1  ;;  %3276 = vmatprep.subr.bf16.mxu1 %v6318_v5  ;;  %v6322_v39 = vld [vmem:[#allocation2 + $0xb0] ss:$8 sps:$4 sm:$0xff]  }
 0x314   :  { %8485 = vst [vmem:[#allocation43_spill] sm:$0xff] %v7634_v12  ;;  %v6324_v12 = vld [vmem:[#allocation2 + $0xb4] ss:$8 sps:$4 sm:$0xff]  }
 0x316   :  { %3277 = vmatpush1.bf16.msra.mxu1 %v6316_v34 }
 0x317   :  { %3278 = vmatprep.subr.bf16.mxu1 %v6321_v54 }
 0x318   :  { %2917 = vmatmul.mubr.bf16.gmra.mrb[92].mxu0 %v6312_v23  ;;  %v7636_v23 = vpop.f32.mrb[86].mxu1 }
 0x319   :  { %8486 = vst [vmem:[#allocation44_spill] sm:$0xff] %v7636_v23  ;;  %v7638_v58 = vpop.f32.mrb[87].mxu1 }
 0x31a   :  { %8487 = vst [vmem:[#allocation45_spill] sm:$0xff] %v7638_v58  ;;  %v7640_v8 = vpop.f32.mrb[88].mxu1  ;;  %3279 = vmatpush1.bf16.msra.mxu1 %v6319_v29 }
 0x31b   :  { %8488 = vst [vmem:[#allocation46_spill] sm:$0xff] %v7640_v8  ;;  %v7642_v27 = vpop.f32.mrb[89].mxu1  ;;  %3280 = vmatprep.subr.bf16.mxu1 %v6324_v12 }
 0x31c   :  { %8489 = vst [vmem:[#allocation47_spill] sm:$0xff] %v7642_v27  ;;  %v7644_v0 = vpop.f32.mrb[90].mxu1 }
 0x31d   :  { %8490 = vst [vmem:[#allocation48_spill] sm:$0xff] %v7644_v0  ;;  %v7646_v16 = vpop.f32.mrb[91].mxu1 }
 0x31e   :  { %8491 = vst [vmem:[#allocation49_spill] sm:$0xff] %v7646_v16  ;;  %v7648_v5 = vpop.f32.mrb[92].mxu1  ;;  %3281 = vmatpush1.bf16.msra.mxu1 %v6322_v39  ;;  %v7668_v39 = vld [vmem:[#allocation2 + $0xc0] ss:$8 sps:$4 sm:$0xff]  }
 0x31f   :  { %8492 = vst [vmem:[#allocation50_spill] sm:$0xff] %v7648_v5  ;;  %v7650_v34 = vpop.f32.mrb[93].mxu1  ;;  %8496 = vst [vmem:[#allocation54_spill] sm:$0xff] %v7668_v39 }
 0x320   :  { %8493 = vst [vmem:[#allocation51_spill] sm:$0xff] %v7650_v34  ;;  %v7652_v58 = vpop.f32.mrb[94].mxu1 }
 0x321   :  { %8494 = vst [vmem:[#allocation52_spill] sm:$0xff] %v7652_v58  ;;  %v7654_v8 = vpop.f32.mrb[95].mxu1  ;;  %v7670_v58 = vld [vmem:[#allocation2 + $0xc4] ss:$8 sps:$4 sm:$0xff]  }
 0x322   :  { %8495 = vst [vmem:[#allocation53_spill] sm:$0xff] %v7654_v8  ;;  %8497 = vst [vmem:[#allocation55_spill] sm:$0xff] %v7670_v58  ;;  %3282 = vmatprep.subr.bf16.mxu1 %v7670_v58  ;;  %v7686_v8 = vld [vmem:[#allocation2 + $0xd0] ss:$8 sps:$4 sm:$0xff]   ;;  %v7688_v58 = vld [vmem:[#allocation2 + $0xd4] ss:$8 sps:$4 sm:$0xff]  }
 0x323   :  { %3283 = vmatpush1.bf16.msra.mxu1 %v7668_v39  ;;  %8498 = vst [vmem:[#allocation56_spill] sm:$0xff] %v7686_v8  ;;  %8499 = vst [vmem:[#allocation57_spill] sm:$0xff] %v7688_v58  ;;  %v7704_v39 = vld [vmem:[#allocation2 + $0xe4] ss:$8 sps:$4 sm:$0xff]  }
 0x324   :  { %3284 = vmatprep.subr.bf16.mxu1 %v7688_v58  ;;  %8500 = vst [vmem:[#allocation58_spill] sm:$0xff] %v7704_v39  ;;  %v7706_v58 = vld [vmem:[#allocation2 + $0xe0] ss:$8 sps:$4 sm:$0xff]  }
 0x325   :  { %8501 = vst [vmem:[#allocation59_spill] sm:$0xff] %v7706_v58 }
 0x327   :  { %3285 = vmatpush1.bf16.msra.mxu1 %v7686_v8 }
 0x328   :  { %3286 = vmatprep.subr.bf16.mxu1 %v7704_v39 }
 0x32b   :  { %3287 = vmatpush1.bf16.msra.mxu1 %v7706_v58 }
 0x333   :  { %v2688_v23 = vpop.f32.mrb[0].mxu0 }
 0x334   :  { %v7657_v54 = vadd.f32 %v2688_v23, %v7384_v42  ;;  %v2690_v29 = vpop.f32.mrb[1].mxu0 }
 0x335   :  { %v7660_v0 = vadd.f32 %v2690_v29, %v7387_v62  ;;  %v2692_v16 = vpop.f32.mrb[2].mxu0 }
 0x336   :  { %v7663_v27 = vadd.f32 %v2692_v16, %v7389_v63  ;;  %v2694_v12 = vpop.f32.mrb[3].mxu0 }
 0x337   :  { %v7666_v34 = vadd.f32 %v2694_v12, %v7391_v1 }
 0x33b   :  { %v2698_v42 = vpop.f32.mrb[4].mxu0 }
 0x33c   :  { %v7675_v62 = vadd.f32 %v2698_v42, %v7396_v43  ;;  %v2700_v23 = vpop.f32.mrb[5].mxu0 }
 0x33d   :  { %v7678_v63 = vadd.f32 %v2700_v23, %v7399_v3  ;;  %v2702_v16 = vpop.f32.mrb[6].mxu0 }
 0x33e   :  { %v7681_v1 = vadd.f32 %v2702_v16, %v7401_v44  ;;  %v2704_v29 = vpop.f32.mrb[7].mxu0 }
 0x33f   :  { %v7684_v12 = vadd.f32 %v2704_v29, %v7403_v4 }
 0x343   :  { %v2708_v43 = vpop.f32.mrb[8].mxu0 }
 0x344   :  { %v7693_v3 = vadd.f32 %v2708_v43, %v7408_v45  ;;  %v2710_v42 = vpop.f32.mrb[9].mxu0 }
 0x345   :  { %v7696_v44 = vadd.f32 %v2710_v42, %v7411_v6  ;;  %v2712_v23 = vpop.f32.mrb[10].mxu0  ;;  %v7716_v42 = vld [vmem:[#allocation2 + $0xf4] ss:$8 sps:$4 sm:$0xff]  }
 0x346   :  { %v7699_v4 = vadd.f32 %v2712_v23, %v7413_v46  ;;  %v2714_v16 = vpop.f32.mrb[11].mxu0  ;;  %8502 = vst [vmem:[#allocation60_spill] sm:$0xff] %v7716_v42  ;;  %3288 = vmatprep.subr.bf16.mxu1 %v7716_v42 }
 0x347   :  { %v7702_v29 = vadd.f32 %v2714_v16, %v7415_v7  ;;  %v7721_v16 = vld [vmem:[#allocation2 + $0xf0] ss:$8 sps:$4 sm:$0xff]  }
 0x348   :  { %8503 = vst [vmem:[#allocation61_spill] sm:$0xff] %v7721_v16  ;;  %3289 = vmatpush1.bf16.msra.mxu1 %v7721_v16 }
 0x34b   :  { %v2718_v8 = vpop.f32.mrb[12].mxu0 }
 0x34c   :  { %v7710_v45 = vadd.f32 %v2718_v8, %v7420_v9  ;;  %v2720_v6 = vpop.f32.mrb[13].mxu0  ;;  %v7728_v9 = vld [vmem:[#allocation2 + $0x4] ss:$8 sps:$4 sm:$0xff]  }
 0x34d   :  { %v7714_v46 = vadd.f32 %v2720_v6, %v7423_v47  ;;  %v2722_v43 = vpop.f32.mrb[14].mxu0  ;;  %8504 = vst [vmem:[#allocation62_spill] sm:$0xff] %v7728_v9  ;;  %3427 = vmatprep.subr.bf16.mxu1 %v7728_v9 }
 0x34e   :  { %v7719_v7 = vadd.f32 %v2722_v43, %v7425_v10  ;;  %v2724_v23 = vpop.f32.mrb[15].mxu0 }
 0x34f   :  { %v7724_v39 = vadd.f32 %v2724_v23, %v7427_v11 }
 0x353   :  { %v2728_v47 = vpop.f32.mrb[16].mxu0 }
 0x354   :  { %v7732_v8 = vadd.f32 %v2728_v47, %v7432_v13  ;;  %v2730_v10 = vpop.f32.mrb[17].mxu0 }
 0x355   :  { %v7735_v6 = vadd.f32 %v2730_v10, %v7435_v48  ;;  %v2732_v43 = vpop.f32.mrb[18].mxu0 }
 0x356   :  { %v7738_v11 = vadd.f32 %v2732_v43, %v7437_v14  ;;  %v2734_v23 = vpop.f32.mrb[19].mxu0 }
 0x357   :  { %v7741_v42 = vadd.f32 %v2734_v23, %v7439_v15 }
 0x35b   :  { %v2738_v16 = vpop.f32.mrb[20].mxu0 }
 0x35c   :  { %v7744_v58 = vadd.f32 %v2738_v16, %v7444_v49  ;;  %v2740_v9 = vpop.f32.mrb[21].mxu0 }
 0x35d   :  { %v7747_v13 = vadd.f32 %v2740_v9, %v7446_v17  ;;  %v2742_v47 = vpop.f32.mrb[22].mxu0 }
 0x35e   :  { %v7750_v48 = vadd.f32 %v2742_v47, %v7448_v50  ;;  %v2744_v10 = vpop.f32.mrb[23].mxu0 }
 0x35f   :  { %v7753_v14 = vadd.f32 %v2744_v10, %v7450_v18  ;;  %v7764_v18 = vld [vmem:[%s8414_s2] ss:$0 sm:$0xff] }
 0x363   :  { %v2748_v43 = vpop.f32.mrb[24].mxu0 }
 0x364   :  { %v5593_v15 = vadd.f32 %v2748_v43, %v7452_v19  ;;  %v2750_v23 = vpop.f32.mrb[25].mxu0 }
 0x365   :  { %v5594_v5 = vadd.f32 %v2750_v23, %v7455_v20  ;;  %v2752_v49 = vpop.f32.mrb[26].mxu0 }
 0x366   :  { %v3024_v16 = vmax.f32 %v7657_v54, %v5593_v15  ;;  %v5595_v17 = vadd.f32 %v2752_v49, %v7457_v21  ;;  %v2754_v9 = vpop.f32.mrb[27].mxu0 }
 0x367   :  { %v3025_v2 = vmax.f32 %v7660_v0, %v5594_v5  ;;  %v5596_v50 = vadd.f32 %v2754_v9, %v7459_v22 }
 0x368   :  { %v3026_v19 = vmax.f32 %v7663_v27, %v5595_v17 }
 0x369   :  { %v3072_v47 = vmax.f32 %v3024_v16, %v3025_v2  ;;  %v3027_v20 = vmax.f32 %v7666_v34, %v5596_v50 }
 0x36b   :  { %v3090_v10 = vadd.f32 %v7764_v18, %v3072_v47  ;;  %v3073_v54 = vmax.f32 %v3026_v19, %v3027_v20  ;;  %v2758_v43 = vpop.f32.mrb[28].mxu0 }
 0x36c   :  { %v5597_v21 = vadd.f32 %v2758_v43, %v7464_v24  ;;  %v2760_v15 = vpop.f32.mrb[29].mxu0 }
 0x36d   :  { %v3091_v0 = vadd.f32 %v7764_v18, %v3073_v54  ;;  %v5598_v22 = vadd.f32 %v2760_v15, %v7466_v25  ;;  %v2762_v5 = vpop.f32.mrb[30].mxu0  ;;  %v3102_v2 = vmax.f32 %v3090_v10, 0.0 }
 0x36e   :  { %v3028_v23 = vmax.f32 %v7675_v62, %v5597_v21  ;;  %v5599_v49 = vadd.f32 %v2762_v5, %v7468_v26  ;;  %v2764_v27 = vpop.f32.mrb[31].mxu0 }
 0x36f   :  { %v3103_v16 = vmax.f32 %v3091_v0, 0.0  ;;  %v3029_v34 = vmax.f32 %v7678_v63, %v5598_v22  ;;  %v5600_v17 = vadd.f32 %v2764_v27, %v7475_v28 }
 0x370   :  { %v3030_v9 = vmax.f32 %v7681_v1, %v5599_v49 }
 0x371   :  { %v7777_v24 = vpack.c.bf16 %v3103_v16, %v3102_v2  ;;  %v3074_v50 = vmax.f32 %v3028_v23, %v3029_v34  ;;  %v3031_v19 = vmax.f32 %v7684_v12, %v5600_v17 }
 0x373   :  { %v3075_v25 = vmax.f32 %v3030_v9, %v3031_v19  ;;  %v2768_v47 = vpop.f32.mrb[32].mxu0  ;;  %v3092_v62 = vadd.f32 %v7764_v18, %v3074_v50 }
 0x374   :  { %v5601_v26 = vadd.f32 %v2768_v47, %v7480_v30  ;;  %v2770_v20 = vpop.f32.mrb[33].mxu0 }
 0x375   :  { %v5602_v10 = vadd.f32 %v2770_v20, %v7482_v31  ;;  %v2772_v54 = vpop.f32.mrb[34].mxu0  ;;  %v3093_v63 = vadd.f32 %v7764_v18, %v3075_v25  ;;  %v3104_v15 = vmax.f32 %v3092_v62, 0.0 }
 0x376   :  { %v3032_v28 = vmax.f32 %v7693_v3, %v5601_v26  ;;  %v5603_v1 = vadd.f32 %v2772_v54, %v7485_v32  ;;  %v2774_v43 = vpop.f32.mrb[35].mxu0 }
 0x377   :  { %v3033_v21 = vmax.f32 %v7696_v44, %v5602_v10  ;;  %v5604_v12 = vadd.f32 %v2774_v43, %v7487_v33  ;;  %v3105_v0 = vmax.f32 %v3093_v63, 0.0 }
 0x378   :  { %v3034_v22 = vmax.f32 %v7699_v4, %v5603_v1 }
 0x379   :  { %v3076_v30 = vmax.f32 %v3032_v28, %v3033_v21  ;;  %v3035_v5 = vmax.f32 %v7702_v29, %v5604_v12  ;;  %v7790_v31 = vpack.c.bf16 %v3105_v0, %v3104_v15 }
 0x37b   :  { %v3094_v23 = vadd.f32 %v7764_v18, %v3076_v30  ;;  %v3077_v49 = vmax.f32 %v3034_v22, %v3035_v5  ;;  %v2778_v3 = vpop.f32.mrb[36].mxu0 }
 0x37c   :  { %v5605_v32 = vadd.f32 %v2778_v3, %v7492_v35  ;;  %v2780_v27 = vpop.f32.mrb[37].mxu0 }
 0x37d   :  { %v3095_v44 = vadd.f32 %v7764_v18, %v3077_v49  ;;  %v5606_v33 = vadd.f32 %v2780_v27, %v7494_v36  ;;  %v2782_v2 = vpop.f32.mrb[38].mxu0  ;;  %v3106_v29 = vmax.f32 %v3094_v23, 0.0 }
 0x37e   :  { %v3036_v16 = vmax.f32 %v7710_v45, %v5605_v32  ;;  %v5607_v4 = vadd.f32 %v2782_v2, %v7497_v37  ;;  %v2784_v34 = vpop.f32.mrb[39].mxu0 }
 0x37f   :  { %v3107_v17 = vmax.f32 %v3095_v44, 0.0  ;;  %v3037_v9 = vmax.f32 %v7714_v46, %v5606_v33  ;;  %v5608_v50 = vadd.f32 %v2784_v34, %v7499_v38  ;;  %v8505_v34 = vld [vmem:[#allocation9_spill] sm:$0xff] }
 0x380   :  { %v3038_v19 = vmax.f32 %v7719_v7, %v5607_v4 }
 0x381   :  { %v7801_v35 = vpack.c.bf16 %v3107_v17, %v3106_v29  ;;  %v3078_v25 = vmax.f32 %v3036_v16, %v3037_v9  ;;  %v3039_v47 = vmax.f32 %v7724_v39, %v5608_v50 }
 0x383   :  { %v3096_v36 = vadd.f32 %v7764_v18, %v3078_v25  ;;  %v3079_v62 = vmax.f32 %v3038_v19, %v3039_v47  ;;  %v2788_v45 = vpop.f32.mrb[40].mxu0  ;;  %v8506_v19 = vld [vmem:[#allocation10_spill] sm:$0xff]  ;;  %v8507_v47 = vld [vmem:[#allocation11_spill] sm:$0xff] }
 0x384   :  { %v5609_v37 = vadd.f32 %v2788_v45, %v7504_v51  ;;  %v2790_v26 = vpop.f32.mrb[41].mxu0 }
 0x385   :  { %v3097_v20 = vadd.f32 %v7764_v18, %v3079_v62  ;;  %v5610_v46 = vadd.f32 %v2790_v26, %v7506_v52  ;;  %v2792_v10 = vpop.f32.mrb[42].mxu0  ;;  %v3108_v63 = vmax.f32 %v3096_v36, 0.0  ;;  %v8508_v62 = vld [vmem:[#allocation12_spill] sm:$0xff] }
 0x386   :  { %v3040_v38 = vmax.f32 %v7732_v8, %v5609_v37  ;;  %v5611_v7 = vadd.f32 %v2792_v10, %v7509_v53  ;;  %v2794_v54 = vpop.f32.mrb[43].mxu0  ;;  %v8509_v37 = vld [vmem:[#allocation13_spill] sm:$0xff] }
 0x387   :  { %v3109_v28 = vmax.f32 %v3097_v20, 0.0  ;;  %v3041_v39 = vmax.f32 %v7735_v6, %v5610_v46  ;;  %v5612_v1 = vadd.f32 %v2794_v54, %v7511_v40  ;;  %v8510_v46 = vld [vmem:[#allocation14_spill] sm:$0xff] }
 0x388   :  { %v3042_v43 = vmax.f32 %v7738_v11, %v5611_v7  ;;  %v8511_v7 = vld [vmem:[#allocation15_spill] sm:$0xff] }
 0x389   :  { %v7813_v51 = vpack.c.bf16 %v3109_v28, %v3108_v63  ;;  %v3080_v21 = vmax.f32 %v3040_v38, %v3041_v39  ;;  %v3043_v12 = vmax.f32 %v7741_v42, %v5612_v1  ;;  %v8512_v28 = vld [vmem:[#allocation16_spill] sm:$0xff] }
 0x38b   :  { %v3098_v52 = vadd.f32 %v7764_v18, %v3080_v21  ;;  %v3081_v15 = vmax.f32 %v3042_v43, %v3043_v12  ;;  %v2798_v8 = vpop.f32.mrb[44].mxu0  ;;  %v8513_v43 = vld [vmem:[#allocation17_spill] sm:$0xff] }
 0x38c   :  { %v5613_v53 = vadd.f32 %v2798_v8, %v7516_v55  ;;  %v2800_v0 = vpop.f32.mrb[45].mxu0 }
 0x38d   :  { %v3099_v22 = vadd.f32 %v7764_v18, %v3081_v15  ;;  %v5614_v6 = vadd.f32 %v2800_v0, %v7518_v56  ;;  %v2802_v30 = vpop.f32.mrb[46].mxu0  ;;  %v3110_v23 = vmax.f32 %v3098_v52, 0.0  ;;  %v8514_v52 = vld [vmem:[#allocation18_spill] sm:$0xff] }
 0x38e   :  { %v3044_v40 = vmax.f32 %v7744_v58, %v5613_v53  ;;  %v5615_v11 = vadd.f32 %v2802_v30, %v7521_v57  ;;  %v2804_v5 = vpop.f32.mrb[47].mxu0  ;;  %v8515_v53 = vld [vmem:[#allocation19_spill] sm:$0xff] }
 0x38f   :  { %v3111_v49 = vmax.f32 %v3099_v22, 0.0  ;;  %v3045_v42 = vmax.f32 %v7747_v13, %v5614_v6  ;;  %v5616_v3 = vadd.f32 %v2804_v5, %v7523_v41  ;;  %v8516_v6 = vld [vmem:[#allocation20_spill] sm:$0xff] }
 0x390   :  { %v3046_v32 = vmax.f32 %v7750_v48, %v5615_v11  ;;  %v8517_v11 = vld [vmem:[#allocation21_spill] sm:$0xff] }
 0x391   :  { %v3082_v55 = vmax.f32 %v3044_v40, %v3045_v42  ;;  %v3047_v27 = vmax.f32 %v7753_v14, %v5616_v3  ;;  %v7826_v44 = vpack.c.bf16 %v3111_v49, %v3110_v23  ;;  %v8518_v49 = vld [vmem:[#allocation22_spill] sm:$0xff] }
 0x393   :  { %v3083_v56 = vmax.f32 %v3046_v32, %v3047_v27  ;;  %v2808_v33 = vpop.f32.mrb[48].mxu0  ;;  %v3100_v58 = vadd.f32 %v7764_v18, %v3082_v55  ;;  %v8519_v32 = vld [vmem:[#allocation23_spill] sm:$0xff] }
 0x394   :  { %v7830_v57 = vadd.f32 %v2808_v33, %v7528_v59  ;;  %v2810_v2 = vpop.f32.mrb[49].mxu0 }
 0x395   :  { %v5618_v16 = vadd.f32 %v2810_v2, %v7530_v60  ;;  %v2812_v13 = vpop.f32.mrb[50].mxu0  ;;  %v3101_v41 = vadd.f32 %v7764_v18, %v3083_v56  ;;  %v3112_v29 = vmax.f32 %v3100_v58, 0.0  ;;  %v8520_v56 = vld [vmem:[#allocation24_spill] sm:$0xff]  ;;  %v8521_v2 = vld [vmem:[#allocation25_spill] sm:$0xff] }
 0x396   :  { %v5619_v48 = vadd.f32 %v2812_v13, %v7533_v61  ;;  %v2814_v4 = vpop.f32.mrb[51].mxu0 }
 0x397   :  { %v5620_v14 = vadd.f32 %v2814_v4, %v8505_v34  ;;  %v3113_v17 = vmax.f32 %v3101_v41, 0.0  ;;  %v8522_v4 = vld [vmem:[#allocation26_spill] sm:$0xff] }
 0x399   :  { %v7836_v9 = vpack.c.bf16 %v3113_v17, %v3112_v29  ;;  %v8523_v17 = vld [vmem:[#allocation27_spill] sm:$0xff] }
 0x39b   :  { %v2818_v50 = vpop.f32.mrb[52].mxu0 }
 0x39c   :  { %v7839_v25 = vadd.f32 %v2818_v50, %v8506_v19  ;;  %v2820_v59 = vpop.f32.mrb[53].mxu0 }
 0x39d   :  { %v7842_v36 = vadd.f32 %v2820_v59, %v8507_v47  ;;  %v2822_v60 = vpop.f32.mrb[54].mxu0  ;;  %v8524_v59 = vld [vmem:[#allocation28_spill] sm:$0xff] }
 0x39e   :  { %v7845_v45 = vadd.f32 %v2822_v60, %v8508_v62  ;;  %v2824_v61 = vpop.f32.mrb[55].mxu0  ;;  %v8525_v62 = vld [vmem:[#allocation29_spill] sm:$0xff] }
 0x39f   :  { %v7848_v26 = vadd.f32 %v2824_v61, %v8509_v37 }
 0x3a3   :  { %v2828_v20 = vpop.f32.mrb[56].mxu0 }
 0x3a4   :  { %v7851_v10 = vadd.f32 %v2828_v20, %v8510_v46  ;;  %v2830_v38 = vpop.f32.mrb[57].mxu0  ;;  %v8526_v20 = vld [vmem:[#allocation30_spill] sm:$0xff] }
 0x3a5   :  { %v7854_v54 = vadd.f32 %v2830_v38, %v8511_v7  ;;  %v2832_v63 = vpop.f32.mrb[58].mxu0  ;;  %v8527_v7 = vld [vmem:[#allocation31_spill] sm:$0xff] }
 0x3a6   :  { %v7857_v39 = vadd.f32 %v2832_v63, %v8512_v28  ;;  %v2834_v1 = vpop.f32.mrb[59].mxu0 }
 0x3a7   :  { %v7860_v21 = vadd.f32 %v2834_v1, %v8513_v43  ;;  %v8528_v43 = vld [vmem:[#allocation32_spill] sm:$0xff] }
 0x3ab   :  { %v2838_v12 = vpop.f32.mrb[60].mxu0 }
 0x3ac   :  { %v7863_v15 = vadd.f32 %v2838_v12, %v8514_v52  ;;  %v2840_v8 = vpop.f32.mrb[61].mxu0 }
 0x3ad   :  { %v7866_v0 = vadd.f32 %v2840_v8, %v8515_v53  ;;  %v2842_v22 = vpop.f32.mrb[62].mxu0  ;;  %v8529_v53 = vld [vmem:[#allocation33_spill] sm:$0xff] }
 0x3ae   :  { %v7869_v30 = vadd.f32 %v2842_v22, %v8516_v6  ;;  %v2844_v40 = vpop.f32.mrb[63].mxu0 }
 0x3af   :  { %v7872_v5 = vadd.f32 %v2844_v40, %v8517_v11 }
 0x3b3   :  { %v2848_v23 = vpop.f32.mrb[64].mxu0 }
 0x3b4   :  { %v7875_v42 = vadd.f32 %v2848_v23, %v8518_v49  ;;  %v2850_v3 = vpop.f32.mrb[65].mxu0 }
 0x3b5   :  { %v7878_v55 = vadd.f32 %v2850_v3, %v8519_v32  ;;  %v2852_v27 = vpop.f32.mrb[66].mxu0  ;;  %v8530_v32 = vld [vmem:[#allocation34_spill] sm:$0xff] }
 0x3b6   :  { %v7881_v33 = vadd.f32 %v2852_v27, %v8520_v56  ;;  %v2854_v58 = vpop.f32.mrb[67].mxu0 }
 0x3b7   :  { %v7884_v13 = vadd.f32 %v2854_v58, %v8521_v2  ;;  %v8531_v2 = vld [vmem:[#allocation35_spill] sm:$0xff] }
 0x3bb   :  { %v2858_v41 = vpop.f32.mrb[68].mxu0 }
 0x3bc   :  { %v7887_v34 = vadd.f32 %v2858_v41, %v8522_v4  ;;  %v2860_v29 = vpop.f32.mrb[69].mxu0 }
 0x3bd   :  { %v7890_v50 = vadd.f32 %v2860_v29, %v8523_v17  ;;  %v2862_v19 = vpop.f32.mrb[70].mxu0 }
 0x3be   :  { %v7893_v47 = vadd.f32 %v2862_v19, %v8524_v59  ;;  %v2864_v60 = vpop.f32.mrb[71].mxu0  ;;  %v8533_v59 = vld [vmem:[#allocation37_spill] sm:$0xff] }
 0x3bf   :  { %v7896_v61 = vadd.f32 %v2864_v60, %v8525_v62 }
 0x3c3   :  { %v2868_v37 = vpop.f32.mrb[72].mxu0 }
 0x3c4   :  { %v5641_v46 = vadd.f32 %v2868_v37, %v8526_v20  ;;  %v2870_v38 = vpop.f32.mrb[73].mxu0  ;;  %v7912_v37 = vld [vmem:[#allocation2] ss:$8 sps:$4 sm:$0xff]  }
 0x3c5   :  { %v5642_v63 = vadd.f32 %v2870_v38, %v8527_v7  ;;  %v2872_v28 = vpop.f32.mrb[74].mxu0  ;;  %v7917_v7 = vld [vmem:[#allocation2 + $0x14] ss:$8 sps:$4 sm:$0xff]  }
 0x3c6   :  { %v3048_v1 = vmax.f32 %v7830_v57, %v5641_v46  ;;  %v5643_v12 = vadd.f32 %v2872_v28, %v8528_v43  ;;  %v2874_v52 = vpop.f32.mrb[75].mxu0 }
 0x3c7   :  { %v3049_v8 = vmax.f32 %v5618_v16, %v5642_v63  ;;  %v5644_v22 = vadd.f32 %v2874_v52, %v8529_v53  ;;  %v8532_v16 = vld [vmem:[#allocation36_spill] sm:$0xff] }
 0x3c8   :  { %v3050_v6 = vmax.f32 %v5619_v48, %v5643_v12  ;;  %v8535_v12 = vmov 0  }
 0x3c9   :  { %v3114_v40 = vmax.f32 %v3048_v1, %v3049_v8  ;;  %v3051_v11 = vmax.f32 %v5620_v14, %v5644_v22  ;;  %v7929_v22 = vld [vmem:[#allocation2 + $0x24] ss:$8 sps:$4 sm:$0xff]  }
 0x3cb   :  { %v3126_v23 = vadd.f32 %v7764_v18, %v3114_v40  ;;  %v3115_v49 = vmax.f32 %v3050_v6, %v3051_v11  ;;  %v2878_v3 = vpop.f32.mrb[76].mxu0  ;;  %v8537_v40 = vld [vmem:[#allocation40_spill] sm:$0xff] }
 0x3cc   :  { %v5645_v27 = vadd.f32 %v2878_v3, %v8530_v32  ;;  %v2880_v56 = vpop.f32.mrb[77].mxu0 }
 0x3cd   :  { %v3127_v58 = vadd.f32 %v7764_v18, %v3115_v49  ;;  %v5646_v57 = vadd.f32 %v2880_v56, %v8531_v2  ;;  %v2882_v41 = vpop.f32.mrb[78].mxu0  ;;  %v3138_v48 = vmax.f32 %v3126_v23, 0.0  ;;  %v7937_v2 = vld [vmem:[#allocation2 + $0x20] ss:$8 sps:$4 sm:$0xff]  }
 0x3ce   :  { %v3052_v4 = vmax.f32 %v7839_v25, %v5645_v27  ;;  %v5647_v29 = vadd.f32 %v2882_v41, %v8532_v16  ;;  %v2884_v17 = vpop.f32.mrb[79].mxu0  ;;  %v8538_v27 = vld [vmem:[#allocation41_spill] sm:$0xff] }
 0x3cf   :  { %v3139_v19 = vmax.f32 %v3127_v58, 0.0  ;;  %v3053_v14 = vmax.f32 %v7842_v36, %v5646_v57  ;;  %v5648_v60 = vadd.f32 %v2884_v17, %v8533_v59  ;;  %v8534_v36 = vld [vmem:[#allocation38_spill] sm:$0xff] }
 0x3d0   :  { %v3054_v62 = vmax.f32 %v7845_v45, %v5647_v29  ;;  %v7923_v45 = vld [vmem:[#allocation2 + $0x10] ss:$8 sps:$4 sm:$0xff]  }
 0x3d1   :  { %v7914_v20 = vpack.c.bf16 %v3139_v19, %v3138_v48  ;;  %v3116_v46 = vmax.f32 %v3052_v4, %v3053_v14  ;;  %v3055_v38 = vmax.f32 %v7848_v26, %v5648_v60  ;;  %v8536_v26 = vld [vmem:[#allocation39_spill] sm:$0xff] }
 0x3d2   :  { %v7949_v19 = vld [vmem:[#allocation2 + $0x30] ss:$8 sps:$4 sm:$0xff]  }
 0x3d3   :  { %v3128_v25 = vadd.f32 %v7764_v18, %v3116_v46  ;;  %v3117_v63 = vmax.f32 %v3054_v62, %v3055_v38  ;;  %v2888_v28 = vpop.f32.mrb[80].mxu0  ;;  %3307 = vmatmul.mubr.bf16.vlgmr.msra.gmra.mrb[96].mxu1 %v7914_v20  ;;  %v8540_v14 = vld [vmem:[#allocation43_spill] sm:$0xff]  ;;  %v7955_v62 = vld [vmem:[#allocation2 + $0x44] ss:$8 sps:$4 sm:$0xff]   ;;  %v8541_v38 = vld [vmem:[#allocation44_spill] sm:$0xff] }
 0x3d4   :  { %v5649_v1 = vadd.f32 %v2888_v28, %v8534_v36  ;;  %v2890_v43 = vpop.f32.mrb[81].mxu0  ;;  %3428 = vmatpush1.bf16.msra.mxu1 %v7912_v37  ;;  %3316 = vmatprep.mubr.bf16.mxu1 %v8535_v12 }
 0x3d5   :  { %v3129_v52 = vadd.f32 %v7764_v18, %v3117_v63  ;;  %v5650_v8 = vadd.f32 %v2890_v43, %v8536_v26  ;;  %v2892_v53 = vpop.f32.mrb[82].mxu0  ;;  %3429 = vmatprep.subr.bf16.mxu1 %v7917_v7  ;;  %v3140_v49 = vmax.f32 %v3128_v25, 0.0  ;;  %v8542_v43 = vld [vmem:[#allocation45_spill] sm:$0xff] }
 0x3d6   :  { %v3056_v6 = vmax.f32 %v7851_v10, %v5649_v1  ;;  %v5651_v11 = vadd.f32 %v2892_v53, %v8537_v40  ;;  %v2894_v23 = vpop.f32.mrb[83].mxu0  ;;  %v7943_v10 = vld [vmem:[#allocation2 + $0x34] ss:$8 sps:$4 sm:$0xff]  }
 0x3d7   :  { %v3141_v3 = vmax.f32 %v3129_v52, 0.0  ;;  %v3057_v32 = vmax.f32 %v7854_v54, %v5650_v8  ;;  %v5652_v56 = vadd.f32 %v2894_v23, %v8538_v27  ;;  %v7963_v8 = vld [vmem:[#allocation2 + $0x40] ss:$8 sps:$4 sm:$0xff]   ;;  %v7969_v40 = vld [vmem:[#allocation2 + $0x54] ss:$8 sps:$4 sm:$0xff]  }
 0x3d8   :  { %v3058_v58 = vmax.f32 %v7857_v39, %v5651_v11  ;;  %3430 = vmatpush1.bf16.msra.mxu1 %v7923_v45  ;;  %v8539_v39 = vld [vmem:[#allocation42_spill] sm:$0xff]  ;;  %v8544_v27 = vld [vmem:[#allocation47_spill] sm:$0xff] }
 0x3d9   :  { %v3118_v57 = vmax.f32 %v3056_v6, %v3057_v32  ;;  %v3059_v41 = vmax.f32 %v7860_v21, %v5652_v56  ;;  %v7940_v4 = vpack.c.bf16 %v3141_v3, %v3140_v49  ;;  %3431 = vmatprep.subr.bf16.mxu1 %v7929_v22  ;;  %v7975_v32 = vld [vmem:[#allocation2 + $0x50] ss:$8 sps:$4 sm:$0xff]  }
 0x3db   :  { %v3130_v16 = vadd.f32 %v7764_v18, %v3118_v57  ;;  %v3119_v54 = vmax.f32 %v3058_v58, %v3059_v41  ;;  %v2898_v29 = vpop.f32.mrb[84].mxu0  ;;  %3317 = vmatmul.mubr.bf16.gmra.mrb[100].mxu1 %v7940_v4  ;;  %v7981_v57 = vld [vmem:[#allocation2 + $0x64] ss:$8 sps:$4 sm:$0xff]  }
 0x3dc   :  { %v5653_v17 = vadd.f32 %v2898_v29, %v8539_v39  ;;  %v2900_v48 = vpop.f32.mrb[85].mxu0  ;;  %3432 = vmatpush1.bf16.msra.mxu1 %v7937_v2  ;;  %3326 = vmatprep.mubr.bf16.mxu1 %v8535_v12 }
 0x3dd   :  { %v3131_v21 = vadd.f32 %v7764_v18, %v3119_v54  ;;  %v5654_v59 = vadd.f32 %v2900_v48, %v8540_v14  ;;  %v2902_v60 = vpop.f32.mrb[86].mxu0  ;;  %3433 = vmatprep.subr.bf16.mxu1 %v7943_v10  ;;  %v3142_v28 = vmax.f32 %v3130_v16, 0.0  ;;  %v8545_v16 = vld [vmem:[#allocation48_spill] sm:$0xff] }
 0x3de   :  { %v3060_v46 = vmax.f32 %v7863_v15, %v5653_v17  ;;  %v5655_v25 = vadd.f32 %v2902_v60, %v8541_v38  ;;  %v2904_v63 = vpop.f32.mrb[87].mxu0  ;;  %v7989_v60 = vld [vmem:[#allocation2 + $0x60] ss:$8 sps:$4 sm:$0xff]  }
 0x3df   :  { %v3143_v36 = vmax.f32 %v3131_v21, 0.0  ;;  %v3061_v1 = vmax.f32 %v7866_v0, %v5654_v59  ;;  %v5656_v52 = vadd.f32 %v2904_v63, %v8542_v43  ;;  %v8546_v21 = vld [vmem:[#allocation49_spill] sm:$0xff]  ;;  %v8001_v43 = vld [vmem:[#allocation2 + $0x70] ss:$8 sps:$4 sm:$0xff]  }
 0x3e0   :  { %v3062_v26 = vmax.f32 %v7869_v30, %v5655_v25  ;;  %3434 = vmatpush1.bf16.msra.mxu1 %v7949_v19  ;;  %v8543_v30 = vld [vmem:[#allocation46_spill] sm:$0xff]  ;;  %v7995_v25 = vld [vmem:[#allocation2 + $0x74] ss:$8 sps:$4 sm:$0xff]  }
 0x3e1   :  { %v7965_v53 = vpack.c.bf16 %v3143_v36, %v3142_v28  ;;  %v3120_v6 = vmax.f32 %v3060_v46, %v3061_v1  ;;  %v3063_v15 = vmax.f32 %v7872_v5, %v5656_v52  ;;  %3435 = vmatprep.subr.bf16.mxu1 %v7955_v62 }
 0x3e3   :  { %v3132_v11 = vadd.f32 %v7764_v18, %v3120_v6  ;;  %v3121_v0 = vmax.f32 %v3062_v26, %v3063_v15  ;;  %v2908_v23 = vpop.f32.mrb[88].mxu0  ;;  %3327 = vmatmul.mubr.bf16.gmra.mrb[104].mxu1 %v7965_v53  ;;  %v8006_v6 = vld [vmem:[#allocation2 + $0x104] ss:$8 sps:$4 sm:$0xff]  }
 0x3e4   :  { %v5657_v49 = vadd.f32 %v2908_v23, %v8543_v30  ;;  %v2910_v3 = vpop.f32.mrb[89].mxu0  ;;  %3436 = vmatpush1.bf16.msra.mxu1 %v7963_v8  ;;  %3336 = vmatprep.mubr.bf16.mxu1 %v8535_v12 }
 0x3e5   :  { %v3133_v5 = vadd.f32 %v7764_v18, %v3121_v0  ;;  %v5658_v56 = vadd.f32 %v2910_v3, %v8544_v27  ;;  %v2912_v58 = vpop.f32.mrb[90].mxu0  ;;  %3437 = vmatprep.subr.bf16.mxu1 %v7969_v40  ;;  %v3144_v39 = vmax.f32 %v3132_v11, 0.0  ;;  %v8549_v0 = vld [vmem:[#allocation52_spill] sm:$0xff]  ;;  %v8550_v3 = vld [vmem:[#allocation53_spill] sm:$0xff] }
 0x3e6   :  { %v3064_v41 = vmax.f32 %v7875_v42, %v5657_v49  ;;  %v5659_v54 = vadd.f32 %v2912_v58, %v8545_v16  ;;  %v2914_v29 = vpop.f32.mrb[91].mxu0 }
 0x3e7   :  { %v3145_v17 = vmax.f32 %v3133_v5, 0.0  ;;  %v3065_v48 = vmax.f32 %v7878_v55, %v5658_v56  ;;  %v5660_v14 = vadd.f32 %v2914_v29, %v8546_v21 }
 0x3e8   :  { %v3066_v59 = vmax.f32 %v7881_v33, %v5659_v54  ;;  %3438 = vmatpush1.bf16.msra.mxu1 %v7975_v32  ;;  %v8547_v33 = vld [vmem:[#allocation50_spill] sm:$0xff] }
 0x3e9   :  { %v7991_v46 = vpack.c.bf16 %v3145_v17, %v3144_v39  ;;  %v3122_v38 = vmax.f32 %v3064_v41, %v3065_v48  ;;  %v3067_v42 = vmax.f32 %v7884_v13, %v5660_v14  ;;  %3439 = vmatprep.subr.bf16.mxu1 %v7981_v57  ;;  %v8548_v13 = vld [vmem:[#allocation51_spill] sm:$0xff]  ;;  %v8015_v41 = vld [vmem:[#allocation2 + $0x100] ss:$8 sps:$4 sm:$0xff]  }
 0x3ea   :  { %v8034_v14 = vld [vmem:[#allocation2 + $0x120] ss:$8 sps:$4 sm:$0xff]  }
 0x3eb   :  { %v3123_v63 = vmax.f32 %v3066_v59, %v3067_v42  ;;  %v2918_v28 = vpop.f32.mrb[92].mxu0  ;;  %3337 = vmatmul.mubr.bf16.gmra.mrb[108].mxu1 %v7991_v46  ;;  %v3134_v55 = vadd.f32 %v7764_v18, %v3122_v38  ;;  %v8043_v38 = vld [vmem:[#allocation2 + $0x130] ss:$8 sps:$4 sm:$0xff]   ;;  %v8050_v42 = vld [vmem:[#allocation2 + $0x140] ss:$8 sps:$4 sm:$0xff]  }
 0x3ec   :  { %v5661_v36 = vadd.f32 %v2918_v28, %v8547_v33  ;;  %v2920_v1 = vpop.f32.mrb[93].mxu0  ;;  %3440 = vmatpush1.bf16.msra.mxu1 %v7989_v60  ;;  %3459 = vmatprep.mubr.bf16.mxu1 %v8535_v12  ;;  %v8057_v28 = vld [vmem:[#allocation2 + $0x150] ss:$8 sps:$4 sm:$0xff]   ;;  %v8064_v33 = vld [vmem:[#allocation2 + $0x160] ss:$8 sps:$4 sm:$0xff]  }
 0x3ed   :  { %v5662_v52 = vadd.f32 %v2920_v1, %v8548_v13  ;;  %v2922_v26 = vpop.f32.mrb[94].mxu0  ;;  %3441 = vmatprep.subr.bf16.mxu1 %v7995_v25  ;;  %v3135_v15 = vadd.f32 %v7764_v18, %v3123_v63  ;;  %v3146_v27 = vmax.f32 %v3134_v55, 0.0  ;;  %v8053_v63 = vld [vmem:[#allocation2 + $0x154] ss:$8 sps:$4 sm:$0xff]   ;;  %v8061_v55 = vld [vmem:[#allocation2 + $0x164] ss:$8 sps:$4 sm:$0xff]  }
 0x3ee   :  { %v3068_v11 = vmax.f32 %v7887_v34, %v5661_v36  ;;  %v5663_v23 = vadd.f32 %v2922_v26, %v8549_v0  ;;  %v2924_v30 = vpop.f32.mrb[95].mxu0  ;;  %v8019_v34 = vld [vmem:[#allocation2 + $0x114] ss:$8 sps:$4 sm:$0xff]   ;;  %v8071_v1 = vld [vmem:[#allocation2 + $0x170] ss:$8 sps:$4 sm:$0xff]  }
 0x3ef   :  { %v3069_v49 = vmax.f32 %v7890_v50, %v5662_v52  ;;  %v5664_v5 = vadd.f32 %v2924_v30, %v8550_v3  ;;  %v3147_v56 = vmax.f32 %v3135_v15, 0.0  ;;  %v8067_v36 = vld [vmem:[#allocation2 + $0x174] ss:$8 sps:$4 sm:$0xff]   ;;  %v8075_v13 = vld [vmem:[#allocation2 + $0x184] ss:$8 sps:$4 sm:$0xff]  }
 0x3f0   :  { %v3070_v58 = vmax.f32 %v7893_v47, %v5663_v23  ;;  %3442 = vmatpush1.bf16.msra.mxu1 %v8001_v43  ;;  %v8026_v47 = vld [vmem:[#allocation2 + $0x110] ss:$8 sps:$4 sm:$0xff]   ;;  %v8078_v52 = vld [vmem:[#allocation2 + $0x180] ss:$8 sps:$4 sm:$0xff]   ;;  %v8081_v26 = vld [vmem:[#allocation2 + $0x194] ss:$8 sps:$4 sm:$0xff]  }
 0x3f1   :  { %v3124_v16 = vmax.f32 %v3068_v11, %v3069_v49  ;;  %v3071_v54 = vmax.f32 %v7896_v61, %v5664_v5  ;;  %3596 = vmatprep.subr.bf16.mxu1 %v8006_v6  ;;  %v8021_v29 = vpack.c.bf16 %v3147_v56, %v3146_v27  ;;  %v8030_v61 = vld [vmem:[#allocation2 + $0x124] ss:$8 sps:$4 sm:$0xff]   ;;  %v8085_v15 = vld [vmem:[#allocation2 + $0x190] ss:$8 sps:$4 sm:$0xff]   ;;  %v8092_v0 = vld [vmem:[#allocation2 + $0x1a0] ss:$8 sps:$4 sm:$0xff]  }
 0x3f2   :  { %v8089_v11 = vld [vmem:[#allocation2 + $0x1a4] ss:$8 sps:$4 sm:$0xff]   ;;  %v8095_v23 = vld [vmem:[#allocation2 + $0x1b4] ss:$8 sps:$4 sm:$0xff]   ;;  %v8099_v30 = vld [vmem:[#allocation2 + $0x1b0] ss:$8 sps:$4 sm:$0xff]  }
 0x3f3   :  { %v3125_v50 = vmax.f32 %v3070_v58, %v3071_v54  ;;  %3460 = vmatmul.mubr.bf16.vlgmr.msra.gmra.mrb[96].mxu1 %v7777_v24  ;;  %v3136_v39 = vadd.f32 %v7764_v18, %v3124_v16  ;;  %v8037_v24 = vld [vmem:[#allocation2 + $0x134] ss:$8 sps:$4 sm:$0xff]   ;;  %v8103_v49 = vld [vmem:[#allocation2 + $0x1c4] ss:$8 sps:$4 sm:$0xff]   ;;  %v8106_v3 = vld [vmem:[#allocation2 + $0x1c0] ss:$8 sps:$4 sm:$0xff]  }
 0x3f4   :  { %3597 = vmatpush1.bf16.msra.mxu1 %v8015_v41  ;;  %3469 = vmatprep.mubr.bf16.mxu1 %v8535_v12  ;;  %v8109_v5 = vld [vmem:[#allocation2 + $0x1d4] ss:$8 sps:$4 sm:$0xff]   ;;  %v8113_v27 = vld [vmem:[#allocation2 + $0x1d0] ss:$8 sps:$4 sm:$0xff]   ;;  %v8117_v56 = vld [vmem:[#allocation2 + $0x1e4] ss:$8 sps:$4 sm:$0xff]  }
 0x3f5   :  { %3598 = vmatprep.subr.bf16.mxu1 %v8019_v34  ;;  %v3137_v17 = vadd.f32 %v7764_v18, %v3125_v50  ;;  %v3148_v48 = vmax.f32 %v3136_v39, 0.0  ;;  %v8047_v18 = vld [vmem:[#allocation2 + $0x144] ss:$8 sps:$4 sm:$0xff]   ;;  %v8120_v58 = vld [vmem:[#allocation2 + $0x1e0] ss:$8 sps:$4 sm:$0xff]  }
 0x3f6   :  { %v8123_v16 = vld [vmem:[#allocation2 + $0x1f4] ss:$8 sps:$4 sm:$0xff]   ;;  %v8127_v54 = vld [vmem:[#allocation2 + $0x1f0] ss:$8 sps:$4 sm:$0xff]   ;;  %v8131_v50 = vld [vmem:[#allocation2 + $0x204] ss:$8 sps:$4 sm:$0xff]  }
 0x3f7   :  { %v3149_v21 = vmax.f32 %v3137_v17, 0.0  ;;  %8552 = vst [vmem:[#allocation10_spill] sm:$0xff] %v8123_v16  ;;  %8553 = vst [vmem:[#allocation11_spill] sm:$0xff] %v8127_v54  ;;  %v8134_v39 = vld [vmem:[#allocation2 + $0x200] ss:$8 sps:$4 sm:$0xff]  }
 0x3f8   :  { %3599 = vmatpush1.bf16.msra.mxu1 %v8026_v47  ;;  %8554 = vst [vmem:[#allocation12_spill] sm:$0xff] %v8131_v50  ;;  %8555 = vst [vmem:[#allocation13_spill] sm:$0xff] %v8134_v39  ;;  %v8137_v17 = vld [vmem:[#allocation2 + $0x214] ss:$8 sps:$4 sm:$0xff]  }
 0x3f9   :  { %3600 = vmatprep.subr.bf16.mxu1 %v8030_v61  ;;  %v8039_v59 = vpack.c.bf16 %v3149_v21, %v3148_v48  ;;  %8556 = vst [vmem:[#allocation14_spill] sm:$0xff] %v8137_v17  ;;  %v8141_v48 = vld [vmem:[#allocation2 + $0x210] ss:$8 sps:$4 sm:$0xff]   ;;  %v8145_v21 = vld [vmem:[#allocation2 + $0x224] ss:$8 sps:$4 sm:$0xff]  }
 0x3fa   :  { %8557 = vst [vmem:[#allocation15_spill] sm:$0xff] %v8141_v48  ;;  %8558 = vst [vmem:[#allocation16_spill] sm:$0xff] %v8145_v21 }
 0x3fb   :  { %8551 = vst [vmem:[#allocation9_spill] sm:$0xff] %v8039_v59  ;;  %3470 = vmatmul.mubr.bf16.gmra.mrb[100].mxu1 %v7790_v31  ;;  %v8148_v59 = vld [vmem:[#allocation2 + $0x220] ss:$8 sps:$4 sm:$0xff]  }
 0x3fc   :  { %3601 = vmatpush1.bf16.msra.mxu1 %v8034_v14  ;;  %3479 = vmatprep.mubr.bf16.mxu1 %v8535_v12  ;;  %8559 = vst [vmem:[#allocation17_spill] sm:$0xff] %v8148_v59 }
 0x3fd   :  { %3602 = vmatprep.subr.bf16.mxu1 %v8037_v24 }
 0x400   :  { %3603 = vmatpush1.bf16.msra.mxu1 %v8043_v38 }
 0x401   :  { %3604 = vmatprep.subr.bf16.mxu1 %v8047_v18 }
 0x403   :  { %3480 = vmatmul.mubr.bf16.gmra.mrb[104].mxu1 %v7801_v35 }
 0x404   :  { %3605 = vmatpush1.bf16.msra.mxu1 %v8050_v42  ;;  %3489 = vmatprep.mubr.bf16.mxu1 %v8535_v12 }
 0x405   :  { %3606 = vmatprep.subr.bf16.mxu1 %v8053_v63 }
 0x408   :  { %3607 = vmatpush1.bf16.msra.mxu1 %v8057_v28 }
 0x409   :  { %3608 = vmatprep.subr.bf16.mxu1 %v8061_v55 }
 0x40b   :  { %3490 = vmatmul.mubr.bf16.gmra.mrb[108].mxu1 %v7813_v51 }
 0x40c   :  { %3609 = vmatpush1.bf16.msra.mxu1 %v8064_v33  ;;  %3628 = vmatprep.mubr.bf16.mxu1 %v8535_v12 }
 0x40d   :  { %3610 = vmatprep.subr.bf16.mxu1 %v8067_v36 }
 0x410   :  { %3611 = vmatpush1.bf16.msra.mxu1 %v8071_v1 }
 0x411   :  { %3781 = vmatprep.subr.bf16.mxu1 %v8075_v13 }
 0x413   :  { %3629 = vmatmul.mubr.bf16.vlgmr.msra.gmra.mrb[96].mxu1 %v7790_v31 }
 0x414   :  { %3782 = vmatpush1.bf16.msra.mxu1 %v8078_v52  ;;  %3638 = vmatprep.mubr.bf16.mxu1 %v8535_v12 }
 0x415   :  { %3783 = vmatprep.subr.bf16.mxu1 %v8081_v26 }
 0x418   :  { %3784 = vmatpush1.bf16.msra.mxu1 %v8085_v15 }
 0x419   :  { %3785 = vmatprep.subr.bf16.mxu1 %v8089_v11 }
 0x41b   :  { %3639 = vmatmul.mubr.bf16.gmra.mrb[100].mxu1 %v7801_v35 }
 0x41c   :  { %3786 = vmatpush1.bf16.msra.mxu1 %v8092_v0  ;;  %3648 = vmatprep.mubr.bf16.mxu1 %v8535_v12 }
 0x41d   :  { %3787 = vmatprep.subr.bf16.mxu1 %v8095_v23 }
 0x420   :  { %3788 = vmatpush1.bf16.msra.mxu1 %v8099_v30 }
 0x421   :  { %3789 = vmatprep.subr.bf16.mxu1 %v8103_v49 }
 0x423   :  { %3649 = vmatmul.mubr.bf16.gmra.mrb[104].mxu1 %v7813_v51 }
 0x424   :  { %3790 = vmatpush1.bf16.msra.mxu1 %v8106_v3  ;;  %3658 = vmatprep.mubr.bf16.mxu1 %v8535_v12 }
 0x425   :  { %3791 = vmatprep.subr.bf16.mxu1 %v8109_v5 }
 0x428   :  { %3792 = vmatpush1.bf16.msra.mxu1 %v8113_v27 }
 0x429   :  { %3793 = vmatprep.subr.bf16.mxu1 %v8117_v56 }
 0x42b   :  { %3659 = vmatmul.mubr.bf16.gmra.mrb[108].mxu1 %v7826_v44 }
 0x42c   :  { %3794 = vmatpush1.bf16.msra.mxu1 %v8120_v58  ;;  %3813 = vmatprep.mubr.bf16.mxu1 %v8535_v12 }
 0x42d   :  { %3795 = vmatprep.subr.bf16.mxu1 %v8123_v16  ;;  %v6502_v16 = vld [vmem:[#allocation2 + $0xa0] ss:$8 sps:$4 sm:$0xff]  }
 0x430   :  { %3796 = vmatpush1.bf16.msra.mxu1 %v8127_v54  ;;  %v6500_v54 = vld [vmem:[#allocation2 + $0x90] ss:$8 sps:$4 sm:$0xff]  }
 0x431   :  { %3966 = vmatprep.subr.bf16.mxu1 %v8131_v50  ;;  %v8151_v50 = vld [vmem:[#allocation2 + $0x234] ss:$8 sps:$4 sm:$0xff]  }
 0x432   :  { %8560 = vst [vmem:[#allocation18_spill] sm:$0xff] %v8151_v50 }
 0x433   :  { %3814 = vmatmul.mubr.bf16.vlgmr.msra.gmra.mrb[96].mxu1 %v7940_v4 }
 0x434   :  { %3967 = vmatpush1.bf16.msra.mxu1 %v8134_v39  ;;  %3823 = vmatprep.mubr.bf16.mxu1 %v8535_v12  ;;  %v8155_v39 = vld [vmem:[#allocation2 + $0x230] ss:$8 sps:$4 sm:$0xff]  }
 0x435   :  { %3968 = vmatprep.subr.bf16.mxu1 %v8137_v17  ;;  %8561 = vst [vmem:[#allocation19_spill] sm:$0xff] %v8155_v39  ;;  %v8159_v17 = vld [vmem:[#allocation2 + $0x244] ss:$8 sps:$4 sm:$0xff]  }
 0x436   :  { %8562 = vst [vmem:[#allocation20_spill] sm:$0xff] %v8159_v17 }
 0x438   :  { %3969 = vmatpush1.bf16.msra.mxu1 %v8141_v48  ;;  %v8162_v48 = vld [vmem:[#allocation2 + $0x240] ss:$8 sps:$4 sm:$0xff]  }
 0x439   :  { %3970 = vmatprep.subr.bf16.mxu1 %v8145_v21  ;;  %8563 = vst [vmem:[#allocation21_spill] sm:$0xff] %v8162_v48  ;;  %v8165_v21 = vld [vmem:[#allocation2 + $0x254] ss:$8 sps:$4 sm:$0xff]  }
 0x43a   :  { %8564 = vst [vmem:[#allocation22_spill] sm:$0xff] %v8165_v21 }
 0x43b   :  { %3824 = vmatmul.mubr.bf16.gmra.mrb[100].mxu1 %v7965_v53 }
 0x43c   :  { %3971 = vmatpush1.bf16.msra.mxu1 %v8148_v59  ;;  %3833 = vmatprep.mubr.bf16.mxu1 %v8535_v12  ;;  %v8169_v59 = vld [vmem:[#allocation2 + $0x250] ss:$8 sps:$4 sm:$0xff]  }
 0x43d   :  { %3972 = vmatprep.subr.bf16.mxu1 %v8151_v50  ;;  %8565 = vst [vmem:[#allocation23_spill] sm:$0xff] %v8169_v59  ;;  %v8173_v50 = vld [vmem:[#allocation2 + $0x264] ss:$8 sps:$4 sm:$0xff]  }
 0x43e   :  { %8566 = vst [vmem:[#allocation24_spill] sm:$0xff] %v8173_v50 }
 0x440   :  { %3973 = vmatpush1.bf16.msra.mxu1 %v8155_v39  ;;  %v8176_v39 = vld [vmem:[#allocation2 + $0x260] ss:$8 sps:$4 sm:$0xff]  }
 0x441   :  { %3974 = vmatprep.subr.bf16.mxu1 %v8159_v17  ;;  %8567 = vst [vmem:[#allocation25_spill] sm:$0xff] %v8176_v39  ;;  %v8179_v17 = vld [vmem:[#allocation2 + $0x274] ss:$8 sps:$4 sm:$0xff]  }
 0x442   :  { %8568 = vst [vmem:[#allocation26_spill] sm:$0xff] %v8179_v17 }
 0x443   :  { %3834 = vmatmul.mubr.bf16.gmra.mrb[104].mxu1 %v7991_v46 }
 0x444   :  { %3975 = vmatpush1.bf16.msra.mxu1 %v8162_v48  ;;  %3843 = vmatprep.mubr.bf16.mxu1 %v8535_v12  ;;  %v8183_v48 = vld [vmem:[#allocation2 + $0x270] ss:$8 sps:$4 sm:$0xff]  }
 0x445   :  { %3976 = vmatprep.subr.bf16.mxu1 %v8165_v21  ;;  %8569 = vst [vmem:[#allocation27_spill] sm:$0xff] %v8183_v48  ;;  %v6497_v21 = vld [vmem:[#allocation2 + $0x84] ss:$8 sps:$4 sm:$0xff]  }
 0x448   :  { %3977 = vmatpush1.bf16.msra.mxu1 %v8169_v59  ;;  %v6498_v59 = vld [vmem:[#allocation2 + $0x80] ss:$8 sps:$4 sm:$0xff]  }
 0x449   :  { %3978 = vmatprep.subr.bf16.mxu1 %v8173_v50  ;;  %v6499_v50 = vld [vmem:[#allocation2 + $0x94] ss:$8 sps:$4 sm:$0xff]  }
 0x44b   :  { %3844 = vmatmul.mubr.bf16.gmra.mrb[108].mxu1 %v8021_v29 }
 0x44c   :  { %3979 = vmatpush1.bf16.msra.mxu1 %v8176_v39  ;;  %3998 = vmatprep.mubr.bf16.mxu1 %v8535_v12  ;;  %v6501_v39 = vld [vmem:[#allocation2 + $0xa4] ss:$8 sps:$4 sm:$0xff]  }
 0x44d   :  { %3980 = vmatprep.subr.bf16.mxu1 %v8179_v17  ;;  %v8570_v17 = vld [vmem:[#allocation55_spill] sm:$0xff] }
 0x450   :  { %3981 = vmatpush1.bf16.msra.mxu1 %v8183_v48  ;;  %v6503_v48 = vld [vmem:[#allocation2 + $0xb4] ss:$8 sps:$4 sm:$0xff]  }
 0x451   :  { %4055 = vmatprep.subr.bf16.mxu1 %v6497_v21  ;;  %v6504_v21 = vld [vmem:[#allocation2 + $0xb0] ss:$8 sps:$4 sm:$0xff]  }
 0x453   :  { %3999 = vmatmul.mubr.bf16.vlgmr.msra.gmra.mrb[96].mxu1 %v7801_v35 }
 0x454   :  { %4056 = vmatpush1.bf16.msra.mxu1 %v6498_v59  ;;  %4008 = vmatprep.mubr.bf16.mxu1 %v8535_v12  ;;  %v8571_v59 = vld [vmem:[#allocation54_spill] sm:$0xff] }
 0x455   :  { %4057 = vmatprep.subr.bf16.mxu1 %v6499_v50  ;;  %v8573_v50 = vld [vmem:[#allocation56_spill] sm:$0xff] }
 0x458   :  { %4058 = vmatpush1.bf16.msra.mxu1 %v6500_v54  ;;  %v8572_v54 = vld [vmem:[#allocation57_spill] sm:$0xff] }
 0x459   :  { %4059 = vmatprep.subr.bf16.mxu1 %v6501_v39  ;;  %v8574_v39 = vld [vmem:[#allocation58_spill] sm:$0xff] }
 0x45b   :  { %4009 = vmatmul.mubr.bf16.gmra.mrb[100].mxu1 %v7813_v51 }
 0x45c   :  { %4060 = vmatpush1.bf16.msra.mxu1 %v6502_v16  ;;  %4018 = vmatprep.mubr.bf16.mxu1 %v8535_v12  ;;  %v8575_v16 = vld [vmem:[#allocation59_spill] sm:$0xff] }
 0x45d   :  { %4061 = vmatprep.subr.bf16.mxu1 %v6503_v48  ;;  %v8576_v48 = vld [vmem:[#allocation60_spill] sm:$0xff] }
 0x460   :  { %4062 = vmatpush1.bf16.msra.mxu1 %v6504_v21  ;;  %v8578_v21 = vld [vmem:[#allocation62_spill] sm:$0xff] }
 0x461   :  { %4063 = vmatprep.subr.bf16.mxu1 %v8570_v17  ;;  %v8577_v17 = vld [vmem:[#allocation61_spill] sm:$0xff] }
 0x463   :  { %4019 = vmatmul.mubr.bf16.gmra.mrb[104].mxu1 %v7826_v44 }
 0x464   :  { %4064 = vmatpush1.bf16.msra.mxu1 %v8571_v59  ;;  %4028 = vmatprep.mubr.bf16.mxu1 %v8535_v12 }
 0x465   :  { %4065 = vmatprep.subr.bf16.mxu1 %v8572_v54 }
 0x468   :  { %4066 = vmatpush1.bf16.msra.mxu1 %v8573_v50 }
 0x469   :  { %4067 = vmatprep.subr.bf16.mxu1 %v8574_v39 }
 0x46b   :  { %4029 = vmatmul.mubr.bf16.gmra.mrb[108].mxu1 %v7836_v9 }
 0x46c   :  { %4068 = vmatpush1.bf16.msra.mxu1 %v8575_v16  ;;  %4087 = vmatprep.mubr.bf16.mxu1 %v8535_v12 }
 0x46d   :  { %4069 = vmatprep.subr.bf16.mxu1 %v8576_v48 }
 0x470   :  { %4070 = vmatpush1.bf16.msra.mxu1 %v8577_v17 }
 0x471   :  { %4128 = vmatprep.subr.bf16.mxu1 %v8578_v21 }
 0x473   :  { %4088 = vmatmul.mubr.bf16.vlgmr.msra.gmra.mrb[112].mxu1 %v7790_v31  ;;  %v8579_v31 = vld [vmem:[#allocation10_spill] sm:$0xff] }
 0x474   :  { %4129 = vmatpush1.bf16.msra.mxu1 %v7912_v37  ;;  %4097 = vmatprep.mubr.bf16.mxu1 %v8535_v12  ;;  %v8580_v37 = vld [vmem:[#allocation11_spill] sm:$0xff] }
 0x475   :  { %4130 = vmatprep.subr.bf16.mxu1 %v7917_v7  ;;  %v8582_v7 = vld [vmem:[#allocation13_spill] sm:$0xff] }
 0x478   :  { %4131 = vmatpush1.bf16.msra.mxu1 %v7923_v45  ;;  %v8583_v45 = vld [vmem:[#allocation14_spill] sm:$0xff] }
 0x479   :  { %4132 = vmatprep.subr.bf16.mxu1 %v7929_v22  ;;  %v8584_v22 = vld [vmem:[#allocation15_spill] sm:$0xff] }
 0x47b   :  { %4098 = vmatmul.mubr.bf16.gmra.mrb[116].mxu1 %v7801_v35 }
 0x47c   :  { %4133 = vmatpush1.bf16.msra.mxu1 %v7937_v2  ;;  %4107 = vmatprep.mubr.bf16.mxu1 %v8535_v12  ;;  %v8585_v2 = vld [vmem:[#allocation16_spill] sm:$0xff] }
 0x47d   :  { %4134 = vmatprep.subr.bf16.mxu1 %v7943_v10  ;;  %v8587_v10 = vld [vmem:[#allocation18_spill] sm:$0xff] }
 0x480   :  { %4135 = vmatpush1.bf16.msra.mxu1 %v7949_v19  ;;  %v8588_v19 = vld [vmem:[#allocation19_spill] sm:$0xff] }
 0x481   :  { %4136 = vmatprep.subr.bf16.mxu1 %v7955_v62  ;;  %v8590_v62 = vld [vmem:[#allocation21_spill] sm:$0xff] }
 0x483   :  { %4108 = vmatmul.mubr.bf16.gmra.mrb[120].mxu1 %v7813_v51 }
 0x484   :  { %4137 = vmatpush1.bf16.msra.mxu1 %v7963_v8  ;;  %4117 = vmatprep.mubr.bf16.mxu1 %v8535_v12  ;;  %v8591_v8 = vld [vmem:[#allocation22_spill] sm:$0xff] }
 0x485   :  { %4138 = vmatprep.subr.bf16.mxu1 %v7969_v40  ;;  %v8592_v40 = vld [vmem:[#allocation23_spill] sm:$0xff] }
 0x488   :  { %4139 = vmatpush1.bf16.msra.mxu1 %v7975_v32  ;;  %v8594_v32 = vld [vmem:[#allocation25_spill] sm:$0xff] }
 0x489   :  { %4140 = vmatprep.subr.bf16.mxu1 %v7981_v57  ;;  %v8595_v57 = vld [vmem:[#allocation26_spill] sm:$0xff] }
 0x48b   :  { %4118 = vmatmul.mubr.bf16.gmra.mrb[124].mxu1 %v7826_v44 }
 0x48c   :  { %4141 = vmatpush1.bf16.msra.mxu1 %v7989_v60  ;;  %4160 = vmatprep.mubr.bf16.mxu1 %v8535_v12  ;;  %v8596_v60 = vld [vmem:[#allocation27_spill] sm:$0xff] }
 0x48d   :  { %4142 = vmatprep.subr.bf16.mxu1 %v7995_v25  ;;  %v6583_v25 = vmov 0.0  }
 0x490   :  { %4143 = vmatpush1.bf16.msra.mxu1 %v8001_v43  ;;  %v6434_v43 = vld [vmem:[#allocation4 + $0x48] sm:$0xff]  }
 0x491   :  { %4201 = vmatprep.subr.bf16.mxu1 %v8006_v6 }
 0x493   :  { %4161 = vmatmul.mubr.bf16.vlgmr.msra.gmra.mrb[112].mxu1 %v7914_v20  ;;  %v8581_v20 = vld [vmem:[#allocation12_spill] sm:$0xff] }
 0x494   :  { %4202 = vmatpush1.bf16.msra.mxu1 %v8015_v41  ;;  %4170 = vmatprep.mubr.bf16.mxu1 %v8535_v12 }
 0x495   :  { %4203 = vmatprep.subr.bf16.mxu1 %v8019_v34 }
 0x498   :  { %4204 = vmatpush1.bf16.msra.mxu1 %v8026_v47 }
 0x499   :  { %4205 = vmatprep.subr.bf16.mxu1 %v8030_v61 }
 0x49b   :  { %4171 = vmatmul.mubr.bf16.gmra.mrb[116].mxu1 %v7940_v4 }
 0x49c   :  { %4206 = vmatpush1.bf16.msra.mxu1 %v8034_v14  ;;  %4180 = vmatprep.mubr.bf16.mxu1 %v8535_v12 }
 0x49d   :  { %4207 = vmatprep.subr.bf16.mxu1 %v8037_v24 }
 0x4a0   :  { %4208 = vmatpush1.bf16.msra.mxu1 %v8043_v38 }
 0x4a1   :  { %4209 = vmatprep.subr.bf16.mxu1 %v8047_v18 }
 0x4a3   :  { %4181 = vmatmul.mubr.bf16.gmra.mrb[120].mxu1 %v7965_v53 }
 0x4a4   :  { %4210 = vmatpush1.bf16.msra.mxu1 %v8050_v42  ;;  %4190 = vmatprep.mubr.bf16.mxu1 %v8535_v12 }
 0x4a5   :  { %4211 = vmatprep.subr.bf16.mxu1 %v8053_v63 }
 0x4a8   :  { %4212 = vmatpush1.bf16.msra.mxu1 %v8057_v28 }
 0x4a9   :  { %4213 = vmatprep.subr.bf16.mxu1 %v8061_v55 }
 0x4ab   :  { %4191 = vmatmul.mubr.bf16.gmra.mrb[124].mxu1 %v7991_v46 }
 0x4ac   :  { %4214 = vmatpush1.bf16.msra.mxu1 %v8064_v33  ;;  %4233 = vmatprep.mubr.bf16.mxu1 %v8535_v12  ;;  %v6436_v33 = vld [vmem:[#allocation4 + $0x58] sm:$0xff]  }
 0x4ad   :  { %4215 = vmatprep.subr.bf16.mxu1 %v8067_v36  ;;  %v6437_v36 = vld [vmem:[#allocation4 + $0x60] sm:$0xff]  }
 0x4b0   :  { %4216 = vmatpush1.bf16.msra.mxu1 %v8071_v1  ;;  %v6438_v1 = vld [vmem:[#allocation4 + $0x68] sm:$0xff]  }
 0x4b1   :  { %4290 = vmatprep.subr.bf16.mxu1 %v8075_v13  ;;  %v6439_v13 = vld [vmem:[#allocation4 + $0x70] sm:$0xff]  }
 0x4b3   :  { %4234 = vmatmul.mubr.bf16.vlgmr.msra.gmra.mrb[112].mxu1 %v7940_v4  ;;  %v8586_v4 = vld [vmem:[#allocation17_spill] sm:$0xff] }
 0x4b4   :  { %4291 = vmatpush1.bf16.msra.mxu1 %v8078_v52  ;;  %4243 = vmatprep.mubr.bf16.mxu1 %v8535_v12  ;;  %v6440_v52 = vld [vmem:[#allocation4 + $0x78] sm:$0xff]  }
 0x4b5   :  { %4292 = vmatprep.subr.bf16.mxu1 %v8081_v26 }
 0x4b8   :  { %4293 = vmatpush1.bf16.msra.mxu1 %v8085_v15 }
 0x4b9   :  { %4294 = vmatprep.subr.bf16.mxu1 %v8089_v11 }
 0x4bb   :  { %4244 = vmatmul.mubr.bf16.gmra.mrb[116].mxu1 %v7965_v53 }
 0x4bc   :  { %4295 = vmatpush1.bf16.msra.mxu1 %v8092_v0  ;;  %4253 = vmatprep.mubr.bf16.mxu1 %v8535_v12 }
 0x4bd   :  { %4296 = vmatprep.subr.bf16.mxu1 %v8095_v23 }
 0x4c0   :  { %4297 = vmatpush1.bf16.msra.mxu1 %v8099_v30  ;;  %v8337_v30 = vld [vmem:[%s8416_s4] ss:$0 sm:$0xff] }
 0x4c1   :  { %4298 = vmatprep.subr.bf16.mxu1 %v8103_v49 }
 0x4c3   :  { %4254 = vmatmul.mubr.bf16.gmra.mrb[120].mxu1 %v7991_v46 }
 0x4c4   :  { %4299 = vmatpush1.bf16.msra.mxu1 %v8106_v3  ;;  %4263 = vmatprep.mubr.bf16.mxu1 %v8535_v12 }
 0x4c5   :  { %4300 = vmatprep.subr.bf16.mxu1 %v8109_v5 }
 0x4c8   :  { %4301 = vmatpush1.bf16.msra.mxu1 %v8113_v27 }
 0x4c9   :  { %4302 = vmatprep.subr.bf16.mxu1 %v8117_v56 }
 0x4cb   :  { %4264 = vmatmul.mubr.bf16.gmra.mrb[124].mxu1 %v8021_v29 }
 0x4cc   :  { %4303 = vmatpush1.bf16.msra.mxu1 %v8120_v58  ;;  %4322 = vmatprep.mubr.bf16.mxu1 %v8535_v12 }
 0x4cd   :  { %4304 = vmatprep.subr.bf16.mxu1 %v8579_v31 }
 0x4d0   :  { %4305 = vmatpush1.bf16.msra.mxu1 %v8580_v37 }
 0x4d1   :  { %4379 = vmatprep.subr.bf16.mxu1 %v8581_v20 }
 0x4d3   :  { %4323 = vmatmul.mubr.bf16.vlgmr.msra.gmra.mrb[112].mxu1 %v7801_v35  ;;  %v8589_v35 = vld [vmem:[#allocation20_spill] sm:$0xff] }
 0x4d4   :  { %4380 = vmatpush1.bf16.msra.mxu1 %v8582_v7  ;;  %4332 = vmatprep.mubr.bf16.mxu1 %v8535_v12 }
 0x4d5   :  { %4381 = vmatprep.subr.bf16.mxu1 %v8583_v45 }
 0x4d8   :  { %4382 = vmatpush1.bf16.msra.mxu1 %v8584_v22 }
 0x4d9   :  { %4383 = vmatprep.subr.bf16.mxu1 %v8585_v2 }
 0x4db   :  { %4333 = vmatmul.mubr.bf16.gmra.mrb[116].mxu1 %v7813_v51  ;;  %v8593_v51 = vld [vmem:[#allocation24_spill] sm:$0xff] }
 0x4dc   :  { %4384 = vmatpush1.bf16.msra.mxu1 %v8586_v4  ;;  %4342 = vmatprep.mubr.bf16.mxu1 %v8535_v12 }
 0x4dd   :  { %4385 = vmatprep.subr.bf16.mxu1 %v8587_v10 }
 0x4e0   :  { %4386 = vmatpush1.bf16.msra.mxu1 %v8588_v19 }
 0x4e1   :  { %4387 = vmatprep.subr.bf16.mxu1 %v8589_v35 }
 0x4e3   :  { %4343 = vmatmul.mubr.bf16.gmra.mrb[120].mxu1 %v7826_v44  ;;  %v6433_v44 = vld [vmem:[#allocation4 + $0x40] sm:$0xff]  }
 0x4e4   :  { %4388 = vmatpush1.bf16.msra.mxu1 %v8590_v62  ;;  %4352 = vmatprep.mubr.bf16.mxu1 %v8535_v12 }
 0x4e5   :  { %4389 = vmatprep.subr.bf16.mxu1 %v8591_v8 }
 0x4e8   :  { %4390 = vmatpush1.bf16.msra.mxu1 %v8592_v40 }
 0x4e9   :  { %4391 = vmatprep.subr.bf16.mxu1 %v8593_v51 }
 0x4eb   :  { %4353 = vmatmul.mubr.bf16.gmra.mrb[124].mxu1 %v7836_v9  ;;  %v6435_v9 = vld [vmem:[#allocation4 + $0x50] sm:$0xff]  }
 0x4ec   :  { %4392 = vmatpush1.bf16.msra.mxu1 %v8594_v32  ;;  %4411 = vmatprep.mubr.bf16.mxu1 %v8535_v12 }
 0x4ed   :  { %4393 = vmatprep.subr.bf16.mxu1 %v8595_v57 }
 0x4f0   :  { %4394 = vmatpush1.bf16.msra.mxu1 %v8596_v60  ;;  %v6441_v60 = vld [vmem:[#allocation4] sm:$0xff]  }
 0x4f1   :  { %5453 = vmatprep.subr.bf16.mxu1 %v6583_v25 }
 0x4f3   :  { %4412 = vmatmul.mubr.bf16.vlgmr.msra.gmra.mrb[112].mxu1 %v7965_v53  ;;  %v8597_v53 = vld [vmem:[#allocation9_spill] sm:$0xff] }
 0x4f4   :  { %4421 = vmatprep.mubr.bf16.mxu1 %v8535_v12  ;;  %5454 = vmatpush3.bf16.msra.mxu1 %v6433_v44 }
 0x4f5   :  { %5455 = vmatprep.subr.bf16.mxu1 %v6583_v25 }
 0x4f8   :  { %5456 = vmatpush3.bf16.msra.mxu1 %v6434_v43 }
 0x4f9   :  { %5457 = vmatprep.subr.bf16.mxu1 %v6583_v25 }
 0x4fb   :  { %4422 = vmatmul.mubr.bf16.gmra.mrb[116].mxu1 %v7991_v46 }
 0x4fc   :  { %4431 = vmatprep.mubr.bf16.mxu1 %v8535_v12  ;;  %5458 = vmatpush3.bf16.msra.mxu1 %v6435_v9 }
 0x4fd   :  { %5459 = vmatprep.subr.bf16.mxu1 %v6583_v25 }
 0x500   :  { %5460 = vmatpush3.bf16.msra.mxu1 %v6436_v33  ;;  %v6443_v33 = vld [vmem:[#allocation4 + $0x10] sm:$0xff]  }
 0x501   :  { %5461 = vmatprep.subr.bf16.mxu1 %v6583_v25 }
 0x503   :  { %4432 = vmatmul.mubr.bf16.gmra.mrb[120].mxu1 %v8021_v29 }
 0x504   :  { %4441 = vmatprep.mubr.bf16.mxu1 %v8535_v12  ;;  %5462 = vmatpush3.bf16.msra.mxu1 %v6437_v36 }
 0x505   :  { %5463 = vmatprep.subr.bf16.mxu1 %v6583_v25 }
 0x508   :  { %5464 = vmatpush3.bf16.msra.mxu1 %v6438_v1 }
 0x509   :  { %5465 = vmatprep.subr.bf16.mxu1 %v6583_v25 }
 0x50b   :  { %4442 = vmatmul.mubr.bf16.gmra.mrb[124].mxu1 %v8597_v53 }
 0x50c   :  { %5466 = vmatpush3.bf16.msra.mxu1 %v6439_v13  ;;  %5469 = vmatprep.mubr.msk.bf16.mxu1 %vm6584_vm0, %v6583_v25 }
 0x50d   :  { %5467 = vmatprep.subr.bf16.mxu1 %v6583_v25 }
 0x510   :  { %5468 = vmatpush3.bf16.msra.mxu1 %v6440_v52 }
 0x511   :  { %5473 = vmatprep.subr.bf16.mxu1 %v6583_v25 }
 0x526   :  { %v4000_v6 = vpop.f32.mrb[96].mxu1 }
 0x527   :  { %v4002_v41 = vpop.f32.mrb[97].mxu1 }
 0x528   :  { %v4004_v34 = vpop.f32.mrb[98].mxu1 }
 0x529   :  { %v4006_v47 = vpop.f32.mrb[99].mxu1 }
 0x52e   :  { %v4010_v61 = vpop.f32.mrb[100].mxu1 }
 0x52f   :  { %v4012_v14 = vpop.f32.mrb[101].mxu1 }
 0x530   :  { %v4014_v24 = vpop.f32.mrb[102].mxu1 }
 0x531   :  { %v4016_v38 = vpop.f32.mrb[103].mxu1 }
 0x536   :  { %v8311_v46 = vpop.f32.mrb[104].mxu1 }
 0x537   :  { %v8313_v18 = vpop.f32.mrb[105].mxu1 }
 0x538   :  { %v8315_v42 = vpop.f32.mrb[106].mxu1 }
 0x539   :  { %v8317_v63 = vpop.f32.mrb[107].mxu1 }
 0x53e   :  { %v8319_v29 = vpop.f32.mrb[108].mxu1 }
 0x53f   :  { %v8321_v12 = vpop.f32.mrb[109].mxu1 }
 0x540   :  { %v8323_v28 = vpop.f32.mrb[110].mxu1 }
 0x541   :  { %v8325_v55 = vpop.f32.mrb[111].mxu1 }
 0x5c6   :  { %v4413_v26 = vpop.f32.mrb[112].mxu1 }
 0x5c7   :  { %v4468_v15 = vmax.f32 %v4000_v6, %v4413_v26  ;;  %v4415_v11 = vpop.f32.mrb[113].mxu1  ;;  %v6444_v26 = vld [vmem:[#allocation4 + $0x18] sm:$0xff]  }
 0x5c8   :  { %v4469_v0 = vmax.f32 %v4002_v41, %v4415_v11  ;;  %v4417_v23 = vpop.f32.mrb[114].mxu1  ;;  %v6442_v41 = vld [vmem:[#allocation4 + $0x8] sm:$0xff]   ;;  %v6445_v11 = vld [vmem:[#allocation4 + $0x20] sm:$0xff]  }
 0x5c9   :  { %v4470_v49 = vmax.f32 %v4004_v34, %v4417_v23  ;;  %v4419_v3 = vpop.f32.mrb[115].mxu1  ;;  %v6447_v23 = vld [vmem:[#allocation4 + $0x30] sm:$0xff]  }
 0x5ca   :  { %v4484_v5 = vmax.f32 %v4468_v15, %v4469_v0  ;;  %v4471_v27 = vmax.f32 %v4006_v47, %v4419_v3  ;;  %v6450_v3 = vld [vmem:[#allocation4 + $0x88] sm:$0xff]  }
 0x5cc   :  { %v4499_v56 = vadd.f32 %v8337_v30, %v4484_v5  ;;  %v4485_v58 = vmax.f32 %v4470_v49, %v4471_v27  ;;  %v6449_v49 = vld [vmem:[#allocation4 + $0x80] sm:$0xff]   ;;  %v6451_v5 = vld [vmem:[#allocation4 + $0x90] sm:$0xff]   ;;  %v6452_v27 = vld [vmem:[#allocation4 + $0x98] sm:$0xff]  }
 0x5ce   :  { %v4500_v59 = vadd.f32 %v8337_v30, %v4485_v58  ;;  %v4423_v54 = vpop.f32.mrb[116].mxu1  ;;  %v4507_v16 = vmax.f32 %v4499_v56, 0.0  ;;  %v6453_v56 = vld [vmem:[#allocation4 + $0xa0] sm:$0xff]   ;;  %v6454_v58 = vld [vmem:[#allocation4 + $0xa8] sm:$0xff]  }
 0x5cf   :  { %v4472_v50 = vmax.f32 %v4010_v61, %v4423_v54  ;;  %v4425_v39 = vpop.f32.mrb[117].mxu1  ;;  %v6456_v54 = vld [vmem:[#allocation4 + $0xb8] sm:$0xff]  }
 0x5d0   :  { %v4508_v48 = vmax.f32 %v4500_v59, 0.0  ;;  %v4473_v17 = vmax.f32 %v4012_v14, %v4425_v39  ;;  %v4427_v21 = vpop.f32.mrb[118].mxu1  ;;  %v6455_v59 = vld [vmem:[#allocation4 + $0xb0] sm:$0xff]   ;;  %v6458_v39 = vld [vmem:[#allocation4 + $0xc8] sm:$0xff]  }
 0x5d1   :  { %v4474_v31 = vmax.f32 %v4014_v24, %v4427_v21  ;;  %v4429_v37 = vpop.f32.mrb[119].mxu1  ;;  %v6462_v21 = vld [vmem:[#allocation4 + $0xe8] sm:$0xff]  }
 0x5d2   :  { %v8341_v20 = vpack.c.bf16 %v4508_v48, %v4507_v16  ;;  %v4486_v7 = vmax.f32 %v4472_v50, %v4473_v17  ;;  %v4475_v45 = vmax.f32 %v4016_v38, %v4429_v37  ;;  %v6457_v50 = vld [vmem:[#allocation4 + $0xc0] sm:$0xff]   ;;  %v6459_v16 = vld [vmem:[#allocation4 + $0xd0] sm:$0xff]   ;;  %v6460_v48 = vld [vmem:[#allocation4 + $0xd8] sm:$0xff]  }
 0x5d3   :  { %v6461_v17 = vld [vmem:[#allocation4 + $0xe0] sm:$0xff]   ;;  %v6464_v37 = vld [vmem:[#allocation4 + $0xf8] sm:$0xff]  }
 0x5d4   :  { %v4501_v22 = vadd.f32 %v8337_v30, %v4486_v7  ;;  %v4487_v2 = vmax.f32 %v4474_v31, %v4475_v45  ;;  %v6463_v31 = vld [vmem:[#allocation4 + $0xf0] sm:$0xff]   ;;  %v6466_v7 = vld [vmem:[#allocation6 + $0x8] sm:$0xff]  }
 0x5d5   :  { %v6467_v45 = vld [vmem:[#allocation6 + $0x10] sm:$0xff]  }
 0x5d6   :  { %v4502_v4 = vadd.f32 %v8337_v30, %v4487_v2  ;;  %v4433_v10 = vpop.f32.mrb[120].mxu1  ;;  %v4509_v62 = vmax.f32 %v4501_v22, 0.0  ;;  %v6468_v22 = vld [vmem:[#allocation6 + $0x18] sm:$0xff]   ;;  %v6469_v2 = vld [vmem:[#allocation6 + $0x20] sm:$0xff]  }
 0x5d7   :  { %v4476_v19 = vmax.f32 %v8311_v46, %v4433_v10  ;;  %v4435_v35 = vpop.f32.mrb[121].mxu1  ;;  %v6471_v10 = vld [vmem:[#allocation6 + $0x30] sm:$0xff]  }
 0x5d8   :  { %v4510_v8 = vmax.f32 %v4502_v4, 0.0  ;;  %v4477_v40 = vmax.f32 %v8313_v18, %v4435_v35  ;;  %v4437_v51 = vpop.f32.mrb[122].mxu1  ;;  %v6470_v4 = vld [vmem:[#allocation6 + $0x28] sm:$0xff]  }
 0x5d9   :  { %v4478_v32 = vmax.f32 %v8315_v42, %v4437_v51  ;;  %v4439_v57 = vpop.f32.mrb[123].mxu1 }
 0x5da   :  { %v4516_v44 = vpack.c.bf16 %v4510_v8, %v4509_v62  ;;  %v4488_v43 = vmax.f32 %v4476_v19, %v4477_v40  ;;  %v4479_v9 = vmax.f32 %v8317_v63, %v4439_v57  ;;  %v6472_v19 = vld [vmem:[#allocation6 + $0x38] sm:$0xff]  }
 0x5dc   :  { %v4503_v53 = vadd.f32 %v8337_v30, %v4488_v43  ;;  %v4489_v6 = vmax.f32 %v4478_v32, %v4479_v9  ;;  %5470 = vmatmul.mubr.bf16.vlgmr.msra.gmra.mrb[128].mxu1 %v4516_v44 }
 0x5dd   :  { %5474 = vmatpush3.bf16.msra.mxu1 %v6441_v60  ;;  %5489 = vmatprep.mubr.msk.bf16.mxu1 %vm6584_vm0, %v6583_v25 }
 0x5de   :  { %v4504_v34 = vadd.f32 %v8337_v30, %v4489_v6  ;;  %v4443_v47 = vpop.f32.mrb[124].mxu1  ;;  %5475 = vmatprep.subr.bf16.mxu1 %v6583_v25  ;;  %v4511_v24 = vmax.f32 %v4503_v53, 0.0 }
 0x5df   :  { %v4480_v61 = vmax.f32 %v8319_v29, %v4443_v47  ;;  %v4445_v14 = vpop.f32.mrb[125].mxu1 }
 0x5e0   :  { %v4512_v38 = vmax.f32 %v4504_v34, 0.0  ;;  %v4481_v46 = vmax.f32 %v8321_v12, %v4445_v14  ;;  %v4447_v18 = vpop.f32.mrb[126].mxu1 }
 0x5e1   :  { %v4482_v42 = vmax.f32 %v8323_v28, %v4447_v18  ;;  %5476 = vmatpush3.bf16.msra.mxu1 %v6442_v41  ;;  %v4449_v63 = vpop.f32.mrb[127].mxu1 }
 0x5e2   :  { %v4517_v36 = vpack.c.bf16 %v4512_v38, %v4511_v24  ;;  %v4490_v1 = vmax.f32 %v4480_v61, %v4481_v46  ;;  %v4483_v13 = vmax.f32 %v8325_v55, %v4449_v63  ;;  %5477 = vmatprep.subr.bf16.mxu1 %v6583_v25  ;;  %v6446_v55 = vld [vmem:[#allocation4 + $0x28] sm:$0xff]  }
 0x5e4   :  { %v4505_v52 = vadd.f32 %v8337_v30, %v4490_v1  ;;  %v4491_v29 = vmax.f32 %v4482_v42, %v4483_v13  ;;  %v5067_v13 = vlaneseq }
 0x5e5   :  { %5478 = vmatpush3.bf16.msra.mxu1 %v6443_v33 }
 0x5e6   :  { %v4506_v15 = vadd.f32 %v8337_v30, %v4491_v29  ;;  %5479 = vmatprep.subr.bf16.mxu1 %v6583_v25  ;;  %v4513_v12 = vmax.f32 %v4505_v52, 0.0  ;;  %v6448_v30 = vld [vmem:[#allocation4 + $0x38] sm:$0xff]   ;;  %v5068_v52 = vand.u32 127, %v5067_v13  ;;  %v5399_v29 = vld [vmem:[%s8420_s8] ss:$0 sm:$0xff] }
 0x5e8   :  { %v4514_v28 = vmax.f32 %v4506_v15, 0.0  ;;  %vm5069_vm1 = vcmp.lt.s32.totalorder %v5068_v52, 10 }
 0x5e9   :  { %5480 = vmatpush3.bf16.msra.mxu1 %v6444_v26 }
 0x5ea   :  { %v8362_v0 = vpack.c.bf16 %v4514_v28, %v4513_v12  ;;  %5481 = vmatprep.subr.bf16.mxu1 %v6583_v25 }
 0x5ed   :  { %5482 = vmatpush3.bf16.msra.mxu1 %v6445_v11 }
 0x5ee   :  { %5483 = vmatprep.subr.bf16.mxu1 %v6583_v25 }
 0x5f1   :  { %5484 = vmatpush3.bf16.msra.mxu1 %v6446_v55 }
 0x5f2   :  { %5485 = vmatprep.subr.bf16.mxu1 %v6583_v25 }
 0x5f5   :  { %5486 = vmatpush3.bf16.msra.mxu1 %v6447_v23 }
 0x5f6   :  { %5487 = vmatprep.subr.bf16.mxu1 %v6583_v25 }
 0x5f9   :  { %5488 = vmatpush3.bf16.msra.mxu1 %v6448_v30 }
 0x5fa   :  { %5493 = vmatprep.subr.bf16.mxu1 %v6583_v25 }
 0x5fc   :  { %5490 = vmatmul.mubr.bf16.vlgmr.msra.gmra.mrb[132].mxu1 %v8341_v20  ;;  %v6465_v20 = vld [vmem:[#allocation6] sm:$0xff]  }
 0x5fd   :  { %5494 = vmatpush3.bf16.msra.mxu1 %v6449_v49  ;;  %5509 = vmatprep.mubr.msk.bf16.mxu1 %vm6584_vm0, %v6583_v25 }
 0x5fe   :  { %5495 = vmatprep.subr.bf16.mxu1 %v6583_v25 }
 0x601   :  { %5496 = vmatpush3.bf16.msra.mxu1 %v6450_v3 }
 0x602   :  { %5497 = vmatprep.subr.bf16.mxu1 %v6583_v25 }
 0x605   :  { %5498 = vmatpush3.bf16.msra.mxu1 %v6451_v5 }
 0x606   :  { %5499 = vmatprep.subr.bf16.mxu1 %v6583_v25 }
 0x609   :  { %5500 = vmatpush3.bf16.msra.mxu1 %v6452_v27 }
 0x60a   :  { %5501 = vmatprep.subr.bf16.mxu1 %v6583_v25 }
 0x60d   :  { %5502 = vmatpush3.bf16.msra.mxu1 %v6453_v56 }
 0x60e   :  { %5503 = vmatprep.subr.bf16.mxu1 %v6583_v25 }
 0x611   :  { %5504 = vmatpush3.bf16.msra.mxu1 %v6454_v58 }
 0x612   :  { %5505 = vmatprep.subr.bf16.mxu1 %v6583_v25 }
 0x615   :  { %5506 = vmatpush3.bf16.msra.mxu1 %v6455_v59 }
 0x616   :  { %5507 = vmatprep.subr.bf16.mxu1 %v6583_v25 }
 0x619   :  { %5508 = vmatpush3.bf16.msra.mxu1 %v6456_v54 }
 0x61a   :  { %5513 = vmatprep.subr.bf16.mxu1 %v6583_v25 }
 0x61c   :  { %5510 = vmatmul.mubr.bf16.vlgmr.msra.gmra.mrb[136].mxu1 %v4517_v36 }
 0x61d   :  { %5514 = vmatpush3.bf16.msra.mxu1 %v6457_v50  ;;  %5529 = vmatprep.mubr.msk.bf16.mxu1 %vm6584_vm0, %v6583_v25 }
 0x61e   :  { %5515 = vmatprep.subr.bf16.mxu1 %v6583_v25 }
 0x621   :  { %5516 = vmatpush3.bf16.msra.mxu1 %v6458_v39 }
 0x622   :  { %5517 = vmatprep.subr.bf16.mxu1 %v6583_v25 }
 0x625   :  { %5518 = vmatpush3.bf16.msra.mxu1 %v6459_v16 }
 0x626   :  { %5519 = vmatprep.subr.bf16.mxu1 %v6583_v25 }
 0x629   :  { %5520 = vmatpush3.bf16.msra.mxu1 %v6460_v48 }
 0x62a   :  { %5521 = vmatprep.subr.bf16.mxu1 %v6583_v25 }
 0x62d   :  { %5522 = vmatpush3.bf16.msra.mxu1 %v6461_v17 }
 0x62e   :  { %5523 = vmatprep.subr.bf16.mxu1 %v6583_v25 }
 0x631   :  { %5524 = vmatpush3.bf16.msra.mxu1 %v6462_v21 }
 0x632   :  { %5525 = vmatprep.subr.bf16.mxu1 %v6583_v25 }
 0x635   :  { %5526 = vmatpush3.bf16.msra.mxu1 %v6463_v31 }
 0x636   :  { %5527 = vmatprep.subr.bf16.mxu1 %v6583_v25 }
 0x639   :  { %5528 = vmatpush3.bf16.msra.mxu1 %v6464_v37 }
 0x63a   :  { %5533 = vmatprep.subr.bf16.mxu1 %v6583_v25 }
 0x63c   :  { %5530 = vmatmul.mubr.bf16.vlgmr.msra.gmra.mrb[140].mxu1 %v8362_v0 }
 0x63d   :  { %5549 = vmatprep.mubr.msk.bf16.mxu1 %vm6584_vm0, %v6583_v25  ;;  %5534 = vmatpush3.bf16.msra.mxu1 %v6465_v20 }
 0x63e   :  { %5535 = vmatprep.subr.bf16.mxu1 %v6583_v25 }
 0x641   :  { %5536 = vmatpush3.bf16.msra.mxu1 %v6466_v7 }
 0x642   :  { %5537 = vmatprep.subr.bf16.mxu1 %v6583_v25 }
 0x645   :  { %5538 = vmatpush3.bf16.msra.mxu1 %v6467_v45 }
 0x646   :  { %5539 = vmatprep.subr.bf16.mxu1 %v6583_v25 }
 0x649   :  { %5540 = vmatpush3.bf16.msra.mxu1 %v6468_v22 }
 0x64a   :  { %5541 = vmatprep.subr.bf16.mxu1 %v6583_v25 }
 0x64d   :  { %5542 = vmatpush3.bf16.msra.mxu1 %v6469_v2 }
 0x64e   :  { %5543 = vmatprep.subr.bf16.mxu1 %v6583_v25 }
 0x651   :  { %5544 = vmatpush3.bf16.msra.mxu1 %v6470_v4 }
 0x652   :  { %5545 = vmatprep.subr.bf16.mxu1 %v6583_v25 }
 0x655   :  { %5546 = vmatpush3.bf16.msra.mxu1 %v6471_v10 }
 0x656   :  { %5547 = vmatprep.subr.bf16.mxu1 %v6583_v25  ;;  %v5398_v25 = vld [vmem:[%s8418_s6] ss:$0 sm:$0xff] }
 0x659   :  { %5548 = vmatpush3.bf16.msra.mxu1 %v6472_v19 }
 0x6af   :  { %v4633_v35 = vpop.f32.mrb[128].mxu1 }
 0x6b0   :  { %v5471_v62 = vpop.f32.mrb[129].mxu1 }
 0x6b1   :  { %v4636_v8 = vpop.f32.mrb[130].mxu1 }
 0x6b2   :  { %v5472_v40 = vpop.f32.mrb[131].mxu1 }
 0x6cf   :  { %v4722_v51 = vpop.f32.mrb[132].mxu1 }
 0x6d0   :  { %v4723_v32 = vadd.f32 %v4722_v51, %v4633_v35  ;;  %v5491_v57 = vpop.f32.mrb[133].mxu1 }
 0x6d1   :  { %v4725_v60 = vpop.f32.mrb[134].mxu1 }
 0x6d2   :  { %v4726_v44 = vadd.f32 %v4725_v60, %v4636_v8  ;;  %v5492_v43 = vpop.f32.mrb[135].mxu1 }
 0x6ef   :  { %v4827_v9 = vpop.f32.mrb[136].mxu1 }
 0x6f0   :  { %v4834_v53 = vadd.f32 %v4827_v9, %v4723_v32  ;;  %v5511_v6 = vpop.f32.mrb[137].mxu1 }
 0x6f1   :  { %v4830_v41 = vpop.f32.mrb[138].mxu1 }
 0x6f2   :  { %v4835_v34 = vadd.f32 %v4830_v41, %v4726_v44  ;;  %v5512_v47 = vpop.f32.mrb[139].mxu1 }
 0x70f   :  { %v4934_v61 = vpop.f32.mrb[140].mxu1 }
 0x710   :  { %v4941_v14 = vadd.f32 %v4934_v61, %v4834_v53  ;;  %v5531_v24 = vpop.f32.mrb[141].mxu1 }
 0x711   :  { %v4937_v38 = vpop.f32.mrb[142].mxu1 }
 0x712   :  { %v4950_v46 = vadd.f32 %v5398_v25, %v4941_v14  ;;  %v4942_v18 = vadd.f32 %v4937_v38, %v4835_v34  ;;  %v5532_v42 = vpop.f32.mrb[143].mxu1 }
 0x714   :  { %v4951_v63 = vadd.f32 %v5398_v25, %v4942_v18  ;;  %v4952_v33 = vmax.f32 %v4950_v46, 0.0 }
 0x716   :  { %v4953_v36 = vmax.f32 %v4951_v63, 0.0 }
 0x718   :  { %v4954_v1 = vpack.c.bf16 %v4953_v36, %v4952_v33 }
 0x71a   :  { %5550 = vmatmul.mubr.bf16.vlgmr.msra.gmra.mrb[144].mxu1 %v4954_v1 }
 0x7ed   :  { %v5060_v26 = vpop.f32.mrb[144].mxu1 }
 0x7ee   :  { %v5061_v15 = vadd.f32 %v5399_v29, %v5060_v26  ;;  %v5551_v12 = vpop.f32.mrb[145].mxu1 }
 0x7ef   :  { %v5063_v28 = vpop.f32.mrb[146].mxu1 }
 0x7f0   :  { %v5064_v11 = vadd.f32 %v5399_v29, %v5063_v28  ;;  %v5552_v0 = vpop.f32.mrb[147].mxu1  ;;  %v5070_v55 = vsel %vm5069_vm1, %v5061_v15, -1e+30 }
 0x7f1   :  { %5072 = vmax.xlane.f32.xlu0 %v5070_v55 }
 0x7f2   :  { %v5071_v23 = vsel %vm5069_vm1, %v5064_v11, -1e+30 }
 0x7f5   :  { %5074 = vmax.xlane.f32.xlu0 %v5071_v23 }
 0x87e   :  { %v5073_v30 = vpop.xlane.xlu0 %5072 }
 0x87f   :  { %v5076_v49 = vsub.f32 %v5070_v55, %v5073_v30 }
 0x881   :  { %v5078_v3 = vmul.f32 1.442695, %v5076_v49 }
 0x882   :  { %v5075_v5 = vpop.xlane.xlu0 %5074 }
 0x883   :  { %v5077_v27 = vsub.f32 %v5071_v23, %v5075_v5  ;;  %6473 = vpow2.f32 %v5078_v3 }
 0x885   :  { %v5080_v56 = vmul.f32 1.442695, %v5077_v27 }
 0x887   :  { %6475 = vpow2.f32 %v5080_v56 }
 0x88d   :  { %v6474_v58 = vpop.eup %6473 }
 0x88e   :  { %5082 = vadd.xlane.f32.xlu1 %v6474_v58 }
 0x891   :  { %v6476_v59 = vpop.eup %6475 }
 0x892   :  { %5084 = vadd.xlane.f32.xlu1 %v6476_v59 }
 0x91b   :  { %v5083_v54 = vpop.xlane.xlu1 %5082 }
 0x91c   :  { %6477 = vlog2.f32 %v5083_v54 }
 0x91f   :  { %v5085_v50 = vpop.xlane.xlu1 %5084 }
 0x920   :  { %6479 = vlog2.f32 %v5085_v50 }
 0x926   :  { %v6478_v39 = vpop.eup %6477 }
 0x927   :  { %v5087_v16 = vmul.f32 0.6931472, %v6478_v39 }
 0x929   :  { %v5090_v48 = vadd.f32 %v5087_v16, %v5073_v30 }
 0x92a   :  { %v6480_v17 = vpop.eup %6479 }
 0x92b   :  { %v5092_v21 = vsub.f32 %v5070_v55, %v5090_v48  ;;  %v5089_v31 = vmul.f32 0.6931472, %v6480_v17 }
 0x92d   :  { %5094 = vst [vmem:[%s8421_s9] sm:$0xff] %v5092_v21  ;;  %v5091_v37 = vadd.f32 %v5089_v31, %v5075_v5 }
 0x92f   :  { %v5093_v20 = vsub.f32 %v5071_v23, %v5091_v37 }
 0x931   :  { %5095 = vst [vmem:[%s8421_s9 + $0x8] sm:$0xff] %v5093_v20 }
 0x932   :  { %5100 = vsyncpa [#allocation3], 1 }
 0x933   :  { %5101 = vsyncpa [#allocation5], 1 }

</bundles_post_ra>
